<compile_context>
chip_gen: v6e
topology: v6e:2x2x1
jax: 0.10.0
libtpu: 0.0.40
codegen_flags: <defaults>
</compile_context>

<pallas_src>
import jax
import jax.numpy as jnp
import numpy as np
from jax.experimental import pallas as pl
from jax.experimental.pallas import tpu as pltpu

DIM_IN = 4
DIM_OUT = 2
HIDDEN = 512
N_HIDDEN_LAYERS = 5
BATCH = 16                 # single tile: whole batch in one grid step
LN_EPS = 1e-5


def deep_model_kernel(x_ref, w_in_ref, b_in_ref, w_h_hbm, b_h_ref,
                      gamma_ref, beta_ref, w_out_ref, b_out_ref, o_ref,
                      w_buf, sem):
    # Prime the layer-0 weight DMA immediately so it overlaps the input-layer compute.
    pltpu.make_async_copy(w_h_hbm.at[0], w_buf.at[0], sem.at[0]).start()

    x = x_ref[...]

    # Input layer: K=4 is too small for a useful MXU pass -> 4 VPU broadcast-FMAs.
    h = jnp.broadcast_to(b_in_ref[...], (BATCH, HIDDEN))
    for k in range(DIM_IN):
        h = h + x[:, k:k + 1] * w_in_ref[k:k + 1, :]

    # 5 hidden layers: double-buffered bf16 weight stream from HBM, MXU matmul with
    # f32 accumulation, tanh on the EUP in f32.
    for i in range(N_HIDDEN_LAYERS):
        slot = i & 1
        # Wait for this layer's weights.
        pltpu.make_async_copy(w_h_hbm.at[i], w_buf.at[slot], sem.at[slot]).wait()
        # Prefetch the next layer's weights into the other slot while we compute.
        if i + 1 < N_HIDDEN_LAYERS:
            pltpu.make_async_copy(w_h_hbm.at[i + 1], w_buf.at[1 - slot],
                                  sem.at[1 - slot]).start()
        acc = jnp.dot(h.astype(jnp.bfloat16), w_buf[slot],
                      preferred_element_type=jnp.float32)
        h = jnp.tanh(acc + b_h_ref[i])

    # LayerNorm (eps=1e-5, elementwise affine), single-pass fused statistics.
    # (E[x^2]-E[x]^2 is safe here because tanh bounds |h| <= 1.)
    s1 = jnp.sum(h, axis=-1, keepdims=True)
    s2 = jnp.sum(h * h, axis=-1, keepdims=True)
    mean = s1 * (1.0 / HIDDEN)
    var = s2 * (1.0 / HIDDEN) - mean * mean
    h = (h - mean) * jax.lax.rsqrt(var + LN_EPS)
    h = h * gamma_ref[...] + beta_ref[...]

    # Output projection: tiny (16,512)@(512,2) f32 matmul + bias, real-size store.
    o_ref[...] = (
        jnp.dot(h, w_out_ref[...], preferred_element_type=jnp.float32)
        + b_out_ref[...]
    ).astype(o_ref.dtype)


def prepare_params(params):
    """One-time (init-time) weight preprocessing.

    The kernel is HBM-bound on the weight stream; doing the bf16 cast here (once)
    instead of per call removes ~7.5 MiB of extra per-call HBM traffic and two extra
    XLA kernel launches."""
    w_in, b_in, w_h, b_h, gamma, beta, w_out, b_out = params
    return (w_in, b_in, w_h.astype(jnp.bfloat16), b_h, gamma, beta, w_out, b_out)


def deep_model_pallas(x, prepared_params):
    w_in, b_in, w_h_bf16, b_h, gamma, beta, w_out, b_out = prepared_params
    B = x.shape[0]
    assert B == BATCH
    assert w_h_bf16.dtype == jnp.bfloat16

    full = lambda shape: pl.BlockSpec(shape, lambda i: (0,) * len(shape))

    return pl.pallas_call(
        deep_model_kernel,
        out_shape=jax.ShapeDtypeStruct((B, DIM_OUT), jnp.float32),
        grid=(1,),  # single step; weights streamed manually, fetched exactly once
        in_specs=[
            pl.BlockSpec((BATCH, DIM_IN), lambda i: (i, 0)),   # x (16,4) f32
            full(w_in.shape),                                  # (4,512) f32
            full(b_in.shape),                                  # (1,512) f32
            pl.BlockSpec(memory_space=pl.ANY),                 # w_h (5,512,512) bf16 in HBM
            full(b_h.shape),                                   # (5,1,512) f32
            full(gamma.shape),                                 # (1,512) f32
            full(beta.shape),                                  # (1,512) f32
            full(w_out.shape),                                 # (512,2) f32 (tiny, no padding)
            full(b_out.shape),                                 # (1,2) f32
        ],
        out_specs=pl.BlockSpec((BATCH, DIM_OUT), lambda i: (i, 0)),
        scratch_shapes=[
            pltpu.VMEM((2, HIDDEN, HIDDEN), jnp.bfloat16),     # double-buffered layer weights (1 MiB)
            pltpu.SemaphoreType.DMA((2,)),
        ],
        compiler_params=pltpu.CompilerParams(
            dimension_semantics=("arbitrary",),   # no megacore weight-DMA duplication
        ),
    )(x, w_in, b_in, w_h_bf16, b_h, gamma, beta, w_out, b_out)


def reference_jax(x, params, quantize_weights=False):
    w_in, b_in, w_h, b_h, gamma, beta, w_out, b_out = params
    if quantize_weights:
        # Evaluate the same function the kernel was handed (bf16-rounded hidden weights).
        w_h = w_h.astype(jnp.bfloat16).astype(jnp.float32)
    h = x @ w_in + b_in
    for i in range(N_HIDDEN_LAYERS):
        h = jnp.tanh(h @ w_h[i] + b_h[i])
    mean = jnp.mean(h, axis=-1, keepdims=True)
    var = jnp.mean((h - mean) ** 2, axis=-1, keepdims=True)
    h = (h - mean) / jnp.sqrt(var + LN_EPS)
    h = h * gamma + beta
    return h @ w_out + b_out


def init_params(key):
    ks = jax.random.split(key, 8)
    scale_in = 1.0 / np.sqrt(DIM_IN)
    scale_h = 1.0 / np.sqrt(HIDDEN)
    w_in = jax.random.uniform(ks[0], (DIM_IN, HIDDEN), jnp.float32, -scale_in, scale_in)
    b_in = jax.random.uniform(ks[1], (1, HIDDEN), jnp.float32, -scale_in, scale_in)
    w_h = jax.random.uniform(ks[2], (N_HIDDEN_LAYERS, HIDDEN, HIDDEN), jnp.float32, -scale_h, scale_h)
    b_h = jax.random.uniform(ks[3], (N_HIDDEN_LAYERS, 1, HIDDEN), jnp.float32, -scale_h, scale_h)
    gamma = jnp.ones((1, HIDDEN), jnp.float32)
    beta = jnp.zeros((1, HIDDEN), jnp.float32)
    w_out = jax.random.uniform(ks[4], (HIDDEN, DIM_OUT), jnp.float32, -scale_h, scale_h)
    b_out = jax.random.uniform(ks[5], (1, DIM_OUT), jnp.float32, -scale_h, scale_h)
    return (w_in, b_in, w_h, b_h, gamma, beta, w_out, b_out)


if __name__ == "__main__":
    key = jax.random.PRNGKey(0)
    pkey, xkey = jax.random.split(key)
    params = init_params(pkey)
    prepared = prepare_params(params)   # one-time weight prep, NOT in the per-call path
    x = jax.random.normal(xkey, (BATCH, DIM_IN), jnp.float32)

    out = jax.block_until_ready(deep_model_pallas(x, prepared))

    # Compare against an f32 evaluation of the same bf16-rounded hidden weights (remaining
    # delta is only the in-kernel bf16 activation cast at the MXU), plus a looser check
    # against the full-f32 model.
    ref_q = jax.block_until_ready(reference_jax(x, params, quantize_weights=True))
    np.testing.assert_allclose(np.asarray(out), np.asarray(ref_q), rtol=2e-2, atol=2e-2)
    ref_f32 = jax.block_until_ready(reference_jax(x, params, quantize_weights=False))
    np.testing.assert_allclose(np.asarray(out), np.asarray(ref_f32), rtol=5e-2, atol=5e-2)

    print("KERNEL_OK")
</pallas_src>

<mosaic_0001>
module attributes {stable_mosaic.version = 11 : i64} {
  func.func @deep_model_kernel(%arg0: i32, %arg1: memref<16x4xf32, #tpu.memory_space<vmem>>, %arg2: memref<4x512xf32, #tpu.memory_space<vmem>>, %arg3: memref<1x512xf32, #tpu.memory_space<vmem>>, %arg4: memref<5x512x512xbf16, #tpu.memory_space<any>>, %arg5: memref<5x1x512xf32, #tpu.memory_space<vmem>>, %arg6: memref<1x512xf32, #tpu.memory_space<vmem>>, %arg7: memref<1x512xf32, #tpu.memory_space<vmem>>, %arg8: memref<512x2xf32, #tpu.memory_space<vmem>>, %arg9: memref<1x2xf32, #tpu.memory_space<vmem>>, %arg10: memref<16x2xf32, #tpu.memory_space<vmem>>, %arg11: memref<2x512x512xbf16, #tpu.memory_space<vmem>>, %arg12: memref<2x!tpu.dma_semaphore, #tpu.memory_space<semaphore_mem>>) attributes {dimension_semantics = [#tpu.dimension_semantics<arbitrary>], iteration_bounds = array<i64: 1>, scalar_prefetch = 0 : i64, scratch_operands = 2 : i64, tpu.core_type = #tpu.core_type<tc>, window_params = [{transform_indices = @transform_0, window_bounds = array<i64: 16, 4>}, {pipeline_mode = #tpu.pipeline_mode<synchronous>, transform_indices = @transform_1, window_bounds = array<i64: 4, 512>}, {pipeline_mode = #tpu.pipeline_mode<synchronous>, transform_indices = @transform_2, window_bounds = array<i64: 1, 512>}, {}, {pipeline_mode = #tpu.pipeline_mode<synchronous>, transform_indices = @transform_4, window_bounds = array<i64: 5, 1, 512>}, {pipeline_mode = #tpu.pipeline_mode<synchronous>, transform_indices = @transform_5, window_bounds = array<i64: 1, 512>}, {pipeline_mode = #tpu.pipeline_mode<synchronous>, transform_indices = @transform_6, window_bounds = array<i64: 1, 512>}, {pipeline_mode = #tpu.pipeline_mode<synchronous>, transform_indices = @transform_7, window_bounds = array<i64: 512, 2>}, {pipeline_mode = #tpu.pipeline_mode<synchronous>, transform_indices = @transform_8, window_bounds = array<i64: 1, 2>}, {transform_indices = @transform_9, window_bounds = array<i64: 16, 2>}]} {
    %c0_i32 = arith.constant 0 : i32
    %c0_i32_0 = arith.constant 0 : i32
    %c0_i32_1 = arith.constant 0 : i32
    %c0_i32_2 = arith.constant 0 : i32
    %c0_i32_3 = arith.constant 0 : i32
    %0 = tpu.memref_slice %arg4[%c0_i32, %c0_i32_2, %c0_i32_3] : memref<5x512x512xbf16, #tpu.memory_space<any>> -> memref<1x512x512xbf16, #tpu.memory_space<any>>
    %1 = tpu.memref_squeeze %0 : memref<1x512x512xbf16, #tpu.memory_space<any>> -> memref<512x512xbf16, #tpu.memory_space<any>>
    %c0_i32_4 = arith.constant 0 : i32
    %c0_i32_5 = arith.constant 0 : i32
    %2 = tpu.memref_slice %arg11[%c0_i32_0, %c0_i32_4, %c0_i32_5] : memref<2x512x512xbf16, #tpu.memory_space<vmem>> -> memref<1x512x512xbf16, #tpu.memory_space<vmem>>
    %3 = tpu.memref_squeeze %2 : memref<1x512x512xbf16, #tpu.memory_space<vmem>> -> memref<512x512xbf16, #tpu.memory_space<vmem>>
    %4 = tpu.memref_slice %arg12[%c0_i32_1] : memref<2x!tpu.dma_semaphore, #tpu.memory_space<semaphore_mem>> -> memref<1x!tpu.dma_semaphore, #tpu.memory_space<semaphore_mem>>
    %5 = tpu.memref_squeeze %4 : memref<1x!tpu.dma_semaphore, #tpu.memory_space<semaphore_mem>> -> memref<!tpu.dma_semaphore, #tpu.memory_space<semaphore_mem>>
    tpu.enqueue_dma source(%1 : memref<512x512xbf16, #tpu.memory_space<any>>) target(%3 : memref<512x512xbf16, #tpu.memory_space<vmem>>) target_semaphore(%5 : memref<!tpu.dma_semaphore, #tpu.memory_space<semaphore_mem>>)
    %c0 = arith.constant 0 : index
    %c0_6 = arith.constant 0 : index
    %6 = vector.load %arg1[%c0, %c0_6] : memref<16x4xf32, #tpu.memory_space<vmem>>, vector<16x4xf32>
    %c0_7 = arith.constant 0 : index
    %c0_8 = arith.constant 0 : index
    %7 = vector.load %arg3[%c0_7, %c0_8] : memref<1x512xf32, #tpu.memory_space<vmem>>, vector<1x512xf32>
    %8 = vector.shape_cast %7 : vector<1x512xf32> to vector<1x512xf32>
    %9 = vector.broadcast %8 : vector<1x512xf32> to vector<16x512xf32>
    %10 = vector.extract_strided_slice %6 {offsets = [0, 0], sizes = [16, 1], strides = [1, 1]} : vector<16x4xf32> to vector<16x1xf32>
    %c0_9 = arith.constant 0 : index
    %c0_10 = arith.constant 0 : index
    %11 = vector.load %arg2[%c0_9, %c0_10] : memref<4x512xf32, #tpu.memory_space<vmem>>, vector<1x512xf32>
    %12 = vector.broadcast %10 : vector<16x1xf32> to vector<16x512xf32>
    %13 = vector.broadcast %11 : vector<1x512xf32> to vector<16x512xf32>
    %14 = arith.mulf %12, %13 : vector<16x512xf32>
    %15 = arith.addf %9, %14 : vector<16x512xf32>
    %16 = vector.extract_strided_slice %6 {offsets = [0, 1], sizes = [16, 1], strides = [1, 1]} : vector<16x4xf32> to vector<16x1xf32>
    %c1 = arith.constant 1 : index
    %c0_11 = arith.constant 0 : index
    %17 = vector.load %arg2[%c1, %c0_11] : memref<4x512xf32, #tpu.memory_space<vmem>>, vector<1x512xf32>
    %18 = vector.broadcast %16 : vector<16x1xf32> to vector<16x512xf32>
    %19 = vector.broadcast %17 : vector<1x512xf32> to vector<16x512xf32>
    %20 = arith.mulf %18, %19 : vector<16x512xf32>
    %21 = arith.addf %15, %20 : vector<16x512xf32>
    %22 = vector.extract_strided_slice %6 {offsets = [0, 2], sizes = [16, 1], strides = [1, 1]} : vector<16x4xf32> to vector<16x1xf32>
    %c2 = arith.constant 2 : index
    %c0_12 = arith.constant 0 : index
    %23 = vector.load %arg2[%c2, %c0_12] : memref<4x512xf32, #tpu.memory_space<vmem>>, vector<1x512xf32>
    %24 = vector.broadcast %22 : vector<16x1xf32> to vector<16x512xf32>
    %25 = vector.broadcast %23 : vector<1x512xf32> to vector<16x512xf32>
    %26 = arith.mulf %24, %25 : vector<16x512xf32>
    %27 = arith.addf %21, %26 : vector<16x512xf32>
    %28 = vector.extract_strided_slice %6 {offsets = [0, 3], sizes = [16, 1], strides = [1, 1]} : vector<16x4xf32> to vector<16x1xf32>
    %c3 = arith.constant 3 : index
    %c0_13 = arith.constant 0 : index
    %29 = vector.load %arg2[%c3, %c0_13] : memref<4x512xf32, #tpu.memory_space<vmem>>, vector<1x512xf32>
    %30 = vector.broadcast %28 : vector<16x1xf32> to vector<16x512xf32>
    %31 = vector.broadcast %29 : vector<1x512xf32> to vector<16x512xf32>
    %32 = arith.mulf %30, %31 : vector<16x512xf32>
    %33 = arith.addf %27, %32 : vector<16x512xf32>
    %c0_i32_14 = arith.constant 0 : i32
    %c0_i32_15 = arith.constant 0 : i32
    %c0_i32_16 = arith.constant 0 : i32
    %c0_i32_17 = arith.constant 0 : i32
    %c0_i32_18 = arith.constant 0 : i32
    %34 = tpu.memref_slice %arg4[%c0_i32_14, %c0_i32_17, %c0_i32_18] : memref<5x512x512xbf16, #tpu.memory_space<any>> -> memref<1x512x512xbf16, #tpu.memory_space<any>>
    %35 = tpu.memref_squeeze %34 : memref<1x512x512xbf16, #tpu.memory_space<any>> -> memref<512x512xbf16, #tpu.memory_space<any>>
    %c0_i32_19 = arith.constant 0 : i32
    %c0_i32_20 = arith.constant 0 : i32
    %36 = tpu.memref_slice %arg11[%c0_i32_15, %c0_i32_19, %c0_i32_20] : memref<2x512x512xbf16, #tpu.memory_space<vmem>> -> memref<1x512x512xbf16, #tpu.memory_space<vmem>>
    %37 = tpu.memref_squeeze %36 : memref<1x512x512xbf16, #tpu.memory_space<vmem>> -> memref<512x512xbf16, #tpu.memory_space<vmem>>
    %38 = tpu.memref_slice %arg12[%c0_i32_16] : memref<2x!tpu.dma_semaphore, #tpu.memory_space<semaphore_mem>> -> memref<1x!tpu.dma_semaphore, #tpu.memory_space<semaphore_mem>>
    %39 = tpu.memref_squeeze %38 : memref<1x!tpu.dma_semaphore, #tpu.memory_space<semaphore_mem>> -> memref<!tpu.dma_semaphore, #tpu.memory_space<semaphore_mem>>
    tpu.wait_dma2 semaphore(%39 : memref<!tpu.dma_semaphore, #tpu.memory_space<semaphore_mem>>) src(%35 : memref<512x512xbf16, #tpu.memory_space<any>>) dst(%37 : memref<512x512xbf16, #tpu.memory_space<vmem>>)
    %c1_i32 = arith.constant 1 : i32
    %c1_i32_21 = arith.constant 1 : i32
    %c1_i32_22 = arith.constant 1 : i32
    %c0_i32_23 = arith.constant 0 : i32
    %c0_i32_24 = arith.constant 0 : i32
    %40 = tpu.memref_slice %arg4[%c1_i32, %c0_i32_23, %c0_i32_24] : memref<5x512x512xbf16, #tpu.memory_space<any>> -> memref<1x512x512xbf16, #tpu.memory_space<any>>
    %41 = tpu.memref_squeeze %40 : memref<1x512x512xbf16, #tpu.memory_space<any>> -> memref<512x512xbf16, #tpu.memory_space<any>>
    %c0_i32_25 = arith.constant 0 : i32
    %c0_i32_26 = arith.constant 0 : i32
    %42 = tpu.memref_slice %arg11[%c1_i32_21, %c0_i32_25, %c0_i32_26] : memref<2x512x512xbf16, #tpu.memory_space<vmem>> -> memref<1x512x512xbf16, #tpu.memory_space<vmem>>
    %43 = tpu.memref_squeeze %42 : memref<1x512x512xbf16, #tpu.memory_space<vmem>> -> memref<512x512xbf16, #tpu.memory_space<vmem>>
    %44 = tpu.memref_slice %arg12[%c1_i32_22] : memref<2x!tpu.dma_semaphore, #tpu.memory_space<semaphore_mem>> -> memref<1x!tpu.dma_semaphore, #tpu.memory_space<semaphore_mem>>
    %45 = tpu.memref_squeeze %44 : memref<1x!tpu.dma_semaphore, #tpu.memory_space<semaphore_mem>> -> memref<!tpu.dma_semaphore, #tpu.memory_space<semaphore_mem>>
    tpu.enqueue_dma source(%41 : memref<512x512xbf16, #tpu.memory_space<any>>) target(%43 : memref<512x512xbf16, #tpu.memory_space<vmem>>) target_semaphore(%45 : memref<!tpu.dma_semaphore, #tpu.memory_space<semaphore_mem>>)
    %46 = arith.truncf %33 : vector<16x512xf32> to vector<16x512xbf16>
    %c0_27 = arith.constant 0 : index
    %c0_28 = arith.constant 0 : index
    %c0_29 = arith.constant 0 : index
    %47 = vector.load %arg11[%c0_27, %c0_28, %c0_29] : memref<2x512x512xbf16, #tpu.memory_space<vmem>>, vector<1x512x512xbf16>
    %48 = vector.shape_cast %47 : vector<1x512x512xbf16> to vector<512x512xbf16>
    %cst = arith.constant dense<0.000000e+00> : vector<16x512xf32>
    %49 = tpu.matmul %46, %48, %cst {dimension_numbers = #tpu.dot_dimension_numbers<[1], [0], [0], [1], [0, 0, 1, 1], [], []>} : vector<16x512xbf16>, vector<512x512xbf16>, vector<16x512xf32> -> vector<16x512xf32>
    %c0_30 = arith.constant 0 : index
    %c0_31 = arith.constant 0 : index
    %c0_32 = arith.constant 0 : index
    %50 = vector.load %arg5[%c0_30, %c0_31, %c0_32] : memref<5x1x512xf32, #tpu.memory_space<vmem>>, vector<1x1x512xf32>
    %51 = vector.shape_cast %50 : vector<1x1x512xf32> to vector<1x512xf32>
    %52 = vector.broadcast %51 : vector<1x512xf32> to vector<16x512xf32>
    %53 = arith.addf %49, %52 : vector<16x512xf32>
    %54 = math.tanh %53 : vector<16x512xf32>
    %c1_i32_33 = arith.constant 1 : i32
    %c1_i32_34 = arith.constant 1 : i32
    %c1_i32_35 = arith.constant 1 : i32
    %c0_i32_36 = arith.constant 0 : i32
    %c0_i32_37 = arith.constant 0 : i32
    %55 = tpu.memref_slice %arg4[%c1_i32_33, %c0_i32_36, %c0_i32_37] : memref<5x512x512xbf16, #tpu.memory_space<any>> -> memref<1x512x512xbf16, #tpu.memory_space<any>>
    %56 = tpu.memref_squeeze %55 : memref<1x512x512xbf16, #tpu.memory_space<any>> -> memref<512x512xbf16, #tpu.memory_space<any>>
    %c0_i32_38 = arith.constant 0 : i32
    %c0_i32_39 = arith.constant 0 : i32
    %57 = tpu.memref_slice %arg11[%c1_i32_34, %c0_i32_38, %c0_i32_39] : memref<2x512x512xbf16, #tpu.memory_space<vmem>> -> memref<1x512x512xbf16, #tpu.memory_space<vmem>>
    %58 = tpu.memref_squeeze %57 : memref<1x512x512xbf16, #tpu.memory_space<vmem>> -> memref<512x512xbf16, #tpu.memory_space<vmem>>
    %59 = tpu.memref_slice %arg12[%c1_i32_35] : memref<2x!tpu.dma_semaphore, #tpu.memory_space<semaphore_mem>> -> memref<1x!tpu.dma_semaphore, #tpu.memory_space<semaphore_mem>>
    %60 = tpu.memref_squeeze %59 : memref<1x!tpu.dma_semaphore, #tpu.memory_space<semaphore_mem>> -> memref<!tpu.dma_semaphore, #tpu.memory_space<semaphore_mem>>
    tpu.wait_dma2 semaphore(%60 : memref<!tpu.dma_semaphore, #tpu.memory_space<semaphore_mem>>) src(%56 : memref<512x512xbf16, #tpu.memory_space<any>>) dst(%58 : memref<512x512xbf16, #tpu.memory_space<vmem>>)
    %c2_i32 = arith.constant 2 : i32
    %c0_i32_40 = arith.constant 0 : i32
    %c0_i32_41 = arith.constant 0 : i32
    %c0_i32_42 = arith.constant 0 : i32
    %c0_i32_43 = arith.constant 0 : i32
    %61 = tpu.memref_slice %arg4[%c2_i32, %c0_i32_42, %c0_i32_43] : memref<5x512x512xbf16, #tpu.memory_space<any>> -> memref<1x512x512xbf16, #tpu.memory_space<any>>
    %62 = tpu.memref_squeeze %61 : memref<1x512x512xbf16, #tpu.memory_space<any>> -> memref<512x512xbf16, #tpu.memory_space<any>>
    %c0_i32_44 = arith.constant 0 : i32
    %c0_i32_45 = arith.constant 0 : i32
    %63 = tpu.memref_slice %arg11[%c0_i32_40, %c0_i32_44, %c0_i32_45] : memref<2x512x512xbf16, #tpu.memory_space<vmem>> -> memref<1x512x512xbf16, #tpu.memory_space<vmem>>
    %64 = tpu.memref_squeeze %63 : memref<1x512x512xbf16, #tpu.memory_space<vmem>> -> memref<512x512xbf16, #tpu.memory_space<vmem>>
    %65 = tpu.memref_slice %arg12[%c0_i32_41] : memref<2x!tpu.dma_semaphore, #tpu.memory_space<semaphore_mem>> -> memref<1x!tpu.dma_semaphore, #tpu.memory_space<semaphore_mem>>
    %66 = tpu.memref_squeeze %65 : memref<1x!tpu.dma_semaphore, #tpu.memory_space<semaphore_mem>> -> memref<!tpu.dma_semaphore, #tpu.memory_space<semaphore_mem>>
    tpu.enqueue_dma source(%62 : memref<512x512xbf16, #tpu.memory_space<any>>) target(%64 : memref<512x512xbf16, #tpu.memory_space<vmem>>) target_semaphore(%66 : memref<!tpu.dma_semaphore, #tpu.memory_space<semaphore_mem>>)
    %67 = arith.truncf %54 : vector<16x512xf32> to vector<16x512xbf16>
    %c1_46 = arith.constant 1 : index
    %c0_47 = arith.constant 0 : index
    %c0_48 = arith.constant 0 : index
    %68 = vector.load %arg11[%c1_46, %c0_47, %c0_48] : memref<2x512x512xbf16, #tpu.memory_space<vmem>>, vector<1x512x512xbf16>
    %69 = vector.shape_cast %68 : vector<1x512x512xbf16> to vector<512x512xbf16>
    %cst_49 = arith.constant dense<0.000000e+00> : vector<16x512xf32>
    %70 = tpu.matmul %67, %69, %cst_49 {dimension_numbers = #tpu.dot_dimension_numbers<[1], [0], [0], [1], [0, 0, 1, 1], [], []>} : vector<16x512xbf16>, vector<512x512xbf16>, vector<16x512xf32> -> vector<16x512xf32>
    %c1_50 = arith.constant 1 : index
    %c0_51 = arith.constant 0 : index
    %c0_52 = arith.constant 0 : index
    %71 = vector.load %arg5[%c1_50, %c0_51, %c0_52] : memref<5x1x512xf32, #tpu.memory_space<vmem>>, vector<1x1x512xf32>
    %72 = vector.shape_cast %71 : vector<1x1x512xf32> to vector<1x512xf32>
    %73 = vector.broadcast %72 : vector<1x512xf32> to vector<16x512xf32>
    %74 = arith.addf %70, %73 : vector<16x512xf32>
    %75 = math.tanh %74 : vector<16x512xf32>
    %c2_i32_53 = arith.constant 2 : i32
    %c0_i32_54 = arith.constant 0 : i32
    %c0_i32_55 = arith.constant 0 : i32
    %c0_i32_56 = arith.constant 0 : i32
    %c0_i32_57 = arith.constant 0 : i32
    %76 = tpu.memref_slice %arg4[%c2_i32_53, %c0_i32_56, %c0_i32_57] : memref<5x512x512xbf16, #tpu.memory_space<any>> -> memref<1x512x512xbf16, #tpu.memory_space<any>>
    %77 = tpu.memref_squeeze %76 : memref<1x512x512xbf16, #tpu.memory_space<any>> -> memref<512x512xbf16, #tpu.memory_space<any>>
    %c0_i32_58 = arith.constant 0 : i32
    %c0_i32_59 = arith.constant 0 : i32
    %78 = tpu.memref_slice %arg11[%c0_i32_54, %c0_i32_58, %c0_i32_59] : memref<2x512x512xbf16, #tpu.memory_space<vmem>> -> memref<1x512x512xbf16, #tpu.memory_space<vmem>>
    %79 = tpu.memref_squeeze %78 : memref<1x512x512xbf16, #tpu.memory_space<vmem>> -> memref<512x512xbf16, #tpu.memory_space<vmem>>
    %80 = tpu.memref_slice %arg12[%c0_i32_55] : memref<2x!tpu.dma_semaphore, #tpu.memory_space<semaphore_mem>> -> memref<1x!tpu.dma_semaphore, #tpu.memory_space<semaphore_mem>>
    %81 = tpu.memref_squeeze %80 : memref<1x!tpu.dma_semaphore, #tpu.memory_space<semaphore_mem>> -> memref<!tpu.dma_semaphore, #tpu.memory_space<semaphore_mem>>
    tpu.wait_dma2 semaphore(%81 : memref<!tpu.dma_semaphore, #tpu.memory_space<semaphore_mem>>) src(%77 : memref<512x512xbf16, #tpu.memory_space<any>>) dst(%79 : memref<512x512xbf16, #tpu.memory_space<vmem>>)
    %c3_i32 = arith.constant 3 : i32
    %c1_i32_60 = arith.constant 1 : i32
    %c1_i32_61 = arith.constant 1 : i32
    %c0_i32_62 = arith.constant 0 : i32
    %c0_i32_63 = arith.constant 0 : i32
    %82 = tpu.memref_slice %arg4[%c3_i32, %c0_i32_62, %c0_i32_63] : memref<5x512x512xbf16, #tpu.memory_space<any>> -> memref<1x512x512xbf16, #tpu.memory_space<any>>
    %83 = tpu.memref_squeeze %82 : memref<1x512x512xbf16, #tpu.memory_space<any>> -> memref<512x512xbf16, #tpu.memory_space<any>>
    %c0_i32_64 = arith.constant 0 : i32
    %c0_i32_65 = arith.constant 0 : i32
    %84 = tpu.memref_slice %arg11[%c1_i32_60, %c0_i32_64, %c0_i32_65] : memref<2x512x512xbf16, #tpu.memory_space<vmem>> -> memref<1x512x512xbf16, #tpu.memory_space<vmem>>
    %85 = tpu.memref_squeeze %84 : memref<1x512x512xbf16, #tpu.memory_space<vmem>> -> memref<512x512xbf16, #tpu.memory_space<vmem>>
    %86 = tpu.memref_slice %arg12[%c1_i32_61] : memref<2x!tpu.dma_semaphore, #tpu.memory_space<semaphore_mem>> -> memref<1x!tpu.dma_semaphore, #tpu.memory_space<semaphore_mem>>
    %87 = tpu.memref_squeeze %86 : memref<1x!tpu.dma_semaphore, #tpu.memory_space<semaphore_mem>> -> memref<!tpu.dma_semaphore, #tpu.memory_space<semaphore_mem>>
    tpu.enqueue_dma source(%83 : memref<512x512xbf16, #tpu.memory_space<any>>) target(%85 : memref<512x512xbf16, #tpu.memory_space<vmem>>) target_semaphore(%87 : memref<!tpu.dma_semaphore, #tpu.memory_space<semaphore_mem>>)
    %88 = arith.truncf %75 : vector<16x512xf32> to vector<16x512xbf16>
    %c0_66 = arith.constant 0 : index
    %c0_67 = arith.constant 0 : index
    %c0_68 = arith.constant 0 : index
    %89 = vector.load %arg11[%c0_66, %c0_67, %c0_68] : memref<2x512x512xbf16, #tpu.memory_space<vmem>>, vector<1x512x512xbf16>
    %90 = vector.shape_cast %89 : vector<1x512x512xbf16> to vector<512x512xbf16>
    %cst_69 = arith.constant dense<0.000000e+00> : vector<16x512xf32>
    %91 = tpu.matmul %88, %90, %cst_69 {dimension_numbers = #tpu.dot_dimension_numbers<[1], [0], [0], [1], [0, 0, 1, 1], [], []>} : vector<16x512xbf16>, vector<512x512xbf16>, vector<16x512xf32> -> vector<16x512xf32>
    %c2_70 = arith.constant 2 : index
    %c0_71 = arith.constant 0 : index
    %c0_72 = arith.constant 0 : index
    %92 = vector.load %arg5[%c2_70, %c0_71, %c0_72] : memref<5x1x512xf32, #tpu.memory_space<vmem>>, vector<1x1x512xf32>
    %93 = vector.shape_cast %92 : vector<1x1x512xf32> to vector<1x512xf32>
    %94 = vector.broadcast %93 : vector<1x512xf32> to vector<16x512xf32>
    %95 = arith.addf %91, %94 : vector<16x512xf32>
    %96 = math.tanh %95 : vector<16x512xf32>
    %c3_i32_73 = arith.constant 3 : i32
    %c1_i32_74 = arith.constant 1 : i32
    %c1_i32_75 = arith.constant 1 : i32
    %c0_i32_76 = arith.constant 0 : i32
    %c0_i32_77 = arith.constant 0 : i32
    %97 = tpu.memref_slice %arg4[%c3_i32_73, %c0_i32_76, %c0_i32_77] : memref<5x512x512xbf16, #tpu.memory_space<any>> -> memref<1x512x512xbf16, #tpu.memory_space<any>>
    %98 = tpu.memref_squeeze %97 : memref<1x512x512xbf16, #tpu.memory_space<any>> -> memref<512x512xbf16, #tpu.memory_space<any>>
    %c0_i32_78 = arith.constant 0 : i32
    %c0_i32_79 = arith.constant 0 : i32
    %99 = tpu.memref_slice %arg11[%c1_i32_74, %c0_i32_78, %c0_i32_79] : memref<2x512x512xbf16, #tpu.memory_space<vmem>> -> memref<1x512x512xbf16, #tpu.memory_space<vmem>>
    %100 = tpu.memref_squeeze %99 : memref<1x512x512xbf16, #tpu.memory_space<vmem>> -> memref<512x512xbf16, #tpu.memory_space<vmem>>
    %101 = tpu.memref_slice %arg12[%c1_i32_75] : memref<2x!tpu.dma_semaphore, #tpu.memory_space<semaphore_mem>> -> memref<1x!tpu.dma_semaphore, #tpu.memory_space<semaphore_mem>>
    %102 = tpu.memref_squeeze %101 : memref<1x!tpu.dma_semaphore, #tpu.memory_space<semaphore_mem>> -> memref<!tpu.dma_semaphore, #tpu.memory_space<semaphore_mem>>
    tpu.wait_dma2 semaphore(%102 : memref<!tpu.dma_semaphore, #tpu.memory_space<semaphore_mem>>) src(%98 : memref<512x512xbf16, #tpu.memory_space<any>>) dst(%100 : memref<512x512xbf16, #tpu.memory_space<vmem>>)
    %c4_i32 = arith.constant 4 : i32
    %c0_i32_80 = arith.constant 0 : i32
    %c0_i32_81 = arith.constant 0 : i32
    %c0_i32_82 = arith.constant 0 : i32
    %c0_i32_83 = arith.constant 0 : i32
    %103 = tpu.memref_slice %arg4[%c4_i32, %c0_i32_82, %c0_i32_83] : memref<5x512x512xbf16, #tpu.memory_space<any>> -> memref<1x512x512xbf16, #tpu.memory_space<any>>
    %104 = tpu.memref_squeeze %103 : memref<1x512x512xbf16, #tpu.memory_space<any>> -> memref<512x512xbf16, #tpu.memory_space<any>>
    %c0_i32_84 = arith.constant 0 : i32
    %c0_i32_85 = arith.constant 0 : i32
    %105 = tpu.memref_slice %arg11[%c0_i32_80, %c0_i32_84, %c0_i32_85] : memref<2x512x512xbf16, #tpu.memory_space<vmem>> -> memref<1x512x512xbf16, #tpu.memory_space<vmem>>
    %106 = tpu.memref_squeeze %105 : memref<1x512x512xbf16, #tpu.memory_space<vmem>> -> memref<512x512xbf16, #tpu.memory_space<vmem>>
    %107 = tpu.memref_slice %arg12[%c0_i32_81] : memref<2x!tpu.dma_semaphore, #tpu.memory_space<semaphore_mem>> -> memref<1x!tpu.dma_semaphore, #tpu.memory_space<semaphore_mem>>
    %108 = tpu.memref_squeeze %107 : memref<1x!tpu.dma_semaphore, #tpu.memory_space<semaphore_mem>> -> memref<!tpu.dma_semaphore, #tpu.memory_space<semaphore_mem>>
    tpu.enqueue_dma source(%104 : memref<512x512xbf16, #tpu.memory_space<any>>) target(%106 : memref<512x512xbf16, #tpu.memory_space<vmem>>) target_semaphore(%108 : memref<!tpu.dma_semaphore, #tpu.memory_space<semaphore_mem>>)
    %109 = arith.truncf %96 : vector<16x512xf32> to vector<16x512xbf16>
    %c1_86 = arith.constant 1 : index
    %c0_87 = arith.constant 0 : index
    %c0_88 = arith.constant 0 : index
    %110 = vector.load %arg11[%c1_86, %c0_87, %c0_88] : memref<2x512x512xbf16, #tpu.memory_space<vmem>>, vector<1x512x512xbf16>
    %111 = vector.shape_cast %110 : vector<1x512x512xbf16> to vector<512x512xbf16>
    %cst_89 = arith.constant dense<0.000000e+00> : vector<16x512xf32>
    %112 = tpu.matmul %109, %111, %cst_89 {dimension_numbers = #tpu.dot_dimension_numbers<[1], [0], [0], [1], [0, 0, 1, 1], [], []>} : vector<16x512xbf16>, vector<512x512xbf16>, vector<16x512xf32> -> vector<16x512xf32>
    %c3_90 = arith.constant 3 : index
    %c0_91 = arith.constant 0 : index
    %c0_92 = arith.constant 0 : index
    %113 = vector.load %arg5[%c3_90, %c0_91, %c0_92] : memref<5x1x512xf32, #tpu.memory_space<vmem>>, vector<1x1x512xf32>
    %114 = vector.shape_cast %113 : vector<1x1x512xf32> to vector<1x512xf32>
    %115 = vector.broadcast %114 : vector<1x512xf32> to vector<16x512xf32>
    %116 = arith.addf %112, %115 : vector<16x512xf32>
    %117 = math.tanh %116 : vector<16x512xf32>
    %c4_i32_93 = arith.constant 4 : i32
    %c0_i32_94 = arith.constant 0 : i32
    %c0_i32_95 = arith.constant 0 : i32
    %c0_i32_96 = arith.constant 0 : i32
    %c0_i32_97 = arith.constant 0 : i32
    %118 = tpu.memref_slice %arg4[%c4_i32_93, %c0_i32_96, %c0_i32_97] : memref<5x512x512xbf16, #tpu.memory_space<any>> -> memref<1x512x512xbf16, #tpu.memory_space<any>>
    %119 = tpu.memref_squeeze %118 : memref<1x512x512xbf16, #tpu.memory_space<any>> -> memref<512x512xbf16, #tpu.memory_space<any>>
    %c0_i32_98 = arith.constant 0 : i32
    %c0_i32_99 = arith.constant 0 : i32
    %120 = tpu.memref_slice %arg11[%c0_i32_94, %c0_i32_98, %c0_i32_99] : memref<2x512x512xbf16, #tpu.memory_space<vmem>> -> memref<1x512x512xbf16, #tpu.memory_space<vmem>>
    %121 = tpu.memref_squeeze %120 : memref<1x512x512xbf16, #tpu.memory_space<vmem>> -> memref<512x512xbf16, #tpu.memory_space<vmem>>
    %122 = tpu.memref_slice %arg12[%c0_i32_95] : memref<2x!tpu.dma_semaphore, #tpu.memory_space<semaphore_mem>> -> memref<1x!tpu.dma_semaphore, #tpu.memory_space<semaphore_mem>>
    %123 = tpu.memref_squeeze %122 : memref<1x!tpu.dma_semaphore, #tpu.memory_space<semaphore_mem>> -> memref<!tpu.dma_semaphore, #tpu.memory_space<semaphore_mem>>
    tpu.wait_dma2 semaphore(%123 : memref<!tpu.dma_semaphore, #tpu.memory_space<semaphore_mem>>) src(%119 : memref<512x512xbf16, #tpu.memory_space<any>>) dst(%121 : memref<512x512xbf16, #tpu.memory_space<vmem>>)
    %124 = arith.truncf %117 : vector<16x512xf32> to vector<16x512xbf16>
    %c0_100 = arith.constant 0 : index
    %c0_101 = arith.constant 0 : index
    %c0_102 = arith.constant 0 : index
    %125 = vector.load %arg11[%c0_100, %c0_101, %c0_102] : memref<2x512x512xbf16, #tpu.memory_space<vmem>>, vector<1x512x512xbf16>
    %126 = vector.shape_cast %125 : vector<1x512x512xbf16> to vector<512x512xbf16>
    %cst_103 = arith.constant dense<0.000000e+00> : vector<16x512xf32>
    %127 = tpu.matmul %124, %126, %cst_103 {dimension_numbers = #tpu.dot_dimension_numbers<[1], [0], [0], [1], [0, 0, 1, 1], [], []>} : vector<16x512xbf16>, vector<512x512xbf16>, vector<16x512xf32> -> vector<16x512xf32>
    %c4 = arith.constant 4 : index
    %c0_104 = arith.constant 0 : index
    %c0_105 = arith.constant 0 : index
    %128 = vector.load %arg5[%c4, %c0_104, %c0_105] : memref<5x1x512xf32, #tpu.memory_space<vmem>>, vector<1x1x512xf32>
    %129 = vector.shape_cast %128 : vector<1x1x512xf32> to vector<1x512xf32>
    %130 = vector.broadcast %129 : vector<1x512xf32> to vector<16x512xf32>
    %131 = arith.addf %127, %130 : vector<16x512xf32>
    %132 = math.tanh %131 : vector<16x512xf32>
    %cst_106 = arith.constant dense<0.000000e+00> : vector<16xf32>
    %133 = vector.multi_reduction <add>, %132, %cst_106 [1] : vector<16x512xf32> to vector<16xf32>
    %134 = vector.shape_cast %133 : vector<16xf32> to vector<16x1xf32>
    %135 = arith.mulf %132, %132 : vector<16x512xf32>
    %cst_107 = arith.constant dense<0.000000e+00> : vector<16xf32>
    %136 = vector.multi_reduction <add>, %135, %cst_107 [1] : vector<16x512xf32> to vector<16xf32>
    %137 = vector.shape_cast %136 : vector<16xf32> to vector<16x1xf32>
    %cst_108 = arith.constant 0.001953125 : f32
    %138 = vector.broadcast %cst_108 : f32 to vector<16x1xf32>
    %139 = arith.mulf %134, %138 : vector<16x1xf32>
    %cst_109 = arith.constant 0.001953125 : f32
    %140 = vector.broadcast %cst_109 : f32 to vector<16x1xf32>
    %141 = arith.mulf %137, %140 : vector<16x1xf32>
    %142 = arith.mulf %139, %139 : vector<16x1xf32>
    %143 = arith.subf %141, %142 : vector<16x1xf32>
    %144 = vector.broadcast %139 : vector<16x1xf32> to vector<16x512xf32>
    %145 = arith.subf %132, %144 : vector<16x512xf32>
    %cst_110 = arith.constant 9.99999974E-6 : f32
    %146 = vector.broadcast %cst_110 : f32 to vector<16x1xf32>
    %147 = arith.addf %143, %146 : vector<16x1xf32>
    %148 = math.rsqrt %147 : vector<16x1xf32>
    %149 = vector.broadcast %148 : vector<16x1xf32> to vector<16x512xf32>
    %150 = arith.mulf %145, %149 : vector<16x512xf32>
    %c0_111 = arith.constant 0 : index
    %c0_112 = arith.constant 0 : index
    %151 = vector.load %arg6[%c0_111, %c0_112] : memref<1x512xf32, #tpu.memory_space<vmem>>, vector<1x512xf32>
    %152 = vector.broadcast %151 : vector<1x512xf32> to vector<16x512xf32>
    %153 = arith.mulf %150, %152 : vector<16x512xf32>
    %c0_113 = arith.constant 0 : index
    %c0_114 = arith.constant 0 : index
    %154 = vector.load %arg7[%c0_113, %c0_114] : memref<1x512xf32, #tpu.memory_space<vmem>>, vector<1x512xf32>
    %155 = vector.broadcast %154 : vector<1x512xf32> to vector<16x512xf32>
    %156 = arith.addf %153, %155 : vector<16x512xf32>
    %c0_115 = arith.constant 0 : index
    %c0_116 = arith.constant 0 : index
    %157 = vector.load %arg8[%c0_115, %c0_116] : memref<512x2xf32, #tpu.memory_space<vmem>>, vector<512x2xf32>
    %cst_117 = arith.constant dense<0.000000e+00> : vector<16x2xf32>
    %158 = tpu.matmul %156, %157, %cst_117 {dimension_numbers = #tpu.dot_dimension_numbers<[1], [0], [0], [1], [0, 0, 1, 1], [], []>} : vector<16x512xf32>, vector<512x2xf32>, vector<16x2xf32> -> vector<16x2xf32>
    %c0_118 = arith.constant 0 : index
    %c0_119 = arith.constant 0 : index
    %159 = vector.load %arg9[%c0_118, %c0_119] : memref<1x2xf32, #tpu.memory_space<vmem>>, vector<1x2xf32>
    %160 = vector.broadcast %159 : vector<1x2xf32> to vector<16x2xf32>
    %161 = arith.addf %158, %160 : vector<16x2xf32>
    %c0_120 = arith.constant 0 : index
    %c0_121 = arith.constant 0 : index
    %162 = vector.load %arg10[%c0_120, %c0_121] : memref<16x2xf32, #tpu.memory_space<vmem>>, vector<16x2xf32>
    tpu.vector_store %arg10[%c0_120, %c0_121], %161 {strides = array<i32>} : memref<16x2xf32, #tpu.memory_space<vmem>>, vector<16x2xf32>,
    return
  }
  func.func @transform_0(%arg0: i32) -> (i32, i32) {
    %c0_i32 = arith.constant 0 : i32
    %c0_i32_0 = arith.constant 0 : i32
    return %arg0, %c0_i32 : i32, i32
  }
  func.func @transform_1(%arg0: i32) -> (i32, i32) {
    %c0_i32 = arith.constant 0 : i32
    %c0_i32_0 = arith.constant 0 : i32
    %c0_i32_1 = arith.constant 0 : i32
    return %c0_i32, %c0_i32_0 : i32, i32
  }
  func.func @transform_2(%arg0: i32) -> (i32, i32) {
    %c0_i32 = arith.constant 0 : i32
    %c0_i32_0 = arith.constant 0 : i32
    %c0_i32_1 = arith.constant 0 : i32
    return %c0_i32, %c0_i32_0 : i32, i32
  }
  func.func @transform_4(%arg0: i32) -> (i32, i32, i32) {
    %c0_i32 = arith.constant 0 : i32
    %c0_i32_0 = arith.constant 0 : i32
    %c0_i32_1 = arith.constant 0 : i32
    %c0_i32_2 = arith.constant 0 : i32
    return %c0_i32, %c0_i32_0, %c0_i32_1 : i32, i32, i32
  }
  func.func @transform_5(%arg0: i32) -> (i32, i32) {
    %c0_i32 = arith.constant 0 : i32
    %c0_i32_0 = arith.constant 0 : i32
    %c0_i32_1 = arith.constant 0 : i32
    return %c0_i32, %c0_i32_0 : i32, i32
  }
  func.func @transform_6(%arg0: i32) -> (i32, i32) {
    %c0_i32 = arith.constant 0 : i32
    %c0_i32_0 = arith.constant 0 : i32
    %c0_i32_1 = arith.constant 0 : i32
    return %c0_i32, %c0_i32_0 : i32, i32
  }
  func.func @transform_7(%arg0: i32) -> (i32, i32) {
    %c0_i32 = arith.constant 0 : i32
    %c0_i32_0 = arith.constant 0 : i32
    %c0_i32_1 = arith.constant 0 : i32
    return %c0_i32, %c0_i32_0 : i32, i32
  }
  func.func @transform_8(%arg0: i32) -> (i32, i32) {
    %c0_i32 = arith.constant 0 : i32
    %c0_i32_0 = arith.constant 0 : i32
    %c0_i32_1 = arith.constant 0 : i32
    return %c0_i32, %c0_i32_0 : i32, i32
  }
  func.func @transform_9(%arg0: i32) -> (i32, i32) {
    %c0_i32 = arith.constant 0 : i32
    %c0_i32_0 = arith.constant 0 : i32
    return %arg0, %c0_i32 : i32, i32
  }
}

</mosaic_0001>

<bundles_post_ra>
// kernel: tpu_custom_call.1
= control target key start
LH: loop header
LB: loop body
LE: loop exit
PB: predicated region body
PF: predicated region fallthrough
CT: control target
= control target key end

     0   :  { %14 = vsyncpa [#allocation5], 0  ;;  %s8255_s0 = inlined_call_operand.vmem [shape: f32[16,4], index: 0, kind: input, shape index: {}]   ;;  %s8256_s1 = inlined_call_operand.hbm [shape: f32[4,512], index: 1, kind: input, shape index: {}]   ;;  %s8257_s2 = inlined_call_operand.hbm [shape: f32[1,512], index: 2, kind: input, shape index: {}]   ;;  %s8258_s3 = inlined_call_operand.hbm [shape: bf16[5,512,512], index: 3, kind: input, shape index: {}]   ;;  %s8259_s4 = inlined_call_operand.hbm [shape: f32[5,1,512], index: 4, kind: input, shape index: {}]   ;;  %s8260_s5 = inlined_call_operand.hbm [shape: f32[1,512], index: 5, kind: input, shape index: {}]   ;;  %s8261_s6 = inlined_call_operand.hbm [shape: f32[1,512], index: 6, kind: input, shape index: {}]   ;;  %s8262_s7 = inlined_call_operand.vmem [shape: f32[512,2], index: 7, kind: input, shape index: {}]   ;;  %s8263_s8 = inlined_call_operand.hbm [shape: f32[1,2], index: 8, kind: input, shape index: {}]   ;;  %s8264_s9 = inlined_call_operand.vmem [shape: f32[16,2], index: 9, kind: output, shape index: {}]  }
   0x1   :  { %15 = vsyncpa [#allocation7], 0 }
   0x2   :  { %16 = vsyncpa [#allocation10], 0 }
   0x3   :  { %17 = vsyncpa [#allocation13], 0  ;;  %s7656_s30 = smov [#allocation6]   ;;  %s7657_s11 = smov [#allocation9]  }
   0x4   :  { %s36_s10 = sshll.u32 %s7656_s30, 4  ;;  %s58_s12 = sshll.u32 %s7657_s11, 4  ;;  %s37_s10 = int_to_ptr.vmem [resolvable:$true] %s36_s10  ;;  %s59_s12 = int_to_ptr.vmem [resolvable:$true] %s58_s12 }
   0x5   :  { %s7414_s13 = scalar_lea.vmem %s37_s10, 64  ;;  %p7419_p1 = scmp.lt.s32.totalorder %s37_s10, %s37_s10 }
   0x6   :  { %p7415_p0 = scmp.ne.s32.totalorder %s37_s10, %s7414_s13  ;;  %p7420_p2 = scmp.lt.s32.totalorder %s7414_s13, %s7414_s13 }
   0x8   :  { %p7421_p3 = por %p7420_p2, %p7419_p1 }
   0xa   :  { %p7422_p4 = pnand %p7421_p3, %p7415_p0 }
   0xc   :  { %7425 = shalt.err (!%p7422_p4)
}
   0xd   :  { %39 = dma.hbm_to_vmem [thread:$0]  %s8257_s2, 64, %s37_s10, [#allocation7]  }
   0xe   :  { %s7434_s16 = scalar_lea.vmem %s59_s12, 64  ;;  %p7439_p6 = scmp.lt.s32.totalorder %s59_s12, %s59_s12 }
   0xf   :  { %p7435_p5 = scmp.ne.s32.totalorder %s59_s12, %s7434_s16  ;;  %p7440_p7 = scmp.lt.s32.totalorder %s7434_s16, %s7434_s16 }
  0x11   :  { %p7441_p8 = por %p7440_p7, %p7439_p6 }
  0x13   :  { %p7442_p9 = pnand %p7441_p8, %p7435_p5 }
  0x15   :  { %7445 = shalt.err (!%p7442_p9)
}
  0x16   :  { %61 = dma.hbm_to_vmem [thread:$0]  %s8260_s5, 64, %s59_s12, [#allocation10]  }
  0x17   :  { %s7658_s19 = smov [#allocation4]   ;;  %s7659_s21 = smov [#allocation8]  }
  0x18   :  { %s26_s20 = sshll.u32 %s7658_s19, 4  ;;  %s45_s22 = sshll.u32 %s7659_s21, 4  ;;  %s27_s20 = int_to_ptr.vmem [resolvable:$true] %s26_s20  ;;  %s46_s22 = int_to_ptr.vmem [resolvable:$true] %s45_s22 }
  0x19   :  { %s7454_s23 = scalar_lea.vmem %s27_s20, 256  ;;  %p7459_p11 = scmp.lt.s32.totalorder %s27_s20, %s27_s20 }
  0x1a   :  { %p7455_p10 = scmp.ne.s32.totalorder %s27_s20, %s7454_s23  ;;  %p7460_p12 = scmp.lt.s32.totalorder %s7454_s23, %s7454_s23 }
  0x1c   :  { %p7461_p13 = por %p7460_p12, %p7459_p11 }
  0x1e   :  { %p7462_p0 = pnand %p7461_p13, %p7455_p10 }
  0x20   :  { %7465 = shalt.err (!%p7462_p0)
}
  0x21   :  { %29 = dma.hbm_to_vmem [thread:$0]  %s8256_s1, 256, %s27_s20, [#allocation5]  }
  0x22   :  { %s7474_s25 = scalar_lea.vmem %s46_s22, 320  ;;  %p7479_p2 = scmp.lt.s32.totalorder %s46_s22, %s46_s22 }
  0x23   :  { %p7475_p1 = scmp.ne.s32.totalorder %s46_s22, %s7474_s25  ;;  %p7480_p3 = scmp.lt.s32.totalorder %s7474_s25, %s7474_s25 }
  0x25   :  { %p7481_p4 = por %p7480_p3, %p7479_p2 }
  0x27   :  { %p7482_p5 = pnand %p7481_p4, %p7475_p1 }
  0x29   :  { %7485 = shalt.err (!%p7482_p5)
}
  0x2a   :  { %s7660_s5 = smov 64   ;;  %s7661_s26 = smov 4  }
  0x2b   :  { %51 = dma.hbm_to_vmem [thread:$0]  %s8259_s4, 320, %s46_s22, [#allocation7], %s7660_s5, %s7660_s5, %s7661_s26  }
  0x2c   :  { %s7662_s29 = smov [#allocation11]   ;;  %s7663_s10 = smov [#allocation12]  }
  0x2d   :  { %s68_s30 = sshll.u32 %s7662_s29, 4  ;;  %s80_s11 = sshll.u32 %s7663_s10, 4  ;;  %s69_s30 = int_to_ptr.vmem [resolvable:$true] %s68_s30  ;;  %s81_s11 = int_to_ptr.vmem [resolvable:$true] %s80_s11 }
  0x2e   :  { %s7494_s1 = scalar_lea.vmem %s69_s30, 64  ;;  %p7499_p7 = scmp.lt.s32.totalorder %s69_s30, %s69_s30 }
  0x2f   :  { %p7495_p6 = scmp.ne.s32.totalorder %s69_s30, %s7494_s1  ;;  %p7500_p8 = scmp.lt.s32.totalorder %s7494_s1, %s7494_s1 }
  0x31   :  { %p7501_p9 = por %p7500_p8, %p7499_p7 }
  0x33   :  { %p7502_p10 = pnand %p7501_p9, %p7495_p6 }
  0x35   :  { %7505 = shalt.err (!%p7502_p10)
}
  0x36   :  { %71 = dma.hbm_to_vmem [thread:$0]  %s8261_s6, 64, %s69_s30, [#allocation10]  }
  0x37   :  { %s7514_s14 = scalar_lea.vmem %s81_s11, 16  ;;  %s7518_s4 = scalar_lea.vmem %s81_s11, 32 }
  0x38   :  { %p7515_p11 = scmp.ne.s32.totalorder %s81_s11, %s7514_s14  ;;  %p7519_p12 = scmp.lt.s32.totalorder %s81_s11, %s81_s11 }
  0x39   :  { %p7520_p13 = scmp.lt.s32.totalorder %s7518_s4, %s7514_s14 }
  0x3b   :  { %p7521_p0 = por %p7520_p13, %p7519_p12 }
  0x3d   :  { %p7522_p1 = pnand %p7521_p0, %p7515_p11 }
  0x3f   :  { %7525 = shalt.err (!%p7522_p1)
}
  0x40   :  { %83 = dma.hbm_to_vmem [thread:$0]  %s8263_s8, 16, %s81_s11, [#allocation13]  }
  0x41   :  { %7638 = dma.done.wait [#allocation5], 256  }
  0x42   :  { %7639 = vsyncadd [#allocation5], 4294967040 }
  0x43   :  { %7640 = dma.done.wait [#allocation7], 384  }
  0x44   :  { %7641 = vsyncadd [#allocation7], 4294966912 }
  0x45   :  { %7642 = dma.done.wait [#allocation10], 128  }
  0x46   :  { %7643 = vsyncadd [#allocation10], 4294967168 }
  0x47   :  { %7644 = dma.done.wait [#allocation13], 16  }
  0x48   :  { %7645 = vsyncadd [#allocation13], 4294967280  ;;  %v7664_v0 = vmov 1   ;;  %v7665_v1 = vmov 0   ;;  %v113_v2 = vld [vmem:[%s8255_s0] sm:$0xff]  ;;  %v114_v3 = vld [vmem:[%s8255_s0 + $0x8] sm:$0xff] }
  0x49   :  { %6357 = vset.pattern.permute.xlu1 %v7664_v0  ;;  %6356 = vset.pattern.permute.xlu0 %v7665_v1  ;;  %v7666_v4 = vmov 2   ;;  %v7667_v5 = vmov 3   ;;  %s7668_s19 = smov [#allocation2]  }
  0x4a   :  { %188 = vperm.xlu1 %6357, %v113_v2   ;;  %140 = vperm.xlu0 %6356, %v113_v2   ;;  %s109_s20 = sshll.u32 %s7668_s19, 4  ;;  %s7744_s20 = int_to_ptr.vmem [resolvable:$true] %s109_s20 }
  0x4b   :  { %s7534_s0 = scalar_lea.vmem %s7744_s20, 16384  ;;  %s7538_s21 = scalar_lea.vmem %s7744_s20, 32768 }
  0x4c   :  { %p7535_p2 = scmp.ne.s32.totalorder %s7744_s20, %s7534_s0  ;;  %p7539_p3 = scmp.lt.s32.totalorder %s7744_s20, %s7744_s20 }
  0x4d   :  { %p7540_p4 = scmp.lt.s32.totalorder %s7538_s21, %s7534_s0 }
  0x4e   :  { %192 = vperm.xlu1 %6357, %v114_v3   ;;  %145 = vperm.xlu0 %6356, %v114_v3  }
  0x4f   :  { %p7541_p5 = por %p7540_p4, %p7539_p3 }
  0x51   :  { %p7753_p6 = pnand %p7541_p5, %p7535_p2 }
  0x52   :  { %6359 = vset.pattern.permute.xlu1 %v7666_v4  ;;  %6358 = vset.pattern.permute.xlu0 %v7666_v4 }
  0x53   :  { %239 = vperm.xlu1 %6359, %v114_v3   ;;  %235 = vperm.xlu0 %6358, %v113_v2  }
  0x57   :  { %6360 = vset.pattern.permute.xlu1 %v7667_v5  ;;  %6361 = vset.pattern.permute.xlu0 %v7667_v5 }
  0x58   :  { %282 = vperm.xlu1 %6360, %v113_v2   ;;  %286 = vperm.xlu0 %6361, %v114_v3  }
  0x59   :  { %7545 = shalt.err (!%p7753_p6)  }
  0x5a   :  { %112 = dma.hbm_to_vmem [thread:$0]  %s8258_s3, 16384, %s7744_s20, [#allocation3]  ;;  %v117_v6 = vlaneseq  ;;  %v137_v12 = vld [vmem:[#allocation4] ss:$4 sm:$0xf] }
  0x5b   :  { %v186_v13 = vld [vmem:[#allocation4 + $0x1] ss:$4 sm:$0xf]  ;;  %v115_v14 = vld [vmem:[#allocation6] sm:$0xf] }
  0x5c   :  { %v118_v7 = vshrl.u32 %v117_v6, 7  ;;  %v233_v19 = vld [vmem:[#allocation4 + $0x2] ss:$4 sm:$0xf] }
  0x5d   :  { %v280_v30 = vld [vmem:[#allocation4 + $0x3] ss:$4 sm:$0xf] }
  0x5e   :  { %v7763_v8 = vsub.s32 0, %v118_v7  ;;  %v7765_v9 = vsub.s32 1, %v118_v7  ;;  %v7767_v10 = vsub.s32 2, %v118_v7  ;;  %v7769_v11 = vsub.s32 3, %v118_v7 }
  0x60   :  { %v152_v15 = vrot.slane %v137_v12, %v7763_v8  ;;  %v156_v16 = vrot.slane %v137_v12, %v7765_v9  ;;  %v160_v17 = vrot.slane %v137_v12, %v7767_v10  ;;  %v164_v18 = vrot.slane %v137_v12, %v7769_v11 }
  0x61   :  { %v199_v20 = vrot.slane %v186_v13, %v7763_v8  ;;  %v203_v21 = vrot.slane %v186_v13, %v7765_v9  ;;  %v207_v22 = vrot.slane %v186_v13, %v7767_v10  ;;  %v211_v23 = vrot.slane %v186_v13, %v7769_v11 }
  0x62   :  { %v120_v25 = vrot.slane %v115_v14, %v7763_v8  ;;  %v124_v26 = vrot.slane %v115_v14, %v7765_v9  ;;  %v128_v27 = vrot.slane %v115_v14, %v7767_v10  ;;  %v132_v28 = vrot.slane %v115_v14, %v7769_v11 }
  0x63   :  { %v246_v31 = vrot.slane %v233_v19, %v7763_v8  ;;  %v250_v32 = vrot.slane %v233_v19, %v7765_v9  ;;  %v254_v33 = vrot.slane %v233_v19, %v7767_v10  ;;  %v258_v34 = vrot.slane %v233_v19, %v7769_v11 }
  0x64   :  { %v293_v39 = vrot.slane %v280_v30, %v7763_v8  ;;  %v297_v40 = vrot.slane %v280_v30, %v7765_v9  ;;  %v301_v41 = vrot.slane %v280_v30, %v7767_v10  ;;  %v305_v42 = vrot.slane %v280_v30, %v7769_v11 }
  0xc5   :  { %v189_v24 = vpop.permute.xlu1 %188  ;;  %v141_v29 = vpop.permute.xlu0 %140 }
  0xc6   :  { %v169_v35 = vmul.f32 %v152_v15, %v141_v29  ;;  %v170_v36 = vmul.f32 %v156_v16, %v141_v29  ;;  %v171_v37 = vmul.f32 %v160_v17, %v141_v29  ;;  %v172_v38 = vmul.f32 %v164_v18, %v141_v29 }
  0xc7   :  { %v216_v43 = vmul.f32 %v199_v20, %v189_v24  ;;  %v217_v44 = vmul.f32 %v203_v21, %v189_v24  ;;  %v218_v45 = vmul.f32 %v207_v22, %v189_v24  ;;  %v219_v46 = vmul.f32 %v211_v23, %v189_v24 }
  0xc8   :  { %v177_v49 = vadd.f32 %v169_v35, %v120_v25  ;;  %v178_v50 = vadd.f32 %v170_v36, %v124_v26  ;;  %v179_v51 = vadd.f32 %v171_v37, %v128_v27  ;;  %v180_v52 = vadd.f32 %v172_v38, %v132_v28 }
  0xc9   :  { %v193_v47 = vpop.permute.xlu1 %192  ;;  %v146_v48 = vpop.permute.xlu0 %145 }
  0xca   :  { %v173_v53 = vmul.f32 %v152_v15, %v146_v48  ;;  %v174_v54 = vmul.f32 %v156_v16, %v146_v48  ;;  %v175_v55 = vmul.f32 %v160_v17, %v146_v48  ;;  %v176_v56 = vmul.f32 %v164_v18, %v146_v48 }
  0xcb   :  { %v220_v57 = vmul.f32 %v199_v20, %v193_v47  ;;  %v221_v58 = vmul.f32 %v203_v21, %v193_v47  ;;  %v222_v59 = vmul.f32 %v207_v22, %v193_v47  ;;  %v223_v60 = vmul.f32 %v211_v23, %v193_v47 }
  0xcc   :  { %v181_v61 = vadd.f32 %v173_v53, %v120_v25  ;;  %v182_v62 = vadd.f32 %v174_v54, %v124_v26  ;;  %v183_v63 = vadd.f32 %v175_v55, %v128_v27  ;;  %v184_v0 = vadd.f32 %v176_v56, %v132_v28 }
  0xcd   :  { %v224_v3 = vadd.f32 %v216_v43, %v177_v49  ;;  %v225_v4 = vadd.f32 %v217_v44, %v178_v50  ;;  %v226_v5 = vadd.f32 %v218_v45, %v179_v51  ;;  %v227_v6 = vadd.f32 %v219_v46, %v180_v52 }
  0xce   :  { %v240_v1 = vpop.permute.xlu1 %239  ;;  %v236_v2 = vpop.permute.xlu0 %235  ;;  %v228_v19 = vadd.f32 %v220_v57, %v181_v61  ;;  %v229_v20 = vadd.f32 %v221_v58, %v182_v62  ;;  %v230_v21 = vadd.f32 %v222_v59, %v183_v63  ;;  %v231_v22 = vadd.f32 %v223_v60, %v184_v0 }
  0xcf   :  { %v267_v7 = vmul.f32 %v246_v31, %v240_v1  ;;  %v268_v12 = vmul.f32 %v250_v32, %v240_v1  ;;  %v269_v13 = vmul.f32 %v254_v33, %v240_v1  ;;  %v270_v14 = vmul.f32 %v258_v34, %v240_v1 }
  0xd0   :  { %v263_v15 = vmul.f32 %v246_v31, %v236_v2  ;;  %v264_v16 = vmul.f32 %v250_v32, %v236_v2  ;;  %v265_v17 = vmul.f32 %v254_v33, %v236_v2  ;;  %v266_v18 = vmul.f32 %v258_v34, %v236_v2 }
  0xd1   :  { %v275_v28 = vadd.f32 %v267_v7, %v228_v19  ;;  %v276_v29 = vadd.f32 %v268_v12, %v229_v20  ;;  %v277_v30 = vadd.f32 %v269_v13, %v230_v21  ;;  %v278_v35 = vadd.f32 %v270_v14, %v231_v22 }
  0xd2   :  { %v271_v23 = vadd.f32 %v263_v15, %v224_v3  ;;  %v272_v24 = vadd.f32 %v264_v16, %v225_v4  ;;  %v273_v25 = vadd.f32 %v265_v17, %v226_v5  ;;  %v274_v26 = vadd.f32 %v266_v18, %v227_v6 }
  0xd3   :  { %v283_v27 = vpop.permute.xlu1 %282  ;;  %v287_v36 = vpop.permute.xlu0 %286 }
  0xd4   :  { %v310_v37 = vmul.f32 %v293_v39, %v283_v27  ;;  %v311_v38 = vmul.f32 %v297_v40, %v283_v27  ;;  %v312_v31 = vmul.f32 %v301_v41, %v283_v27  ;;  %v313_v32 = vmul.f32 %v305_v42, %v283_v27 }
  0xd5   :  { %v314_v33 = vmul.f32 %v293_v39, %v287_v36  ;;  %v315_v34 = vmul.f32 %v297_v40, %v287_v36  ;;  %v316_v43 = vmul.f32 %v301_v41, %v287_v36  ;;  %v317_v44 = vmul.f32 %v305_v42, %v287_v36 }
  0xd6   :  { %v7791_v45 = vadd.f32 %v310_v37, %v271_v23  ;;  %v319_v46 = vadd.f32 %v311_v38, %v272_v24  ;;  %v7793_v47 = vadd.f32 %v312_v31, %v273_v25  ;;  %v321_v48 = vadd.f32 %v313_v32, %v274_v26 }
  0xd7   :  { %v7795_v49 = vadd.f32 %v314_v33, %v275_v28  ;;  %v323_v50 = vadd.f32 %v315_v34, %v276_v29  ;;  %v7797_v51 = vadd.f32 %v316_v43, %v277_v30  ;;  %v325_v52 = vadd.f32 %v317_v44, %v278_v35 }
  0xd8   :  { %7646 = dma.done.wait [#allocation3], 16384 }
  0xd9   :  { %7647 = vsyncadd [#allocation3], 4294950912  ;;  %s330_s5 = scalar_lea.hbm %s8258_s3, 16384  ;;  %v7802_v39 = vpack.c.bf16 %v323_v50, %v319_v46  ;;  %v7804_v40 = vpack.c.bf16 %v325_v52, %v321_v48  ;;  %s7669_s26 = smov [#allocation2 + $0x400]  }
  0xda   :  { %s340_s27 = sshll.u32 %s7669_s26, 4  ;;  %s7806_s27 = int_to_ptr.vmem [resolvable:$true] %s340_s27 }
  0xdb   :  { %1170 = vmatprep.mubr.bf16.mxu0 %v7802_v39  ;;  %1213 = vmatprep.mubr.bf16.mxu1 %v7804_v40  ;;  %s7556_s28 = scalar_lea.vmem %s7806_s27, 16384  ;;  %p7561_p8 = scmp.lt.s32.totalorder %s7806_s27, %s7744_s20 }
  0xdc   :  { %p7812_p7 = scmp.ne.s32.totalorder %s7806_s27, %s7556_s28  ;;  %p7562_p9 = scmp.lt.s32.totalorder %s7538_s21, %s7556_s28 }
  0xde   :  { %p7820_p10 = por %p7562_p9, %p7561_p8 }
  0xe0   :  { %p7564_p11 = pnand %p7820_p10, %p7812_p7 }
  0xe2   :  { %7567 = shalt.err (!%p7564_p11)  }
  0xe3   :  { %343 = dma.hbm_to_vmem [thread:$0]  %s330_s5, 16384, %s7806_s27, [#allocation3 + $0x1] }
  0xe4   :  { %v6362_v41 = vld [vmem:[#allocation2 + $0xe4] ss:$16 sps:$4 sm:$0xff]   ;;  %v6366_v53 = vld [vmem:[#allocation2 + $0xe0] ss:$16 sps:$4 sm:$0xff]  }
  0xe5   :  { %v6364_v42 = vld [vmem:[#allocation2 + $0x2e4] ss:$16 sps:$4 sm:$0xff]   ;;  %1138 = vmatprep.subr.bf16.mxu0 %v6362_v41  ;;  %v6367_v54 = vld [vmem:[#allocation2 + $0x2e0] ss:$16 sps:$4 sm:$0xff]  }
  0xe6   :  { %1181 = vmatprep.subr.bf16.mxu1 %v6364_v42  ;;  %v6368_v55 = vld [vmem:[#allocation2 + $0xc4] ss:$16 sps:$4 sm:$0xff]   ;;  %1139 = vmatpush1.bf16.msra.mxu0 %v6366_v53  ;;  %v6372_v57 = vld [vmem:[#allocation2 + $0xc0] ss:$16 sps:$4 sm:$0xff]  }
  0xe7   :  { %1182 = vmatpush1.bf16.msra.mxu1 %v6367_v54  ;;  %v6370_v56 = vld [vmem:[#allocation2 + $0x2c4] ss:$16 sps:$4 sm:$0xff]   ;;  %1140 = vmatprep.subr.bf16.mxu0 %v6368_v55  ;;  %v6373_v58 = vld [vmem:[#allocation2 + $0x2c0] ss:$16 sps:$4 sm:$0xff]  }
  0xe8   :  { %1183 = vmatprep.subr.bf16.mxu1 %v6370_v56  ;;  %v6374_v59 = vld [vmem:[#allocation2 + $0xa4] ss:$16 sps:$4 sm:$0xff]   ;;  %v6378_v61 = vld [vmem:[#allocation2 + $0xa0] ss:$16 sps:$4 sm:$0xff]  }
  0xe9   :  { %v6376_v60 = vld [vmem:[#allocation2 + $0x2a4] ss:$16 sps:$4 sm:$0xff]   ;;  %v6379_v62 = vld [vmem:[#allocation2 + $0x2a0] ss:$16 sps:$4 sm:$0xff]  }
  0xea   :  { %1141 = vmatpush1.bf16.msra.mxu0 %v6372_v57  ;;  %v6380_v63 = vld [vmem:[#allocation2 + $0x84] ss:$16 sps:$4 sm:$0xff]   ;;  %v6384_v1 = vld [vmem:[#allocation2 + $0x80] ss:$16 sps:$4 sm:$0xff]  }
  0xeb   :  { %1184 = vmatpush1.bf16.msra.mxu1 %v6373_v58  ;;  %1142 = vmatprep.subr.bf16.mxu0 %v6374_v59  ;;  %v6382_v0 = vld [vmem:[#allocation2 + $0x284] ss:$16 sps:$4 sm:$0xff]   ;;  %v6385_v2 = vld [vmem:[#allocation2 + $0x280] ss:$16 sps:$4 sm:$0xff]  }
  0xec   :  { %1185 = vmatprep.subr.bf16.mxu1 %v6376_v60  ;;  %v6386_v3 = vld [vmem:[#allocation2 + $0x64] ss:$16 sps:$4 sm:$0xff]   ;;  %v6390_v5 = vld [vmem:[#allocation2 + $0x60] ss:$16 sps:$4 sm:$0xff]  }
  0xed   :  { %v6388_v4 = vld [vmem:[#allocation2 + $0x264] ss:$16 sps:$4 sm:$0xff]   ;;  %v6391_v6 = vld [vmem:[#allocation2 + $0x260] ss:$16 sps:$4 sm:$0xff]  }
  0xee   :  { %1143 = vmatpush1.bf16.msra.mxu0 %v6378_v61  ;;  %v6392_v7 = vld [vmem:[#allocation2 + $0x44] ss:$16 sps:$4 sm:$0xff]   ;;  %v6396_v13 = vld [vmem:[#allocation2 + $0x40] ss:$16 sps:$4 sm:$0xff]   ;;  %v6460_v61 = vld [vmem:[#allocation2 + $0xec] ss:$16 sps:$4 sm:$0xff]  }
  0xef   :  { %1186 = vmatpush1.bf16.msra.mxu1 %v6379_v62  ;;  %1144 = vmatprep.subr.bf16.mxu0 %v6380_v63  ;;  %v6394_v12 = vld [vmem:[#allocation2 + $0x244] ss:$16 sps:$4 sm:$0xff]   ;;  %v6397_v14 = vld [vmem:[#allocation2 + $0x240] ss:$16 sps:$4 sm:$0xff]   ;;  %v6463_v62 = vld [vmem:[#allocation2 + $0x2ec] ss:$16 sps:$4 sm:$0xff]   ;;  %v7836_v63 = vpack.c.bf16 %v7795_v49, %v7791_v45 }
  0xf0   :  { %1187 = vmatprep.subr.bf16.mxu1 %v6382_v0  ;;  %v6398_v15 = vld [vmem:[#allocation2 + $0x24] ss:$16 sps:$4 sm:$0xff]   ;;  %v6402_v17 = vld [vmem:[#allocation2 + $0x20] ss:$16 sps:$4 sm:$0xff]   ;;  %v7840_v0 = vpack.c.bf16 %v7797_v51, %v7793_v47  ;;  %v6472_v45 = vld [vmem:[#allocation2 + $0xac] ss:$16 sps:$4 sm:$0xff]  }
  0xf1   :  { %v6400_v16 = vld [vmem:[#allocation2 + $0x224] ss:$16 sps:$4 sm:$0xff]   ;;  %v6403_v18 = vld [vmem:[#allocation2 + $0x220] ss:$16 sps:$4 sm:$0xff]   ;;  %v6475_v47 = vld [vmem:[#allocation2 + $0x2ac] ss:$16 sps:$4 sm:$0xff]  }
  0xf2   :  { %1145 = vmatpush1.bf16.msra.mxu0 %v6384_v1  ;;  %v6404_v19 = vld [vmem:[#allocation2 + $0x4] ss:$16 sps:$4 sm:$0xff]   ;;  %v6408_v21 = vld [vmem:[#allocation2] ss:$16 sps:$4 sm:$0xff]   ;;  %v6458_v1 = vld [vmem:[#allocation2 + $0xe8] ss:$16 sps:$4 sm:$0xff]  }
  0xf3   :  { %1188 = vmatpush1.bf16.msra.mxu1 %v6385_v2  ;;  %1146 = vmatprep.subr.bf16.mxu0 %v6386_v3  ;;  %v6406_v20 = vld [vmem:[#allocation2 + $0x204] ss:$16 sps:$4 sm:$0xff]   ;;  %v6409_v22 = vld [vmem:[#allocation2 + $0x200] ss:$16 sps:$4 sm:$0xff]   ;;  %v6461_v2 = vld [vmem:[#allocation2 + $0x2e8] ss:$16 sps:$4 sm:$0xff]  }
  0xf4   :  { %1189 = vmatprep.subr.bf16.mxu1 %v6388_v4  ;;  %v6410_v23 = vld [vmem:[#allocation2 + $0x1e4] ss:$16 sps:$4 sm:$0xff]   ;;  %v6414_v25 = vld [vmem:[#allocation2 + $0x1e0] ss:$16 sps:$4 sm:$0xff]   ;;  %v6466_v3 = vld [vmem:[#allocation2 + $0xcc] ss:$16 sps:$4 sm:$0xff]  }
  0xf5   :  { %v6412_v24 = vld [vmem:[#allocation2 + $0x3e4] ss:$16 sps:$4 sm:$0xff]   ;;  %v6415_v26 = vld [vmem:[#allocation2 + $0x3e0] ss:$16 sps:$4 sm:$0xff]   ;;  %v6469_v4 = vld [vmem:[#allocation2 + $0x2cc] ss:$16 sps:$4 sm:$0xff]  }
  0xf6   :  { %1147 = vmatpush1.bf16.msra.mxu0 %v6390_v5  ;;  %v6416_v27 = vld [vmem:[#allocation2 + $0x1c4] ss:$16 sps:$4 sm:$0xff]   ;;  %v6420_v29 = vld [vmem:[#allocation2 + $0x1c0] ss:$16 sps:$4 sm:$0xff]   ;;  %v6464_v5 = vld [vmem:[#allocation2 + $0xc8] ss:$16 sps:$4 sm:$0xff]  }
  0xf7   :  { %1190 = vmatpush1.bf16.msra.mxu1 %v6391_v6  ;;  %1148 = vmatprep.subr.bf16.mxu0 %v6392_v7  ;;  %v6418_v28 = vld [vmem:[#allocation2 + $0x3c4] ss:$16 sps:$4 sm:$0xff]   ;;  %v6421_v30 = vld [vmem:[#allocation2 + $0x3c0] ss:$16 sps:$4 sm:$0xff]   ;;  %v6467_v6 = vld [vmem:[#allocation2 + $0x2c8] ss:$16 sps:$4 sm:$0xff]  }
  0xf8   :  { %1191 = vmatprep.subr.bf16.mxu1 %v6394_v12  ;;  %v6422_v35 = vld [vmem:[#allocation2 + $0x1a4] ss:$16 sps:$4 sm:$0xff]   ;;  %v6426_v37 = vld [vmem:[#allocation2 + $0x1a0] ss:$16 sps:$4 sm:$0xff]   ;;  %v6470_v49 = vld [vmem:[#allocation2 + $0xa8] ss:$16 sps:$4 sm:$0xff]  }
  0xf9   :  { %v6424_v36 = vld [vmem:[#allocation2 + $0x3a4] ss:$16 sps:$4 sm:$0xff]   ;;  %v6427_v38 = vld [vmem:[#allocation2 + $0x3a0] ss:$16 sps:$4 sm:$0xff]   ;;  %v6473_v51 = vld [vmem:[#allocation2 + $0x2a8] ss:$16 sps:$4 sm:$0xff]  }
  0xfa   :  { %1149 = vmatpush1.bf16.msra.mxu0 %v6396_v13  ;;  %v6428_v31 = vld [vmem:[#allocation2 + $0x184] ss:$16 sps:$4 sm:$0xff]   ;;  %v6432_v33 = vld [vmem:[#allocation2 + $0x180] ss:$16 sps:$4 sm:$0xff]   ;;  %v6478_v7 = vld [vmem:[#allocation2 + $0x8c] ss:$16 sps:$4 sm:$0xff]  }
  0xfb   :  { %1192 = vmatpush1.bf16.msra.mxu1 %v6397_v14  ;;  %1150 = vmatprep.subr.bf16.mxu0 %v6398_v15  ;;  %v6430_v32 = vld [vmem:[#allocation2 + $0x384] ss:$16 sps:$4 sm:$0xff]   ;;  %v6433_v34 = vld [vmem:[#allocation2 + $0x380] ss:$16 sps:$4 sm:$0xff]   ;;  %v6481_v12 = vld [vmem:[#allocation2 + $0x28c] ss:$16 sps:$4 sm:$0xff]  }
  0xfc   :  { %1193 = vmatprep.subr.bf16.mxu1 %v6400_v16  ;;  %v6434_v43 = vld [vmem:[#allocation2 + $0x164] ss:$16 sps:$4 sm:$0xff]   ;;  %v6438_v46 = vld [vmem:[#allocation2 + $0x160] ss:$16 sps:$4 sm:$0xff]   ;;  %v6476_v13 = vld [vmem:[#allocation2 + $0x88] ss:$16 sps:$4 sm:$0xff]  }
  0xfd   :  { %v6436_v44 = vld [vmem:[#allocation2 + $0x364] ss:$16 sps:$4 sm:$0xff]   ;;  %v6439_v48 = vld [vmem:[#allocation2 + $0x360] ss:$16 sps:$4 sm:$0xff]   ;;  %v6479_v14 = vld [vmem:[#allocation2 + $0x288] ss:$16 sps:$4 sm:$0xff]  }
  0xfe   :  { %1151 = vmatpush1.bf16.msra.mxu0 %v6402_v17  ;;  %v6440_v50 = vld [vmem:[#allocation2 + $0x144] ss:$16 sps:$4 sm:$0xff]   ;;  %v6444_v41 = vld [vmem:[#allocation2 + $0x140] ss:$16 sps:$4 sm:$0xff]   ;;  %v6484_v15 = vld [vmem:[#allocation2 + $0x6c] ss:$16 sps:$4 sm:$0xff]  }
  0xff   :  { %1194 = vmatpush1.bf16.msra.mxu1 %v6403_v18  ;;  %1152 = vmatprep.subr.bf16.mxu0 %v6404_v19  ;;  %v6442_v52 = vld [vmem:[#allocation2 + $0x344] ss:$16 sps:$4 sm:$0xff]   ;;  %v6445_v42 = vld [vmem:[#allocation2 + $0x340] ss:$16 sps:$4 sm:$0xff]   ;;  %v6487_v16 = vld [vmem:[#allocation2 + $0x26c] ss:$16 sps:$4 sm:$0xff]  }
 0x100   :  { %1195 = vmatprep.subr.bf16.mxu1 %v6406_v20  ;;  %v6446_v53 = vld [vmem:[#allocation2 + $0x124] ss:$16 sps:$4 sm:$0xff]   ;;  %v6450_v55 = vld [vmem:[#allocation2 + $0x120] ss:$16 sps:$4 sm:$0xff]   ;;  %v6482_v17 = vld [vmem:[#allocation2 + $0x68] ss:$16 sps:$4 sm:$0xff]  }
 0x101   :  { %v6448_v54 = vld [vmem:[#allocation2 + $0x324] ss:$16 sps:$4 sm:$0xff]   ;;  %v6451_v56 = vld [vmem:[#allocation2 + $0x320] ss:$16 sps:$4 sm:$0xff]   ;;  %v6493_v18 = vld [vmem:[#allocation2 + $0x24c] ss:$16 sps:$4 sm:$0xff]  }
 0x102   :  { %1153 = vmatpush1.bf16.msra.mxu0 %v6408_v21  ;;  %v6452_v57 = vld [vmem:[#allocation2 + $0x104] ss:$16 sps:$4 sm:$0xff]   ;;  %v6456_v59 = vld [vmem:[#allocation2 + $0x100] ss:$16 sps:$4 sm:$0xff]   ;;  %v6488_v19 = vld [vmem:[#allocation2 + $0x48] ss:$16 sps:$4 sm:$0xff]  }
 0x103   :  { %1196 = vmatpush1.bf16.msra.mxu1 %v6409_v22  ;;  %1154 = vmatprep.subr.bf16.mxu0 %v6410_v23  ;;  %v6454_v58 = vld [vmem:[#allocation2 + $0x304] ss:$16 sps:$4 sm:$0xff]   ;;  %v6457_v60 = vld [vmem:[#allocation2 + $0x300] ss:$16 sps:$4 sm:$0xff]   ;;  %v6491_v20 = vld [vmem:[#allocation2 + $0x248] ss:$16 sps:$4 sm:$0xff]  }
 0x104   :  { %1197 = vmatprep.subr.bf16.mxu1 %v6412_v24  ;;  %v6496_v21 = vld [vmem:[#allocation2 + $0x2c] ss:$16 sps:$4 sm:$0xff]   ;;  %v6494_v23 = vld [vmem:[#allocation2 + $0x28] ss:$16 sps:$4 sm:$0xff]  }
 0x105   :  { %v6499_v22 = vld [vmem:[#allocation2 + $0x22c] ss:$16 sps:$4 sm:$0xff]   ;;  %v6497_v24 = vld [vmem:[#allocation2 + $0x228] ss:$16 sps:$4 sm:$0xff]  }
 0x106   :  { %1155 = vmatpush2.bf16.msra.mxu0 %v6414_v25  ;;  %v6502_v25 = vld [vmem:[#allocation2 + $0xc] ss:$16 sps:$4 sm:$0xff]  }
 0x107   :  { %1198 = vmatpush2.bf16.msra.mxu1 %v6415_v26  ;;  %1156 = vmatprep.subr.bf16.mxu0 %v6416_v27  ;;  %v6505_v26 = vld [vmem:[#allocation2 + $0x20c] ss:$16 sps:$4 sm:$0xff]   ;;  %v6500_v27 = vld [vmem:[#allocation2 + $0x8] ss:$16 sps:$4 sm:$0xff]  }
 0x108   :  { %1199 = vmatprep.subr.bf16.mxu1 %v6418_v28  ;;  %v6503_v28 = vld [vmem:[#allocation2 + $0x208] ss:$16 sps:$4 sm:$0xff]  }
 0x10a   :  { %1157 = vmatpush2.bf16.msra.mxu0 %v6420_v29  ;;  %v6508_v29 = vld [vmem:[#allocation2 + $0x1ec] ss:$16 sps:$4 sm:$0xff]  }
 0x10b   :  { %1200 = vmatpush2.bf16.msra.mxu1 %v6421_v30  ;;  %1158 = vmatprep.subr.bf16.mxu0 %v6422_v35  ;;  %v6511_v30 = vld [vmem:[#allocation2 + $0x3ec] ss:$16 sps:$4 sm:$0xff]   ;;  %v6506_v35 = vld [vmem:[#allocation2 + $0x1e8] ss:$16 sps:$4 sm:$0xff]  }
 0x10c   :  { %1201 = vmatprep.subr.bf16.mxu1 %v6424_v36  ;;  %v6509_v36 = vld [vmem:[#allocation2 + $0x3e8] ss:$16 sps:$4 sm:$0xff]  }
 0x10e   :  { %1159 = vmatpush2.bf16.msra.mxu0 %v6426_v37  ;;  %v6514_v37 = vld [vmem:[#allocation2 + $0x1cc] ss:$16 sps:$4 sm:$0xff]  }
 0x10f   :  { %1202 = vmatpush2.bf16.msra.mxu1 %v6427_v38  ;;  %1160 = vmatprep.subr.bf16.mxu0 %v6428_v31  ;;  %v6517_v38 = vld [vmem:[#allocation2 + $0x3cc] ss:$16 sps:$4 sm:$0xff]   ;;  %v6512_v31 = vld [vmem:[#allocation2 + $0x1c8] ss:$16 sps:$4 sm:$0xff]  }
 0x110   :  { %1203 = vmatprep.subr.bf16.mxu1 %v6430_v32  ;;  %v6515_v32 = vld [vmem:[#allocation2 + $0x3c8] ss:$16 sps:$4 sm:$0xff]  }
 0x112   :  { %1161 = vmatpush2.bf16.msra.mxu0 %v6432_v33  ;;  %v6520_v33 = vld [vmem:[#allocation2 + $0x1ac] ss:$16 sps:$4 sm:$0xff]  }
 0x113   :  { %1204 = vmatpush2.bf16.msra.mxu1 %v6433_v34  ;;  %1162 = vmatprep.subr.bf16.mxu0 %v6434_v43  ;;  %v6523_v34 = vld [vmem:[#allocation2 + $0x3ac] ss:$16 sps:$4 sm:$0xff]   ;;  %v6518_v43 = vld [vmem:[#allocation2 + $0x1a8] ss:$16 sps:$4 sm:$0xff]  }
 0x114   :  { %1205 = vmatprep.subr.bf16.mxu1 %v6436_v44  ;;  %v6521_v44 = vld [vmem:[#allocation2 + $0x3a8] ss:$16 sps:$4 sm:$0xff]  }
 0x116   :  { %1163 = vmatpush2.bf16.msra.mxu0 %v6438_v46  ;;  %v6526_v46 = vld [vmem:[#allocation2 + $0x18c] ss:$16 sps:$4 sm:$0xff]  }
 0x117   :  { %1206 = vmatpush2.bf16.msra.mxu1 %v6439_v48  ;;  %1164 = vmatprep.subr.bf16.mxu0 %v6440_v50  ;;  %v6529_v48 = vld [vmem:[#allocation2 + $0x38c] ss:$16 sps:$4 sm:$0xff]   ;;  %v6524_v50 = vld [vmem:[#allocation2 + $0x188] ss:$16 sps:$4 sm:$0xff]  }
 0x118   :  { %1207 = vmatprep.subr.bf16.mxu1 %v6442_v52  ;;  %v6527_v52 = vld [vmem:[#allocation2 + $0x388] ss:$16 sps:$4 sm:$0xff]  }
 0x11a   :  { %1165 = vmatpush2.bf16.msra.mxu0 %v6444_v41  ;;  %v6532_v41 = vld [vmem:[#allocation2 + $0x16c] ss:$16 sps:$4 sm:$0xff]  }
 0x11b   :  { %1208 = vmatpush2.bf16.msra.mxu1 %v6445_v42  ;;  %1166 = vmatprep.subr.bf16.mxu0 %v6446_v53  ;;  %v6535_v42 = vld [vmem:[#allocation2 + $0x36c] ss:$16 sps:$4 sm:$0xff]   ;;  %v6530_v53 = vld [vmem:[#allocation2 + $0x168] ss:$16 sps:$4 sm:$0xff]  }
 0x11c   :  { %1209 = vmatprep.subr.bf16.mxu1 %v6448_v54  ;;  %v6533_v54 = vld [vmem:[#allocation2 + $0x368] ss:$16 sps:$4 sm:$0xff]  }
 0x11e   :  { %1167 = vmatpush2.bf16.msra.mxu0 %v6450_v55  ;;  %v6538_v55 = vld [vmem:[#allocation2 + $0x14c] ss:$16 sps:$4 sm:$0xff]  }
 0x11f   :  { %1210 = vmatpush2.bf16.msra.mxu1 %v6451_v56  ;;  %1168 = vmatprep.subr.bf16.mxu0 %v6452_v57  ;;  %v6541_v56 = vld [vmem:[#allocation2 + $0x34c] ss:$16 sps:$4 sm:$0xff]   ;;  %v6536_v57 = vld [vmem:[#allocation2 + $0x148] ss:$16 sps:$4 sm:$0xff]  }
 0x120   :  { %1211 = vmatprep.subr.bf16.mxu1 %v6454_v58  ;;  %v6539_v58 = vld [vmem:[#allocation2 + $0x348] ss:$16 sps:$4 sm:$0xff]  }
 0x122   :  { %1169 = vmatpush2.bf16.msra.mxu0 %v6456_v59  ;;  %v6544_v59 = vld [vmem:[#allocation2 + $0x12c] ss:$16 sps:$4 sm:$0xff]  }
 0x123   :  { %1212 = vmatpush2.bf16.msra.mxu1 %v6457_v60  ;;  %1224 = vmatprep.subr.bf16.mxu0 %v6460_v61  ;;  %v6547_v60 = vld [vmem:[#allocation2 + $0x32c] ss:$16 sps:$4 sm:$0xff]   ;;  %v6542_v61 = vld [vmem:[#allocation2 + $0x128] ss:$16 sps:$4 sm:$0xff]  }
 0x124   :  { %1267 = vmatprep.subr.bf16.mxu1 %v6463_v62  ;;  %v6545_v62 = vld [vmem:[#allocation2 + $0x328] ss:$16 sps:$4 sm:$0xff]  }
 0x125   :  { %1171 = vmatmul.mubr.bf16.vlgmr.msra.gmra.mxu0 %v7836_v63 }
 0x126   :  { %1214 = vmatmul.mubr.bf16.vlgmr.msra.gmra.mxu1 %v7840_v0  ;;  %1225 = vmatpush1.bf16.msra.mxu0 %v6458_v1  ;;  %v6550_v1 = vld [vmem:[#allocation2 + $0x10c] ss:$16 sps:$4 sm:$0xff]  }
 0x127   :  { %1268 = vmatpush1.bf16.msra.mxu1 %v6461_v2  ;;  %1226 = vmatprep.subr.bf16.mxu0 %v6466_v3  ;;  %v6553_v2 = vld [vmem:[#allocation2 + $0x30c] ss:$16 sps:$4 sm:$0xff]   ;;  %v6548_v3 = vld [vmem:[#allocation2 + $0x108] ss:$16 sps:$4 sm:$0xff]  }
 0x128   :  { %1269 = vmatprep.subr.bf16.mxu1 %v6469_v4  ;;  %1256 = vmatprep.mubr.bf16.mxu0 %v7802_v39  ;;  %v6485_v39 = vld [vmem:[#allocation2 + $0x268] ss:$16 sps:$4 sm:$0xff]  }
 0x129   :  { %1299 = vmatprep.mubr.bf16.mxu1 %v7804_v40  ;;  %v6490_v40 = vld [vmem:[#allocation2 + $0x4c] ss:$16 sps:$4 sm:$0xff]   ;;  %v6551_v4 = vld [vmem:[#allocation2 + $0x308] ss:$16 sps:$4 sm:$0xff]  }
 0x12a   :  { %1227 = vmatpush1.bf16.msra.mxu0 %v6464_v5  ;;  %v476_v5 = vld [vmem:[#allocation8] sm:$0xf] }
 0x12b   :  { %1270 = vmatpush1.bf16.msra.mxu1 %v6467_v6  ;;  %1228 = vmatprep.subr.bf16.mxu0 %v6472_v45  ;;  %v481_v6 = vrot.slane %v476_v5, %v7763_v8  ;;  %v485_v45 = vrot.slane %v476_v5, %v7765_v9 }
 0x12c   :  { %1271 = vmatprep.subr.bf16.mxu1 %v6475_v47 }
 0x12e   :  { %1229 = vmatpush1.bf16.msra.mxu0 %v6470_v49 }
 0x12f   :  { %1272 = vmatpush1.bf16.msra.mxu1 %v6473_v51  ;;  %1230 = vmatprep.subr.bf16.mxu0 %v6478_v7 }
 0x130   :  { %1273 = vmatprep.subr.bf16.mxu1 %v6481_v12 }
 0x132   :  { %1231 = vmatpush1.bf16.msra.mxu0 %v6476_v13 }
 0x133   :  { %1274 = vmatpush1.bf16.msra.mxu1 %v6479_v14  ;;  %1232 = vmatprep.subr.bf16.mxu0 %v6484_v15 }
 0x134   :  { %1275 = vmatprep.subr.bf16.mxu1 %v6487_v16 }
 0x136   :  { %1233 = vmatpush1.bf16.msra.mxu0 %v6482_v17 }
 0x137   :  { %1276 = vmatpush1.bf16.msra.mxu1 %v6485_v39  ;;  %1234 = vmatprep.subr.bf16.mxu0 %v6490_v40 }
 0x138   :  { %1277 = vmatprep.subr.bf16.mxu1 %v6493_v18 }
 0x13a   :  { %1235 = vmatpush1.bf16.msra.mxu0 %v6488_v19 }
 0x13b   :  { %1278 = vmatpush1.bf16.msra.mxu1 %v6491_v20  ;;  %1236 = vmatprep.subr.bf16.mxu0 %v6496_v21 }
 0x13c   :  { %1279 = vmatprep.subr.bf16.mxu1 %v6499_v22 }
 0x13e   :  { %1237 = vmatpush1.bf16.msra.mxu0 %v6494_v23 }
 0x13f   :  { %1280 = vmatpush1.bf16.msra.mxu1 %v6497_v24  ;;  %1238 = vmatprep.subr.bf16.mxu0 %v6502_v25  ;;  %v489_v24 = vrot.slane %v476_v5, %v7767_v10  ;;  %v493_v25 = vrot.slane %v476_v5, %v7769_v11 }
 0x140   :  { %1281 = vmatprep.subr.bf16.mxu1 %v6505_v26 }
 0x142   :  { %1239 = vmatpush1.bf16.msra.mxu0 %v6500_v27 }
 0x143   :  { %1282 = vmatpush1.bf16.msra.mxu1 %v6503_v28  ;;  %1240 = vmatprep.subr.bf16.mxu0 %v6508_v29 }
 0x144   :  { %1283 = vmatprep.subr.bf16.mxu1 %v6511_v30 }
 0x146   :  { %1241 = vmatpush2.bf16.msra.mxu0 %v6506_v35 }
 0x147   :  { %1284 = vmatpush2.bf16.msra.mxu1 %v6509_v36  ;;  %1242 = vmatprep.subr.bf16.mxu0 %v6514_v37 }
 0x148   :  { %1285 = vmatprep.subr.bf16.mxu1 %v6517_v38 }
 0x14a   :  { %1243 = vmatpush2.bf16.msra.mxu0 %v6512_v31 }
 0x14b   :  { %1286 = vmatpush2.bf16.msra.mxu1 %v6515_v32  ;;  %1244 = vmatprep.subr.bf16.mxu0 %v6520_v33 }
 0x14c   :  { %1287 = vmatprep.subr.bf16.mxu1 %v6523_v34 }
 0x14e   :  { %1245 = vmatpush2.bf16.msra.mxu0 %v6518_v43 }
 0x14f   :  { %1288 = vmatpush2.bf16.msra.mxu1 %v6521_v44  ;;  %1246 = vmatprep.subr.bf16.mxu0 %v6526_v46 }
 0x150   :  { %1289 = vmatprep.subr.bf16.mxu1 %v6529_v48 }
 0x152   :  { %1247 = vmatpush2.bf16.msra.mxu0 %v6524_v50 }
 0x153   :  { %1290 = vmatpush2.bf16.msra.mxu1 %v6527_v52  ;;  %1248 = vmatprep.subr.bf16.mxu0 %v6532_v41 }
 0x154   :  { %1291 = vmatprep.subr.bf16.mxu1 %v6535_v42 }
 0x156   :  { %1249 = vmatpush2.bf16.msra.mxu0 %v6530_v53 }
 0x157   :  { %1292 = vmatpush2.bf16.msra.mxu1 %v6533_v54  ;;  %1250 = vmatprep.subr.bf16.mxu0 %v6538_v55 }
 0x158   :  { %1293 = vmatprep.subr.bf16.mxu1 %v6541_v56 }
 0x15a   :  { %1251 = vmatpush2.bf16.msra.mxu0 %v6536_v57 }
 0x15b   :  { %1294 = vmatpush2.bf16.msra.mxu1 %v6539_v58  ;;  %1252 = vmatprep.subr.bf16.mxu0 %v6544_v59 }
 0x15c   :  { %1295 = vmatprep.subr.bf16.mxu1 %v6547_v60 }
 0x15e   :  { %1253 = vmatpush2.bf16.msra.mxu0 %v6542_v61 }
 0x15f   :  { %1296 = vmatpush2.bf16.msra.mxu1 %v6545_v62  ;;  %1254 = vmatprep.subr.bf16.mxu0 %v6550_v1 }
 0x160   :  { %1297 = vmatprep.subr.bf16.mxu1 %v6553_v2 }
 0x162   :  { %1255 = vmatpush2.bf16.msra.mxu0 %v6548_v3 }
 0x163   :  { %1298 = vmatpush2.bf16.msra.mxu1 %v6551_v4 }
 0x165   :  { %1257 = vmatmul.mubr.bf16.vlgmr.msra.gmra.mxu0 %v7836_v63 }
 0x166   :  { %1300 = vmatmul.mubr.bf16.vlgmr.msra.gmra.mxu1 %v7840_v0 }
 0x1e5   :  { %v1172_v47 = vpop.f32.mrf.mxu0 }
 0x1e6   :  { %v1215_v49 = vpop.f32.mrf.mxu1  ;;  %v1173_v51 = vadd.f32 %v1172_v47, %v481_v6 }
 0x1e7   :  { %v1174_v7 = vpop.f32.mrf.mxu0 }
 0x1e8   :  { %v1217_v12 = vpop.f32.mrf.mxu1  ;;  %v1216_v13 = vadd.f32 %v1215_v49, %v1173_v51  ;;  %v1175_v14 = vadd.f32 %v1174_v7, %v485_v45 }
 0x1e9   :  { %v1176_v15 = vpop.f32.mrf.mxu0 }
 0x1ea   :  { %v1219_v16 = vpop.f32.mrf.mxu1  ;;  %6554 = vtanh.f32 %v1216_v13  ;;  %v1218_v17 = vadd.f32 %v1217_v12, %v1175_v14  ;;  %v1177_v39 = vadd.f32 %v1176_v15, %v481_v6 }
 0x1eb   :  { %v1178_v63 = vpop.f32.mrf.mxu0 }
 0x1ec   :  { %6556 = vtanh.f32 %v1218_v17  ;;  %v1220_v0 = vadd.f32 %v1219_v16, %v1177_v39  ;;  %v1179_v40 = vadd.f32 %v1178_v63, %v485_v45  ;;  %v1221_v18 = vpop.f32.mrf.mxu1 }
 0x1ee   :  { %6558 = vtanh.f32 %v1220_v0  ;;  %v1222_v19 = vadd.f32 %v1221_v18, %v1179_v40 }
 0x1f0   :  { %6560 = vtanh.f32 %v1222_v19 }
 0x1f7   :  { %v7850_v20 = vpop.eup %6554 }
 0x1f9   :  { %v6557_v21 = vpop.eup %6556 }
 0x1fb   :  { %v7852_v22 = vpop.eup %6558 }
 0x1fd   :  { %v6561_v23 = vpop.eup %6560 }
 0x225   :  { %v1258_v26 = vpop.f32.mrf.mxu0 }
 0x226   :  { %v1301_v27 = vpop.f32.mrf.mxu1  ;;  %v1259_v28 = vadd.f32 %v1258_v26, %v489_v24 }
 0x227   :  { %v1260_v29 = vpop.f32.mrf.mxu0 }
 0x228   :  { %v1303_v30 = vpop.f32.mrf.mxu1  ;;  %v1302_v35 = vadd.f32 %v1301_v27, %v1259_v28  ;;  %v1261_v36 = vadd.f32 %v1260_v29, %v493_v25 }
 0x229   :  { %v1262_v37 = vpop.f32.mrf.mxu0 }
 0x22a   :  { %v1305_v38 = vpop.f32.mrf.mxu1  ;;  %6562 = vtanh.f32 %v1302_v35  ;;  %v1304_v31 = vadd.f32 %v1303_v30, %v1261_v36  ;;  %v1263_v32 = vadd.f32 %v1262_v37, %v489_v24 }
 0x22b   :  { %v1264_v33 = vpop.f32.mrf.mxu0 }
 0x22c   :  { %6564 = vtanh.f32 %v1304_v31  ;;  %v1306_v34 = vadd.f32 %v1305_v38, %v1263_v32  ;;  %v1265_v43 = vadd.f32 %v1264_v33, %v493_v25  ;;  %v1307_v44 = vpop.f32.mrf.mxu1 }
 0x22e   :  { %6566 = vtanh.f32 %v1306_v34  ;;  %v1308_v46 = vadd.f32 %v1307_v44, %v1265_v43 }
 0x230   :  { %6568 = vtanh.f32 %v1308_v46 }
 0x237   :  { %v7856_v48 = vpop.eup %6562 }
 0x239   :  { %v6565_v50 = vpop.eup %6564 }
 0x23b   :  { %v7858_v52 = vpop.eup %6566 }
 0x23d   :  { %v6569_v41 = vpop.eup %6568 }
 0x23e   :  { %7648 = dma.done.wait [#allocation3 + $0x1], 16384 }
 0x23f   :  { %7649 = vsyncadd [#allocation3 + $0x1], 4294950912  ;;  %s1320_s1 = scalar_lea.hbm %s8258_s3, 32768  ;;  %v7863_v42 = vpack.c.bf16 %v6561_v23, %v6557_v21  ;;  %v7865_v53 = vpack.c.bf16 %v6569_v41, %v6565_v50 }
 0x240   :  { %7590 = shalt.err (!%p7753_p6)  }
 0x241   :  { %1331 = dma.hbm_to_vmem [thread:$0]  %s1320_s1, 16384, %s7744_s20, [#allocation3]  ;;  %2159 = vmatprep.mubr.bf16.mxu0 %v7863_v42  ;;  %2202 = vmatprep.mubr.bf16.mxu1 %v7865_v53 }
 0x242   :  { %v6570_v54 = vld [vmem:[#allocation2 + $0x4e4] ss:$16 sps:$4 sm:$0xff]   ;;  %v6574_v56 = vld [vmem:[#allocation2 + $0x4e0] ss:$16 sps:$4 sm:$0xff]  }
 0x243   :  { %v6572_v55 = vld [vmem:[#allocation2 + $0x6e4] ss:$16 sps:$4 sm:$0xff]   ;;  %2127 = vmatprep.subr.bf16.mxu0 %v6570_v54  ;;  %v6575_v57 = vld [vmem:[#allocation2 + $0x6e0] ss:$16 sps:$4 sm:$0xff]  }
 0x244   :  { %2170 = vmatprep.subr.bf16.mxu1 %v6572_v55  ;;  %v6576_v58 = vld [vmem:[#allocation2 + $0x4c4] ss:$16 sps:$4 sm:$0xff]   ;;  %2128 = vmatpush1.bf16.msra.mxu0 %v6574_v56  ;;  %v6580_v60 = vld [vmem:[#allocation2 + $0x4c0] ss:$16 sps:$4 sm:$0xff]  }
 0x245   :  { %2171 = vmatpush1.bf16.msra.mxu1 %v6575_v57  ;;  %v6578_v59 = vld [vmem:[#allocation2 + $0x6c4] ss:$16 sps:$4 sm:$0xff]   ;;  %2129 = vmatprep.subr.bf16.mxu0 %v6576_v58  ;;  %v6581_v61 = vld [vmem:[#allocation2 + $0x6c0] ss:$16 sps:$4 sm:$0xff]  }
 0x246   :  { %2172 = vmatprep.subr.bf16.mxu1 %v6578_v59  ;;  %v6582_v62 = vld [vmem:[#allocation2 + $0x4a4] ss:$16 sps:$4 sm:$0xff]   ;;  %v6586_v2 = vld [vmem:[#allocation2 + $0x4a0] ss:$16 sps:$4 sm:$0xff]  }
 0x247   :  { %v6584_v1 = vld [vmem:[#allocation2 + $0x6a4] ss:$16 sps:$4 sm:$0xff]   ;;  %v6587_v3 = vld [vmem:[#allocation2 + $0x6a0] ss:$16 sps:$4 sm:$0xff]  }
 0x248   :  { %2130 = vmatpush1.bf16.msra.mxu0 %v6580_v60  ;;  %v6588_v4 = vld [vmem:[#allocation2 + $0x484] ss:$16 sps:$4 sm:$0xff]   ;;  %v6592_v6 = vld [vmem:[#allocation2 + $0x480] ss:$16 sps:$4 sm:$0xff]  }
 0x249   :  { %2173 = vmatpush1.bf16.msra.mxu1 %v6581_v61  ;;  %2131 = vmatprep.subr.bf16.mxu0 %v6582_v62  ;;  %v6590_v5 = vld [vmem:[#allocation2 + $0x684] ss:$16 sps:$4 sm:$0xff]   ;;  %v6593_v45 = vld [vmem:[#allocation2 + $0x680] ss:$16 sps:$4 sm:$0xff]  }
 0x24a   :  { %2174 = vmatprep.subr.bf16.mxu1 %v6584_v1  ;;  %v6594_v47 = vld [vmem:[#allocation2 + $0x464] ss:$16 sps:$4 sm:$0xff]   ;;  %v6598_v51 = vld [vmem:[#allocation2 + $0x460] ss:$16 sps:$4 sm:$0xff]  }
 0x24b   :  { %v6596_v49 = vld [vmem:[#allocation2 + $0x664] ss:$16 sps:$4 sm:$0xff]   ;;  %v6599_v7 = vld [vmem:[#allocation2 + $0x660] ss:$16 sps:$4 sm:$0xff]  }
 0x24c   :  { %2132 = vmatpush1.bf16.msra.mxu0 %v6586_v2  ;;  %v6600_v12 = vld [vmem:[#allocation2 + $0x444] ss:$16 sps:$4 sm:$0xff]   ;;  %v6604_v14 = vld [vmem:[#allocation2 + $0x440] ss:$16 sps:$4 sm:$0xff]   ;;  %v6668_v2 = vld [vmem:[#allocation2 + $0x4ec] ss:$16 sps:$4 sm:$0xff]  }
 0x24d   :  { %2175 = vmatpush1.bf16.msra.mxu1 %v6587_v3  ;;  %2133 = vmatprep.subr.bf16.mxu0 %v6588_v4  ;;  %v6602_v13 = vld [vmem:[#allocation2 + $0x644] ss:$16 sps:$4 sm:$0xff]   ;;  %v6605_v15 = vld [vmem:[#allocation2 + $0x640] ss:$16 sps:$4 sm:$0xff]   ;;  %v6671_v3 = vld [vmem:[#allocation2 + $0x6ec] ss:$16 sps:$4 sm:$0xff]   ;;  %v7874_v4 = vpack.c.bf16 %v7852_v22, %v7850_v20 }
 0x24e   :  { %2176 = vmatprep.subr.bf16.mxu1 %v6590_v5  ;;  %v6606_v16 = vld [vmem:[#allocation2 + $0x424] ss:$16 sps:$4 sm:$0xff]   ;;  %v6610_v39 = vld [vmem:[#allocation2 + $0x420] ss:$16 sps:$4 sm:$0xff]   ;;  %v7878_v5 = vpack.c.bf16 %v7858_v52, %v7856_v48  ;;  %v6680_v20 = vld [vmem:[#allocation2 + $0x4ac] ss:$16 sps:$4 sm:$0xff]  }
 0x24f   :  { %v6608_v17 = vld [vmem:[#allocation2 + $0x624] ss:$16 sps:$4 sm:$0xff]   ;;  %v6611_v63 = vld [vmem:[#allocation2 + $0x620] ss:$16 sps:$4 sm:$0xff]   ;;  %v6683_v22 = vld [vmem:[#allocation2 + $0x6ac] ss:$16 sps:$4 sm:$0xff]  }
 0x250   :  { %2134 = vmatpush1.bf16.msra.mxu0 %v6592_v6  ;;  %v6612_v0 = vld [vmem:[#allocation2 + $0x404] ss:$16 sps:$4 sm:$0xff]   ;;  %v6616_v18 = vld [vmem:[#allocation2 + $0x400] ss:$16 sps:$4 sm:$0xff]   ;;  %v6666_v6 = vld [vmem:[#allocation2 + $0x4e8] ss:$16 sps:$4 sm:$0xff]  }
 0x251   :  { %2177 = vmatpush1.bf16.msra.mxu1 %v6593_v45  ;;  %2135 = vmatprep.subr.bf16.mxu0 %v6594_v47  ;;  %v6614_v40 = vld [vmem:[#allocation2 + $0x604] ss:$16 sps:$4 sm:$0xff]   ;;  %v6617_v19 = vld [vmem:[#allocation2 + $0x600] ss:$16 sps:$4 sm:$0xff]   ;;  %v6669_v45 = vld [vmem:[#allocation2 + $0x6e8] ss:$16 sps:$4 sm:$0xff]  }
 0x252   :  { %2178 = vmatprep.subr.bf16.mxu1 %v6596_v49  ;;  %v6618_v21 = vld [vmem:[#allocation2 + $0x5e4] ss:$16 sps:$4 sm:$0xff]   ;;  %v6622_v24 = vld [vmem:[#allocation2 + $0x5e0] ss:$16 sps:$4 sm:$0xff]   ;;  %v6674_v47 = vld [vmem:[#allocation2 + $0x4cc] ss:$16 sps:$4 sm:$0xff]  }
 0x253   :  { %v6620_v23 = vld [vmem:[#allocation2 + $0x7e4] ss:$16 sps:$4 sm:$0xff]   ;;  %v6623_v25 = vld [vmem:[#allocation2 + $0x7e0] ss:$16 sps:$4 sm:$0xff]   ;;  %v6677_v49 = vld [vmem:[#allocation2 + $0x6cc] ss:$16 sps:$4 sm:$0xff]  }
 0x254   :  { %2136 = vmatpush1.bf16.msra.mxu0 %v6598_v51  ;;  %v6624_v26 = vld [vmem:[#allocation2 + $0x5c4] ss:$16 sps:$4 sm:$0xff]   ;;  %v6628_v28 = vld [vmem:[#allocation2 + $0x5c0] ss:$16 sps:$4 sm:$0xff]   ;;  %v6672_v51 = vld [vmem:[#allocation2 + $0x4c8] ss:$16 sps:$4 sm:$0xff]  }
 0x255   :  { %2179 = vmatpush1.bf16.msra.mxu1 %v6599_v7  ;;  %2137 = vmatprep.subr.bf16.mxu0 %v6600_v12  ;;  %v6626_v27 = vld [vmem:[#allocation2 + $0x7c4] ss:$16 sps:$4 sm:$0xff]   ;;  %v6629_v29 = vld [vmem:[#allocation2 + $0x7c0] ss:$16 sps:$4 sm:$0xff]   ;;  %v6675_v7 = vld [vmem:[#allocation2 + $0x6c8] ss:$16 sps:$4 sm:$0xff]  }
 0x256   :  { %2180 = vmatprep.subr.bf16.mxu1 %v6602_v13  ;;  %v6630_v30 = vld [vmem:[#allocation2 + $0x5a4] ss:$16 sps:$4 sm:$0xff]   ;;  %v6634_v36 = vld [vmem:[#allocation2 + $0x5a0] ss:$16 sps:$4 sm:$0xff]   ;;  %v6678_v48 = vld [vmem:[#allocation2 + $0x4a8] ss:$16 sps:$4 sm:$0xff]  }
 0x257   :  { %v6632_v35 = vld [vmem:[#allocation2 + $0x7a4] ss:$16 sps:$4 sm:$0xff]   ;;  %v6635_v37 = vld [vmem:[#allocation2 + $0x7a0] ss:$16 sps:$4 sm:$0xff]   ;;  %v6681_v52 = vld [vmem:[#allocation2 + $0x6a8] ss:$16 sps:$4 sm:$0xff]  }
 0x258   :  { %2138 = vmatpush1.bf16.msra.mxu0 %v6604_v14  ;;  %v6636_v38 = vld [vmem:[#allocation2 + $0x584] ss:$16 sps:$4 sm:$0xff]   ;;  %v6640_v32 = vld [vmem:[#allocation2 + $0x580] ss:$16 sps:$4 sm:$0xff]   ;;  %v6686_v12 = vld [vmem:[#allocation2 + $0x48c] ss:$16 sps:$4 sm:$0xff]  }
 0x259   :  { %2181 = vmatpush1.bf16.msra.mxu1 %v6605_v15  ;;  %2139 = vmatprep.subr.bf16.mxu0 %v6606_v16  ;;  %v6638_v31 = vld [vmem:[#allocation2 + $0x784] ss:$16 sps:$4 sm:$0xff]   ;;  %v6641_v33 = vld [vmem:[#allocation2 + $0x780] ss:$16 sps:$4 sm:$0xff]   ;;  %v6689_v13 = vld [vmem:[#allocation2 + $0x68c] ss:$16 sps:$4 sm:$0xff]  }
 0x25a   :  { %2182 = vmatprep.subr.bf16.mxu1 %v6608_v17  ;;  %v6642_v34 = vld [vmem:[#allocation2 + $0x564] ss:$16 sps:$4 sm:$0xff]   ;;  %v6646_v44 = vld [vmem:[#allocation2 + $0x560] ss:$16 sps:$4 sm:$0xff]   ;;  %v6684_v14 = vld [vmem:[#allocation2 + $0x488] ss:$16 sps:$4 sm:$0xff]  }
 0x25b   :  { %v6644_v43 = vld [vmem:[#allocation2 + $0x764] ss:$16 sps:$4 sm:$0xff]   ;;  %v6647_v46 = vld [vmem:[#allocation2 + $0x760] ss:$16 sps:$4 sm:$0xff]   ;;  %v6687_v15 = vld [vmem:[#allocation2 + $0x688] ss:$16 sps:$4 sm:$0xff]  }
 0x25c   :  { %2140 = vmatpush1.bf16.msra.mxu0 %v6610_v39  ;;  %v6648_v50 = vld [vmem:[#allocation2 + $0x544] ss:$16 sps:$4 sm:$0xff]   ;;  %v6652_v54 = vld [vmem:[#allocation2 + $0x540] ss:$16 sps:$4 sm:$0xff]   ;;  %v6692_v16 = vld [vmem:[#allocation2 + $0x46c] ss:$16 sps:$4 sm:$0xff]  }
 0x25d   :  { %2183 = vmatpush1.bf16.msra.mxu1 %v6611_v63  ;;  %2141 = vmatprep.subr.bf16.mxu0 %v6612_v0  ;;  %v6650_v41 = vld [vmem:[#allocation2 + $0x744] ss:$16 sps:$4 sm:$0xff]   ;;  %v6653_v55 = vld [vmem:[#allocation2 + $0x740] ss:$16 sps:$4 sm:$0xff]   ;;  %v6695_v17 = vld [vmem:[#allocation2 + $0x66c] ss:$16 sps:$4 sm:$0xff]  }
 0x25e   :  { %2184 = vmatprep.subr.bf16.mxu1 %v6614_v40  ;;  %v6654_v56 = vld [vmem:[#allocation2 + $0x524] ss:$16 sps:$4 sm:$0xff]   ;;  %v6658_v58 = vld [vmem:[#allocation2 + $0x520] ss:$16 sps:$4 sm:$0xff]   ;;  %v6690_v39 = vld [vmem:[#allocation2 + $0x468] ss:$16 sps:$4 sm:$0xff]  }
 0x25f   :  { %v6656_v57 = vld [vmem:[#allocation2 + $0x724] ss:$16 sps:$4 sm:$0xff]   ;;  %v6659_v59 = vld [vmem:[#allocation2 + $0x720] ss:$16 sps:$4 sm:$0xff]   ;;  %v6701_v63 = vld [vmem:[#allocation2 + $0x64c] ss:$16 sps:$4 sm:$0xff]  }
 0x260   :  { %2142 = vmatpush1.bf16.msra.mxu0 %v6616_v18  ;;  %v6660_v60 = vld [vmem:[#allocation2 + $0x504] ss:$16 sps:$4 sm:$0xff]   ;;  %v6664_v62 = vld [vmem:[#allocation2 + $0x500] ss:$16 sps:$4 sm:$0xff]   ;;  %v6696_v0 = vld [vmem:[#allocation2 + $0x448] ss:$16 sps:$4 sm:$0xff]  }
 0x261   :  { %2185 = vmatpush1.bf16.msra.mxu1 %v6617_v19  ;;  %2143 = vmatprep.subr.bf16.mxu0 %v6618_v21  ;;  %v6662_v61 = vld [vmem:[#allocation2 + $0x704] ss:$16 sps:$4 sm:$0xff]   ;;  %v6665_v1 = vld [vmem:[#allocation2 + $0x700] ss:$16 sps:$4 sm:$0xff]   ;;  %v6699_v40 = vld [vmem:[#allocation2 + $0x648] ss:$16 sps:$4 sm:$0xff]  }
 0x262   :  { %2186 = vmatprep.subr.bf16.mxu1 %v6620_v23  ;;  %v6704_v18 = vld [vmem:[#allocation2 + $0x42c] ss:$16 sps:$4 sm:$0xff]   ;;  %v6702_v21 = vld [vmem:[#allocation2 + $0x428] ss:$16 sps:$4 sm:$0xff]  }
 0x263   :  { %v6707_v19 = vld [vmem:[#allocation2 + $0x62c] ss:$16 sps:$4 sm:$0xff]   ;;  %v6705_v23 = vld [vmem:[#allocation2 + $0x628] ss:$16 sps:$4 sm:$0xff]  }
 0x264   :  { %2144 = vmatpush2.bf16.msra.mxu0 %v6622_v24  ;;  %v6710_v24 = vld [vmem:[#allocation2 + $0x40c] ss:$16 sps:$4 sm:$0xff]  }
 0x265   :  { %2187 = vmatpush2.bf16.msra.mxu1 %v6623_v25  ;;  %2145 = vmatprep.subr.bf16.mxu0 %v6624_v26  ;;  %v6713_v25 = vld [vmem:[#allocation2 + $0x60c] ss:$16 sps:$4 sm:$0xff]   ;;  %v6708_v26 = vld [vmem:[#allocation2 + $0x408] ss:$16 sps:$4 sm:$0xff]  }
 0x266   :  { %2188 = vmatprep.subr.bf16.mxu1 %v6626_v27  ;;  %v6711_v27 = vld [vmem:[#allocation2 + $0x608] ss:$16 sps:$4 sm:$0xff]  }
 0x268   :  { %2146 = vmatpush2.bf16.msra.mxu0 %v6628_v28  ;;  %v6716_v28 = vld [vmem:[#allocation2 + $0x5ec] ss:$16 sps:$4 sm:$0xff]  }
 0x269   :  { %2189 = vmatpush2.bf16.msra.mxu1 %v6629_v29  ;;  %2147 = vmatprep.subr.bf16.mxu0 %v6630_v30  ;;  %v6719_v29 = vld [vmem:[#allocation2 + $0x7ec] ss:$16 sps:$4 sm:$0xff]   ;;  %v6714_v30 = vld [vmem:[#allocation2 + $0x5e8] ss:$16 sps:$4 sm:$0xff]  }
 0x26a   :  { %2190 = vmatprep.subr.bf16.mxu1 %v6632_v35  ;;  %v6717_v35 = vld [vmem:[#allocation2 + $0x7e8] ss:$16 sps:$4 sm:$0xff]  }
 0x26c   :  { %2148 = vmatpush2.bf16.msra.mxu0 %v6634_v36  ;;  %v6722_v36 = vld [vmem:[#allocation2 + $0x5cc] ss:$16 sps:$4 sm:$0xff]  }
 0x26d   :  { %2191 = vmatpush2.bf16.msra.mxu1 %v6635_v37  ;;  %2149 = vmatprep.subr.bf16.mxu0 %v6636_v38  ;;  %v6725_v37 = vld [vmem:[#allocation2 + $0x7cc] ss:$16 sps:$4 sm:$0xff]   ;;  %v6720_v38 = vld [vmem:[#allocation2 + $0x5c8] ss:$16 sps:$4 sm:$0xff]  }
 0x26e   :  { %2192 = vmatprep.subr.bf16.mxu1 %v6638_v31  ;;  %v6723_v31 = vld [vmem:[#allocation2 + $0x7c8] ss:$16 sps:$4 sm:$0xff]  }
 0x270   :  { %2150 = vmatpush2.bf16.msra.mxu0 %v6640_v32  ;;  %v6728_v32 = vld [vmem:[#allocation2 + $0x5ac] ss:$16 sps:$4 sm:$0xff]  }
 0x271   :  { %2193 = vmatpush2.bf16.msra.mxu1 %v6641_v33  ;;  %2151 = vmatprep.subr.bf16.mxu0 %v6642_v34  ;;  %v6731_v33 = vld [vmem:[#allocation2 + $0x7ac] ss:$16 sps:$4 sm:$0xff]   ;;  %v6726_v34 = vld [vmem:[#allocation2 + $0x5a8] ss:$16 sps:$4 sm:$0xff]  }
 0x272   :  { %2194 = vmatprep.subr.bf16.mxu1 %v6644_v43  ;;  %v6729_v43 = vld [vmem:[#allocation2 + $0x7a8] ss:$16 sps:$4 sm:$0xff]  }
 0x274   :  { %2152 = vmatpush2.bf16.msra.mxu0 %v6646_v44  ;;  %v6734_v44 = vld [vmem:[#allocation2 + $0x58c] ss:$16 sps:$4 sm:$0xff]  }
 0x275   :  { %2195 = vmatpush2.bf16.msra.mxu1 %v6647_v46  ;;  %2153 = vmatprep.subr.bf16.mxu0 %v6648_v50  ;;  %v6737_v46 = vld [vmem:[#allocation2 + $0x78c] ss:$16 sps:$4 sm:$0xff]   ;;  %v6732_v50 = vld [vmem:[#allocation2 + $0x588] ss:$16 sps:$4 sm:$0xff]  }
 0x276   :  { %2196 = vmatprep.subr.bf16.mxu1 %v6650_v41  ;;  %v6735_v41 = vld [vmem:[#allocation2 + $0x788] ss:$16 sps:$4 sm:$0xff]  }
 0x278   :  { %2154 = vmatpush2.bf16.msra.mxu0 %v6652_v54  ;;  %v6740_v54 = vld [vmem:[#allocation2 + $0x56c] ss:$16 sps:$4 sm:$0xff]  }
 0x279   :  { %2197 = vmatpush2.bf16.msra.mxu1 %v6653_v55  ;;  %2155 = vmatprep.subr.bf16.mxu0 %v6654_v56  ;;  %v6743_v55 = vld [vmem:[#allocation2 + $0x76c] ss:$16 sps:$4 sm:$0xff]   ;;  %v6738_v56 = vld [vmem:[#allocation2 + $0x568] ss:$16 sps:$4 sm:$0xff]  }
 0x27a   :  { %2198 = vmatprep.subr.bf16.mxu1 %v6656_v57  ;;  %v6741_v57 = vld [vmem:[#allocation2 + $0x768] ss:$16 sps:$4 sm:$0xff]  }
 0x27c   :  { %2156 = vmatpush2.bf16.msra.mxu0 %v6658_v58  ;;  %v6746_v58 = vld [vmem:[#allocation2 + $0x54c] ss:$16 sps:$4 sm:$0xff]  }
 0x27d   :  { %2199 = vmatpush2.bf16.msra.mxu1 %v6659_v59  ;;  %2157 = vmatprep.subr.bf16.mxu0 %v6660_v60  ;;  %v6749_v59 = vld [vmem:[#allocation2 + $0x74c] ss:$16 sps:$4 sm:$0xff]   ;;  %v6744_v60 = vld [vmem:[#allocation2 + $0x548] ss:$16 sps:$4 sm:$0xff]  }
 0x27e   :  { %2200 = vmatprep.subr.bf16.mxu1 %v6662_v61  ;;  %v6747_v61 = vld [vmem:[#allocation2 + $0x748] ss:$16 sps:$4 sm:$0xff]  }
 0x280   :  { %2158 = vmatpush2.bf16.msra.mxu0 %v6664_v62  ;;  %v6752_v62 = vld [vmem:[#allocation2 + $0x52c] ss:$16 sps:$4 sm:$0xff]  }
 0x281   :  { %2201 = vmatpush2.bf16.msra.mxu1 %v6665_v1  ;;  %2213 = vmatprep.subr.bf16.mxu0 %v6668_v2  ;;  %v6755_v1 = vld [vmem:[#allocation2 + $0x72c] ss:$16 sps:$4 sm:$0xff]   ;;  %v6750_v2 = vld [vmem:[#allocation2 + $0x528] ss:$16 sps:$4 sm:$0xff]  }
 0x282   :  { %2256 = vmatprep.subr.bf16.mxu1 %v6671_v3  ;;  %v6753_v3 = vld [vmem:[#allocation2 + $0x728] ss:$16 sps:$4 sm:$0xff]  }
 0x283   :  { %2160 = vmatmul.mubr.bf16.vlgmr.msra.gmra.mxu0 %v7874_v4 }
 0x284   :  { %2203 = vmatmul.mubr.bf16.vlgmr.msra.gmra.mxu1 %v7878_v5  ;;  %2214 = vmatpush1.bf16.msra.mxu0 %v6666_v6  ;;  %v6758_v6 = vld [vmem:[#allocation2 + $0x50c] ss:$16 sps:$4 sm:$0xff]  }
 0x285   :  { %2257 = vmatpush1.bf16.msra.mxu1 %v6669_v45  ;;  %2215 = vmatprep.subr.bf16.mxu0 %v6674_v47  ;;  %v6761_v45 = vld [vmem:[#allocation2 + $0x70c] ss:$16 sps:$4 sm:$0xff]   ;;  %v6756_v47 = vld [vmem:[#allocation2 + $0x508] ss:$16 sps:$4 sm:$0xff]  }
 0x286   :  { %2258 = vmatprep.subr.bf16.mxu1 %v6677_v49  ;;  %2245 = vmatprep.mubr.bf16.mxu0 %v7863_v42  ;;  %v6693_v42 = vld [vmem:[#allocation2 + $0x668] ss:$16 sps:$4 sm:$0xff]  }
 0x287   :  { %2288 = vmatprep.mubr.bf16.mxu1 %v7865_v53  ;;  %v6698_v53 = vld [vmem:[#allocation2 + $0x44c] ss:$16 sps:$4 sm:$0xff]   ;;  %v6759_v49 = vld [vmem:[#allocation2 + $0x708] ss:$16 sps:$4 sm:$0xff]  }
 0x288   :  { %2216 = vmatpush1.bf16.msra.mxu0 %v6672_v51  ;;  %v1465_v51 = vld [vmem:[#allocation8 + $0x4] sm:$0xf] }
 0x289   :  { %2259 = vmatpush1.bf16.msra.mxu1 %v6675_v7  ;;  %2217 = vmatprep.subr.bf16.mxu0 %v6680_v20  ;;  %v1470_v7 = vrot.slane %v1465_v51, %v7763_v8  ;;  %v1474_v20 = vrot.slane %v1465_v51, %v7765_v9 }
 0x28a   :  { %2260 = vmatprep.subr.bf16.mxu1 %v6683_v22 }
 0x28c   :  { %2218 = vmatpush1.bf16.msra.mxu0 %v6678_v48 }
 0x28d   :  { %2261 = vmatpush1.bf16.msra.mxu1 %v6681_v52  ;;  %2219 = vmatprep.subr.bf16.mxu0 %v6686_v12 }
 0x28e   :  { %2262 = vmatprep.subr.bf16.mxu1 %v6689_v13 }
 0x290   :  { %2220 = vmatpush1.bf16.msra.mxu0 %v6684_v14 }
 0x291   :  { %2263 = vmatpush1.bf16.msra.mxu1 %v6687_v15  ;;  %2221 = vmatprep.subr.bf16.mxu0 %v6692_v16 }
 0x292   :  { %2264 = vmatprep.subr.bf16.mxu1 %v6695_v17 }
 0x294   :  { %2222 = vmatpush1.bf16.msra.mxu0 %v6690_v39 }
 0x295   :  { %2265 = vmatpush1.bf16.msra.mxu1 %v6693_v42  ;;  %2223 = vmatprep.subr.bf16.mxu0 %v6698_v53 }
 0x296   :  { %2266 = vmatprep.subr.bf16.mxu1 %v6701_v63 }
 0x298   :  { %2224 = vmatpush1.bf16.msra.mxu0 %v6696_v0 }
 0x299   :  { %2267 = vmatpush1.bf16.msra.mxu1 %v6699_v40  ;;  %2225 = vmatprep.subr.bf16.mxu0 %v6704_v18 }
 0x29a   :  { %2268 = vmatprep.subr.bf16.mxu1 %v6707_v19 }
 0x29c   :  { %2226 = vmatpush1.bf16.msra.mxu0 %v6702_v21 }
 0x29d   :  { %2269 = vmatpush1.bf16.msra.mxu1 %v6705_v23  ;;  %2227 = vmatprep.subr.bf16.mxu0 %v6710_v24  ;;  %v1478_v23 = vrot.slane %v1465_v51, %v7767_v10  ;;  %v1482_v24 = vrot.slane %v1465_v51, %v7769_v11 }
 0x29e   :  { %2270 = vmatprep.subr.bf16.mxu1 %v6713_v25 }
 0x2a0   :  { %2228 = vmatpush1.bf16.msra.mxu0 %v6708_v26 }
 0x2a1   :  { %2271 = vmatpush1.bf16.msra.mxu1 %v6711_v27  ;;  %2229 = vmatprep.subr.bf16.mxu0 %v6716_v28 }
 0x2a2   :  { %2272 = vmatprep.subr.bf16.mxu1 %v6719_v29 }
 0x2a4   :  { %2230 = vmatpush2.bf16.msra.mxu0 %v6714_v30 }
 0x2a5   :  { %2273 = vmatpush2.bf16.msra.mxu1 %v6717_v35  ;;  %2231 = vmatprep.subr.bf16.mxu0 %v6722_v36 }
 0x2a6   :  { %2274 = vmatprep.subr.bf16.mxu1 %v6725_v37 }
 0x2a8   :  { %2232 = vmatpush2.bf16.msra.mxu0 %v6720_v38 }
 0x2a9   :  { %2275 = vmatpush2.bf16.msra.mxu1 %v6723_v31  ;;  %2233 = vmatprep.subr.bf16.mxu0 %v6728_v32 }
 0x2aa   :  { %2276 = vmatprep.subr.bf16.mxu1 %v6731_v33 }
 0x2ac   :  { %2234 = vmatpush2.bf16.msra.mxu0 %v6726_v34 }
 0x2ad   :  { %2277 = vmatpush2.bf16.msra.mxu1 %v6729_v43  ;;  %2235 = vmatprep.subr.bf16.mxu0 %v6734_v44 }
 0x2ae   :  { %2278 = vmatprep.subr.bf16.mxu1 %v6737_v46 }
 0x2b0   :  { %2236 = vmatpush2.bf16.msra.mxu0 %v6732_v50 }
 0x2b1   :  { %2279 = vmatpush2.bf16.msra.mxu1 %v6735_v41  ;;  %2237 = vmatprep.subr.bf16.mxu0 %v6740_v54 }
 0x2b2   :  { %2280 = vmatprep.subr.bf16.mxu1 %v6743_v55 }
 0x2b4   :  { %2238 = vmatpush2.bf16.msra.mxu0 %v6738_v56 }
 0x2b5   :  { %2281 = vmatpush2.bf16.msra.mxu1 %v6741_v57  ;;  %2239 = vmatprep.subr.bf16.mxu0 %v6746_v58 }
 0x2b6   :  { %2282 = vmatprep.subr.bf16.mxu1 %v6749_v59 }
 0x2b8   :  { %2240 = vmatpush2.bf16.msra.mxu0 %v6744_v60 }
 0x2b9   :  { %2283 = vmatpush2.bf16.msra.mxu1 %v6747_v61  ;;  %2241 = vmatprep.subr.bf16.mxu0 %v6752_v62 }
 0x2ba   :  { %2284 = vmatprep.subr.bf16.mxu1 %v6755_v1 }
 0x2bc   :  { %2242 = vmatpush2.bf16.msra.mxu0 %v6750_v2 }
 0x2bd   :  { %2285 = vmatpush2.bf16.msra.mxu1 %v6753_v3  ;;  %2243 = vmatprep.subr.bf16.mxu0 %v6758_v6 }
 0x2be   :  { %2286 = vmatprep.subr.bf16.mxu1 %v6761_v45 }
 0x2c0   :  { %2244 = vmatpush2.bf16.msra.mxu0 %v6756_v47 }
 0x2c1   :  { %2287 = vmatpush2.bf16.msra.mxu1 %v6759_v49 }
 0x2c3   :  { %2246 = vmatmul.mubr.bf16.vlgmr.msra.gmra.mxu0 %v7874_v4 }
 0x2c4   :  { %2289 = vmatmul.mubr.bf16.vlgmr.msra.gmra.mxu1 %v7878_v5 }
 0x343   :  { %v2161_v22 = vpop.f32.mrf.mxu0 }
 0x344   :  { %v2204_v48 = vpop.f32.mrf.mxu1  ;;  %v2162_v52 = vadd.f32 %v2161_v22, %v1470_v7 }
 0x345   :  { %v2163_v12 = vpop.f32.mrf.mxu0 }
 0x346   :  { %v2206_v13 = vpop.f32.mrf.mxu1  ;;  %v2205_v14 = vadd.f32 %v2204_v48, %v2162_v52  ;;  %v2164_v15 = vadd.f32 %v2163_v12, %v1474_v20 }
 0x347   :  { %v2165_v16 = vpop.f32.mrf.mxu0 }
 0x348   :  { %v2208_v17 = vpop.f32.mrf.mxu1  ;;  %6762 = vtanh.f32 %v2205_v14  ;;  %v2207_v39 = vadd.f32 %v2206_v13, %v2164_v15  ;;  %v2166_v42 = vadd.f32 %v2165_v16, %v1470_v7 }
 0x349   :  { %v2167_v4 = vpop.f32.mrf.mxu0 }
 0x34a   :  { %6764 = vtanh.f32 %v2207_v39  ;;  %v2209_v5 = vadd.f32 %v2208_v17, %v2166_v42  ;;  %v2168_v53 = vadd.f32 %v2167_v4, %v1474_v20  ;;  %v2210_v63 = vpop.f32.mrf.mxu1 }
 0x34c   :  { %6766 = vtanh.f32 %v2209_v5  ;;  %v2211_v0 = vadd.f32 %v2210_v63, %v2168_v53 }
 0x34e   :  { %6768 = vtanh.f32 %v2211_v0 }
 0x355   :  { %v7888_v40 = vpop.eup %6762 }
 0x357   :  { %v6765_v18 = vpop.eup %6764 }
 0x359   :  { %v7890_v19 = vpop.eup %6766 }
 0x35b   :  { %v6769_v21 = vpop.eup %6768 }
 0x383   :  { %v2247_v25 = vpop.f32.mrf.mxu0 }
 0x384   :  { %v2290_v26 = vpop.f32.mrf.mxu1  ;;  %v2248_v27 = vadd.f32 %v2247_v25, %v1478_v23 }
 0x385   :  { %v2249_v28 = vpop.f32.mrf.mxu0 }
 0x386   :  { %v2292_v29 = vpop.f32.mrf.mxu1  ;;  %v2291_v30 = vadd.f32 %v2290_v26, %v2248_v27  ;;  %v2250_v35 = vadd.f32 %v2249_v28, %v1482_v24 }
 0x387   :  { %v2251_v36 = vpop.f32.mrf.mxu0 }
 0x388   :  { %v2294_v37 = vpop.f32.mrf.mxu1  ;;  %6770 = vtanh.f32 %v2291_v30  ;;  %v2293_v38 = vadd.f32 %v2292_v29, %v2250_v35  ;;  %v2252_v31 = vadd.f32 %v2251_v36, %v1478_v23 }
 0x389   :  { %v2253_v32 = vpop.f32.mrf.mxu0 }
 0x38a   :  { %6772 = vtanh.f32 %v2293_v38  ;;  %v2295_v33 = vadd.f32 %v2294_v37, %v2252_v31  ;;  %v2254_v34 = vadd.f32 %v2253_v32, %v1482_v24  ;;  %v2296_v43 = vpop.f32.mrf.mxu1 }
 0x38c   :  { %6774 = vtanh.f32 %v2295_v33  ;;  %v2297_v44 = vadd.f32 %v2296_v43, %v2254_v34 }
 0x38e   :  { %6776 = vtanh.f32 %v2297_v44 }
 0x395   :  { %v7894_v46 = vpop.eup %6770 }
 0x397   :  { %v6773_v50 = vpop.eup %6772 }
 0x399   :  { %v7896_v41 = vpop.eup %6774 }
 0x39b   :  { %v6777_v54 = vpop.eup %6776 }
 0x39c   :  { %7650 = dma.done.wait [#allocation3], 16384 }
 0x39d   :  { %7651 = vsyncadd [#allocation3], 4294950912  ;;  %s2309_s14 = scalar_lea.hbm %s8258_s3, 49152  ;;  %v7901_v55 = vpack.c.bf16 %v6769_v21, %v6765_v18  ;;  %v7903_v56 = vpack.c.bf16 %v6777_v54, %v6773_v50 }
 0x39e   :  { %7613 = shalt.err (!%p7564_p11)  }
 0x39f   :  { %2320 = dma.hbm_to_vmem [thread:$0]  %s2309_s14, 16384, %s7806_s27, [#allocation3 + $0x1]  ;;  %3148 = vmatprep.mubr.bf16.mxu0 %v7901_v55  ;;  %3191 = vmatprep.mubr.bf16.mxu1 %v7903_v56 }
 0x3a0   :  { %v6778_v57 = vld [vmem:[#allocation2 + $0xe4] ss:$16 sps:$4 sm:$0xff]   ;;  %v6782_v59 = vld [vmem:[#allocation2 + $0xe0] ss:$16 sps:$4 sm:$0xff]  }
 0x3a1   :  { %v6780_v58 = vld [vmem:[#allocation2 + $0x2e4] ss:$16 sps:$4 sm:$0xff]   ;;  %3116 = vmatprep.subr.bf16.mxu0 %v6778_v57  ;;  %v6783_v60 = vld [vmem:[#allocation2 + $0x2e0] ss:$16 sps:$4 sm:$0xff]  }
 0x3a2   :  { %3159 = vmatprep.subr.bf16.mxu1 %v6780_v58  ;;  %v6784_v61 = vld [vmem:[#allocation2 + $0xc4] ss:$16 sps:$4 sm:$0xff]   ;;  %3117 = vmatpush1.bf16.msra.mxu0 %v6782_v59  ;;  %v6788_v1 = vld [vmem:[#allocation2 + $0xc0] ss:$16 sps:$4 sm:$0xff]  }
 0x3a3   :  { %3160 = vmatpush1.bf16.msra.mxu1 %v6783_v60  ;;  %v6786_v62 = vld [vmem:[#allocation2 + $0x2c4] ss:$16 sps:$4 sm:$0xff]   ;;  %3118 = vmatprep.subr.bf16.mxu0 %v6784_v61  ;;  %v6789_v2 = vld [vmem:[#allocation2 + $0x2c0] ss:$16 sps:$4 sm:$0xff]  }
 0x3a4   :  { %3161 = vmatprep.subr.bf16.mxu1 %v6786_v62  ;;  %v6790_v3 = vld [vmem:[#allocation2 + $0xa4] ss:$16 sps:$4 sm:$0xff]   ;;  %v6794_v45 = vld [vmem:[#allocation2 + $0xa0] ss:$16 sps:$4 sm:$0xff]  }
 0x3a5   :  { %v6792_v6 = vld [vmem:[#allocation2 + $0x2a4] ss:$16 sps:$4 sm:$0xff]   ;;  %v6795_v47 = vld [vmem:[#allocation2 + $0x2a0] ss:$16 sps:$4 sm:$0xff]  }
 0x3a6   :  { %3119 = vmatpush1.bf16.msra.mxu0 %v6788_v1  ;;  %v6796_v49 = vld [vmem:[#allocation2 + $0x84] ss:$16 sps:$4 sm:$0xff]   ;;  %v6800_v7 = vld [vmem:[#allocation2 + $0x80] ss:$16 sps:$4 sm:$0xff]  }
 0x3a7   :  { %3162 = vmatpush1.bf16.msra.mxu1 %v6789_v2  ;;  %3120 = vmatprep.subr.bf16.mxu0 %v6790_v3  ;;  %v6798_v51 = vld [vmem:[#allocation2 + $0x284] ss:$16 sps:$4 sm:$0xff]   ;;  %v6801_v20 = vld [vmem:[#allocation2 + $0x280] ss:$16 sps:$4 sm:$0xff]  }
 0x3a8   :  { %3163 = vmatprep.subr.bf16.mxu1 %v6792_v6  ;;  %v6802_v22 = vld [vmem:[#allocation2 + $0x64] ss:$16 sps:$4 sm:$0xff]   ;;  %v6806_v52 = vld [vmem:[#allocation2 + $0x60] ss:$16 sps:$4 sm:$0xff]  }
 0x3a9   :  { %v6804_v48 = vld [vmem:[#allocation2 + $0x264] ss:$16 sps:$4 sm:$0xff]   ;;  %v6807_v12 = vld [vmem:[#allocation2 + $0x260] ss:$16 sps:$4 sm:$0xff]  }
 0x3aa   :  { %3121 = vmatpush1.bf16.msra.mxu0 %v6794_v45  ;;  %v6808_v13 = vld [vmem:[#allocation2 + $0x44] ss:$16 sps:$4 sm:$0xff]   ;;  %v6812_v15 = vld [vmem:[#allocation2 + $0x40] ss:$16 sps:$4 sm:$0xff]   ;;  %v6876_v45 = vld [vmem:[#allocation2 + $0xec] ss:$16 sps:$4 sm:$0xff]  }
 0x3ab   :  { %3164 = vmatpush1.bf16.msra.mxu1 %v6795_v47  ;;  %3122 = vmatprep.subr.bf16.mxu0 %v6796_v49  ;;  %v6810_v14 = vld [vmem:[#allocation2 + $0x244] ss:$16 sps:$4 sm:$0xff]   ;;  %v6813_v16 = vld [vmem:[#allocation2 + $0x240] ss:$16 sps:$4 sm:$0xff]   ;;  %v6879_v47 = vld [vmem:[#allocation2 + $0x2ec] ss:$16 sps:$4 sm:$0xff]   ;;  %v7915_v49 = vpack.c.bf16 %v7890_v19, %v7888_v40 }
 0x3ac   :  { %3165 = vmatprep.subr.bf16.mxu1 %v6798_v51  ;;  %v6814_v17 = vld [vmem:[#allocation2 + $0x24] ss:$16 sps:$4 sm:$0xff]   ;;  %v6818_v42 = vld [vmem:[#allocation2 + $0x20] ss:$16 sps:$4 sm:$0xff]   ;;  %v7919_v51 = vpack.c.bf16 %v7896_v41, %v7894_v46  ;;  %v6888_v40 = vld [vmem:[#allocation2 + $0xac] ss:$16 sps:$4 sm:$0xff]  }
 0x3ad   :  { %v6816_v39 = vld [vmem:[#allocation2 + $0x224] ss:$16 sps:$4 sm:$0xff]   ;;  %v6819_v4 = vld [vmem:[#allocation2 + $0x220] ss:$16 sps:$4 sm:$0xff]   ;;  %v6891_v19 = vld [vmem:[#allocation2 + $0x2ac] ss:$16 sps:$4 sm:$0xff]  }
 0x3ae   :  { %3123 = vmatpush1.bf16.msra.mxu0 %v6800_v7  ;;  %v6820_v5 = vld [vmem:[#allocation2 + $0x4] ss:$16 sps:$4 sm:$0xff]   ;;  %v6824_v63 = vld [vmem:[#allocation2] ss:$16 sps:$4 sm:$0xff]   ;;  %v6874_v7 = vld [vmem:[#allocation2 + $0xe8] ss:$16 sps:$4 sm:$0xff]  }
 0x3af   :  { %3166 = vmatpush1.bf16.msra.mxu1 %v6801_v20  ;;  %3124 = vmatprep.subr.bf16.mxu0 %v6802_v22  ;;  %v6822_v53 = vld [vmem:[#allocation2 + $0x204] ss:$16 sps:$4 sm:$0xff]   ;;  %v6825_v0 = vld [vmem:[#allocation2 + $0x200] ss:$16 sps:$4 sm:$0xff]   ;;  %v6877_v20 = vld [vmem:[#allocation2 + $0x2e8] ss:$16 sps:$4 sm:$0xff]  }
 0x3b0   :  { %3167 = vmatprep.subr.bf16.mxu1 %v6804_v48  ;;  %v6826_v18 = vld [vmem:[#allocation2 + $0x1e4] ss:$16 sps:$4 sm:$0xff]   ;;  %v6830_v23 = vld [vmem:[#allocation2 + $0x1e0] ss:$16 sps:$4 sm:$0xff]   ;;  %v6882_v22 = vld [vmem:[#allocation2 + $0xcc] ss:$16 sps:$4 sm:$0xff]  }
 0x3b1   :  { %v6828_v21 = vld [vmem:[#allocation2 + $0x3e4] ss:$16 sps:$4 sm:$0xff]   ;;  %v6831_v24 = vld [vmem:[#allocation2 + $0x3e0] ss:$16 sps:$4 sm:$0xff]   ;;  %v6885_v48 = vld [vmem:[#allocation2 + $0x2cc] ss:$16 sps:$4 sm:$0xff]  }
 0x3b2   :  { %3125 = vmatpush1.bf16.msra.mxu0 %v6806_v52  ;;  %v6832_v25 = vld [vmem:[#allocation2 + $0x1c4] ss:$16 sps:$4 sm:$0xff]   ;;  %v6836_v27 = vld [vmem:[#allocation2 + $0x1c0] ss:$16 sps:$4 sm:$0xff]   ;;  %v6880_v52 = vld [vmem:[#allocation2 + $0xc8] ss:$16 sps:$4 sm:$0xff]  }
 0x3b3   :  { %3168 = vmatpush1.bf16.msra.mxu1 %v6807_v12  ;;  %3126 = vmatprep.subr.bf16.mxu0 %v6808_v13  ;;  %v6834_v26 = vld [vmem:[#allocation2 + $0x3c4] ss:$16 sps:$4 sm:$0xff]   ;;  %v6837_v28 = vld [vmem:[#allocation2 + $0x3c0] ss:$16 sps:$4 sm:$0xff]   ;;  %v6883_v12 = vld [vmem:[#allocation2 + $0x2c8] ss:$16 sps:$4 sm:$0xff]  }
 0x3b4   :  { %3169 = vmatprep.subr.bf16.mxu1 %v6810_v14  ;;  %v6838_v29 = vld [vmem:[#allocation2 + $0x1a4] ss:$16 sps:$4 sm:$0xff]   ;;  %v6842_v35 = vld [vmem:[#allocation2 + $0x1a0] ss:$16 sps:$4 sm:$0xff]   ;;  %v6886_v46 = vld [vmem:[#allocation2 + $0xa8] ss:$16 sps:$4 sm:$0xff]  }
 0x3b5   :  { %v6840_v30 = vld [vmem:[#allocation2 + $0x3a4] ss:$16 sps:$4 sm:$0xff]   ;;  %v6843_v36 = vld [vmem:[#allocation2 + $0x3a0] ss:$16 sps:$4 sm:$0xff]   ;;  %v6889_v41 = vld [vmem:[#allocation2 + $0x2a8] ss:$16 sps:$4 sm:$0xff]  }
 0x3b6   :  { %3127 = vmatpush1.bf16.msra.mxu0 %v6812_v15  ;;  %v6844_v37 = vld [vmem:[#allocation2 + $0x184] ss:$16 sps:$4 sm:$0xff]   ;;  %v6848_v31 = vld [vmem:[#allocation2 + $0x180] ss:$16 sps:$4 sm:$0xff]   ;;  %v6894_v13 = vld [vmem:[#allocation2 + $0x8c] ss:$16 sps:$4 sm:$0xff]  }
 0x3b7   :  { %3170 = vmatpush1.bf16.msra.mxu1 %v6813_v16  ;;  %3128 = vmatprep.subr.bf16.mxu0 %v6814_v17  ;;  %v6846_v38 = vld [vmem:[#allocation2 + $0x384] ss:$16 sps:$4 sm:$0xff]   ;;  %v6849_v32 = vld [vmem:[#allocation2 + $0x380] ss:$16 sps:$4 sm:$0xff]   ;;  %v6897_v14 = vld [vmem:[#allocation2 + $0x28c] ss:$16 sps:$4 sm:$0xff]  }
 0x3b8   :  { %3171 = vmatprep.subr.bf16.mxu1 %v6816_v39  ;;  %v6850_v33 = vld [vmem:[#allocation2 + $0x164] ss:$16 sps:$4 sm:$0xff]   ;;  %v6854_v43 = vld [vmem:[#allocation2 + $0x160] ss:$16 sps:$4 sm:$0xff]   ;;  %v6892_v15 = vld [vmem:[#allocation2 + $0x88] ss:$16 sps:$4 sm:$0xff]  }
 0x3b9   :  { %v6852_v34 = vld [vmem:[#allocation2 + $0x364] ss:$16 sps:$4 sm:$0xff]   ;;  %v6855_v44 = vld [vmem:[#allocation2 + $0x360] ss:$16 sps:$4 sm:$0xff]   ;;  %v6895_v16 = vld [vmem:[#allocation2 + $0x288] ss:$16 sps:$4 sm:$0xff]  }
 0x3ba   :  { %3129 = vmatpush1.bf16.msra.mxu0 %v6818_v42  ;;  %v6856_v50 = vld [vmem:[#allocation2 + $0x144] ss:$16 sps:$4 sm:$0xff]   ;;  %v6860_v57 = vld [vmem:[#allocation2 + $0x140] ss:$16 sps:$4 sm:$0xff]   ;;  %v6900_v17 = vld [vmem:[#allocation2 + $0x6c] ss:$16 sps:$4 sm:$0xff]  }
 0x3bb   :  { %3172 = vmatpush1.bf16.msra.mxu1 %v6819_v4  ;;  %3130 = vmatprep.subr.bf16.mxu0 %v6820_v5  ;;  %v6858_v54 = vld [vmem:[#allocation2 + $0x344] ss:$16 sps:$4 sm:$0xff]   ;;  %v6861_v58 = vld [vmem:[#allocation2 + $0x340] ss:$16 sps:$4 sm:$0xff]   ;;  %v6903_v39 = vld [vmem:[#allocation2 + $0x26c] ss:$16 sps:$4 sm:$0xff]  }
 0x3bc   :  { %3173 = vmatprep.subr.bf16.mxu1 %v6822_v53  ;;  %v6862_v59 = vld [vmem:[#allocation2 + $0x124] ss:$16 sps:$4 sm:$0xff]   ;;  %v6866_v61 = vld [vmem:[#allocation2 + $0x120] ss:$16 sps:$4 sm:$0xff]   ;;  %v6898_v42 = vld [vmem:[#allocation2 + $0x68] ss:$16 sps:$4 sm:$0xff]  }
 0x3bd   :  { %v6864_v60 = vld [vmem:[#allocation2 + $0x324] ss:$16 sps:$4 sm:$0xff]   ;;  %v6867_v62 = vld [vmem:[#allocation2 + $0x320] ss:$16 sps:$4 sm:$0xff]   ;;  %v6909_v4 = vld [vmem:[#allocation2 + $0x24c] ss:$16 sps:$4 sm:$0xff]  }
 0x3be   :  { %3131 = vmatpush1.bf16.msra.mxu0 %v6824_v63  ;;  %v6868_v1 = vld [vmem:[#allocation2 + $0x104] ss:$16 sps:$4 sm:$0xff]   ;;  %v6872_v3 = vld [vmem:[#allocation2 + $0x100] ss:$16 sps:$4 sm:$0xff]   ;;  %v6904_v5 = vld [vmem:[#allocation2 + $0x48] ss:$16 sps:$4 sm:$0xff]  }
 0x3bf   :  { %3174 = vmatpush1.bf16.msra.mxu1 %v6825_v0  ;;  %3132 = vmatprep.subr.bf16.mxu0 %v6826_v18  ;;  %v6870_v2 = vld [vmem:[#allocation2 + $0x304] ss:$16 sps:$4 sm:$0xff]   ;;  %v6873_v6 = vld [vmem:[#allocation2 + $0x300] ss:$16 sps:$4 sm:$0xff]   ;;  %v6907_v53 = vld [vmem:[#allocation2 + $0x248] ss:$16 sps:$4 sm:$0xff]  }
 0x3c0   :  { %3175 = vmatprep.subr.bf16.mxu1 %v6828_v21  ;;  %v6912_v63 = vld [vmem:[#allocation2 + $0x2c] ss:$16 sps:$4 sm:$0xff]   ;;  %v6910_v18 = vld [vmem:[#allocation2 + $0x28] ss:$16 sps:$4 sm:$0xff]  }
 0x3c1   :  { %v6915_v0 = vld [vmem:[#allocation2 + $0x22c] ss:$16 sps:$4 sm:$0xff]   ;;  %v6913_v21 = vld [vmem:[#allocation2 + $0x228] ss:$16 sps:$4 sm:$0xff]  }
 0x3c2   :  { %3133 = vmatpush2.bf16.msra.mxu0 %v6830_v23  ;;  %v6918_v23 = vld [vmem:[#allocation2 + $0xc] ss:$16 sps:$4 sm:$0xff]  }
 0x3c3   :  { %3176 = vmatpush2.bf16.msra.mxu1 %v6831_v24  ;;  %3134 = vmatprep.subr.bf16.mxu0 %v6832_v25  ;;  %v6921_v24 = vld [vmem:[#allocation2 + $0x20c] ss:$16 sps:$4 sm:$0xff]   ;;  %v6916_v25 = vld [vmem:[#allocation2 + $0x8] ss:$16 sps:$4 sm:$0xff]  }
 0x3c4   :  { %3177 = vmatprep.subr.bf16.mxu1 %v6834_v26  ;;  %v6919_v26 = vld [vmem:[#allocation2 + $0x208] ss:$16 sps:$4 sm:$0xff]  }
 0x3c6   :  { %3135 = vmatpush2.bf16.msra.mxu0 %v6836_v27  ;;  %v6924_v27 = vld [vmem:[#allocation2 + $0x1ec] ss:$16 sps:$4 sm:$0xff]  }
 0x3c7   :  { %3178 = vmatpush2.bf16.msra.mxu1 %v6837_v28  ;;  %3136 = vmatprep.subr.bf16.mxu0 %v6838_v29  ;;  %v6927_v28 = vld [vmem:[#allocation2 + $0x3ec] ss:$16 sps:$4 sm:$0xff]   ;;  %v6922_v29 = vld [vmem:[#allocation2 + $0x1e8] ss:$16 sps:$4 sm:$0xff]  }
 0x3c8   :  { %3179 = vmatprep.subr.bf16.mxu1 %v6840_v30  ;;  %v6925_v30 = vld [vmem:[#allocation2 + $0x3e8] ss:$16 sps:$4 sm:$0xff]  }
 0x3ca   :  { %3137 = vmatpush2.bf16.msra.mxu0 %v6842_v35  ;;  %v6930_v35 = vld [vmem:[#allocation2 + $0x1cc] ss:$16 sps:$4 sm:$0xff]  }
 0x3cb   :  { %3180 = vmatpush2.bf16.msra.mxu1 %v6843_v36  ;;  %3138 = vmatprep.subr.bf16.mxu0 %v6844_v37  ;;  %v6933_v36 = vld [vmem:[#allocation2 + $0x3cc] ss:$16 sps:$4 sm:$0xff]   ;;  %v6928_v37 = vld [vmem:[#allocation2 + $0x1c8] ss:$16 sps:$4 sm:$0xff]  }
 0x3cc   :  { %3181 = vmatprep.subr.bf16.mxu1 %v6846_v38  ;;  %v6931_v38 = vld [vmem:[#allocation2 + $0x3c8] ss:$16 sps:$4 sm:$0xff]  }
 0x3ce   :  { %3139 = vmatpush2.bf16.msra.mxu0 %v6848_v31  ;;  %v6936_v31 = vld [vmem:[#allocation2 + $0x1ac] ss:$16 sps:$4 sm:$0xff]  }
 0x3cf   :  { %3182 = vmatpush2.bf16.msra.mxu1 %v6849_v32  ;;  %3140 = vmatprep.subr.bf16.mxu0 %v6850_v33  ;;  %v6939_v32 = vld [vmem:[#allocation2 + $0x3ac] ss:$16 sps:$4 sm:$0xff]   ;;  %v6934_v33 = vld [vmem:[#allocation2 + $0x1a8] ss:$16 sps:$4 sm:$0xff]  }
 0x3d0   :  { %3183 = vmatprep.subr.bf16.mxu1 %v6852_v34  ;;  %v6937_v34 = vld [vmem:[#allocation2 + $0x3a8] ss:$16 sps:$4 sm:$0xff]  }
 0x3d2   :  { %3141 = vmatpush2.bf16.msra.mxu0 %v6854_v43  ;;  %v6942_v43 = vld [vmem:[#allocation2 + $0x18c] ss:$16 sps:$4 sm:$0xff]  }
 0x3d3   :  { %3184 = vmatpush2.bf16.msra.mxu1 %v6855_v44  ;;  %3142 = vmatprep.subr.bf16.mxu0 %v6856_v50  ;;  %v6945_v44 = vld [vmem:[#allocation2 + $0x38c] ss:$16 sps:$4 sm:$0xff]   ;;  %v6940_v50 = vld [vmem:[#allocation2 + $0x188] ss:$16 sps:$4 sm:$0xff]  }
 0x3d4   :  { %3185 = vmatprep.subr.bf16.mxu1 %v6858_v54  ;;  %v6943_v54 = vld [vmem:[#allocation2 + $0x388] ss:$16 sps:$4 sm:$0xff]  }
 0x3d6   :  { %3143 = vmatpush2.bf16.msra.mxu0 %v6860_v57  ;;  %v6948_v57 = vld [vmem:[#allocation2 + $0x16c] ss:$16 sps:$4 sm:$0xff]  }
 0x3d7   :  { %3186 = vmatpush2.bf16.msra.mxu1 %v6861_v58  ;;  %3144 = vmatprep.subr.bf16.mxu0 %v6862_v59  ;;  %v6951_v58 = vld [vmem:[#allocation2 + $0x36c] ss:$16 sps:$4 sm:$0xff]   ;;  %v6946_v59 = vld [vmem:[#allocation2 + $0x168] ss:$16 sps:$4 sm:$0xff]  }
 0x3d8   :  { %3187 = vmatprep.subr.bf16.mxu1 %v6864_v60  ;;  %v6949_v60 = vld [vmem:[#allocation2 + $0x368] ss:$16 sps:$4 sm:$0xff]  }
 0x3da   :  { %3145 = vmatpush2.bf16.msra.mxu0 %v6866_v61  ;;  %v6954_v61 = vld [vmem:[#allocation2 + $0x14c] ss:$16 sps:$4 sm:$0xff]  }
 0x3db   :  { %3188 = vmatpush2.bf16.msra.mxu1 %v6867_v62  ;;  %3146 = vmatprep.subr.bf16.mxu0 %v6868_v1  ;;  %v6957_v62 = vld [vmem:[#allocation2 + $0x34c] ss:$16 sps:$4 sm:$0xff]   ;;  %v6952_v1 = vld [vmem:[#allocation2 + $0x148] ss:$16 sps:$4 sm:$0xff]  }
 0x3dc   :  { %3189 = vmatprep.subr.bf16.mxu1 %v6870_v2  ;;  %v6955_v2 = vld [vmem:[#allocation2 + $0x348] ss:$16 sps:$4 sm:$0xff]  }
 0x3de   :  { %3147 = vmatpush2.bf16.msra.mxu0 %v6872_v3  ;;  %v6960_v3 = vld [vmem:[#allocation2 + $0x12c] ss:$16 sps:$4 sm:$0xff]  }
 0x3df   :  { %3190 = vmatpush2.bf16.msra.mxu1 %v6873_v6  ;;  %3202 = vmatprep.subr.bf16.mxu0 %v6876_v45  ;;  %v6963_v6 = vld [vmem:[#allocation2 + $0x32c] ss:$16 sps:$4 sm:$0xff]   ;;  %v6958_v45 = vld [vmem:[#allocation2 + $0x128] ss:$16 sps:$4 sm:$0xff]  }
 0x3e0   :  { %3245 = vmatprep.subr.bf16.mxu1 %v6879_v47  ;;  %v6961_v47 = vld [vmem:[#allocation2 + $0x328] ss:$16 sps:$4 sm:$0xff]  }
 0x3e1   :  { %3149 = vmatmul.mubr.bf16.vlgmr.msra.gmra.mxu0 %v7915_v49 }
 0x3e2   :  { %3192 = vmatmul.mubr.bf16.vlgmr.msra.gmra.mxu1 %v7919_v51  ;;  %3203 = vmatpush1.bf16.msra.mxu0 %v6874_v7  ;;  %v6966_v7 = vld [vmem:[#allocation2 + $0x10c] ss:$16 sps:$4 sm:$0xff]  }
 0x3e3   :  { %3246 = vmatpush1.bf16.msra.mxu1 %v6877_v20  ;;  %3204 = vmatprep.subr.bf16.mxu0 %v6882_v22  ;;  %v6969_v20 = vld [vmem:[#allocation2 + $0x30c] ss:$16 sps:$4 sm:$0xff]   ;;  %v6964_v22 = vld [vmem:[#allocation2 + $0x108] ss:$16 sps:$4 sm:$0xff]  }
 0x3e4   :  { %3247 = vmatprep.subr.bf16.mxu1 %v6885_v48  ;;  %3234 = vmatprep.mubr.bf16.mxu0 %v7901_v55  ;;  %v6901_v55 = vld [vmem:[#allocation2 + $0x268] ss:$16 sps:$4 sm:$0xff]  }
 0x3e5   :  { %3277 = vmatprep.mubr.bf16.mxu1 %v7903_v56  ;;  %v6906_v56 = vld [vmem:[#allocation2 + $0x4c] ss:$16 sps:$4 sm:$0xff]   ;;  %v6967_v48 = vld [vmem:[#allocation2 + $0x308] ss:$16 sps:$4 sm:$0xff]  }
 0x3e6   :  { %3205 = vmatpush1.bf16.msra.mxu0 %v6880_v52  ;;  %v2454_v52 = vld [vmem:[#allocation8 + $0x8] sm:$0xf] }
 0x3e7   :  { %3248 = vmatpush1.bf16.msra.mxu1 %v6883_v12  ;;  %3206 = vmatprep.subr.bf16.mxu0 %v6888_v40  ;;  %v2459_v12 = vrot.slane %v2454_v52, %v7763_v8  ;;  %v2463_v40 = vrot.slane %v2454_v52, %v7765_v9 }
 0x3e8   :  { %3249 = vmatprep.subr.bf16.mxu1 %v6891_v19 }
 0x3ea   :  { %3207 = vmatpush1.bf16.msra.mxu0 %v6886_v46 }
 0x3eb   :  { %3250 = vmatpush1.bf16.msra.mxu1 %v6889_v41  ;;  %3208 = vmatprep.subr.bf16.mxu0 %v6894_v13 }
 0x3ec   :  { %3251 = vmatprep.subr.bf16.mxu1 %v6897_v14 }
 0x3ee   :  { %3209 = vmatpush1.bf16.msra.mxu0 %v6892_v15 }
 0x3ef   :  { %3252 = vmatpush1.bf16.msra.mxu1 %v6895_v16  ;;  %3210 = vmatprep.subr.bf16.mxu0 %v6900_v17 }
 0x3f0   :  { %3253 = vmatprep.subr.bf16.mxu1 %v6903_v39 }
 0x3f2   :  { %3211 = vmatpush1.bf16.msra.mxu0 %v6898_v42 }
 0x3f3   :  { %3254 = vmatpush1.bf16.msra.mxu1 %v6901_v55  ;;  %3212 = vmatprep.subr.bf16.mxu0 %v6906_v56 }
 0x3f4   :  { %3255 = vmatprep.subr.bf16.mxu1 %v6909_v4 }
 0x3f6   :  { %3213 = vmatpush1.bf16.msra.mxu0 %v6904_v5 }
 0x3f7   :  { %3256 = vmatpush1.bf16.msra.mxu1 %v6907_v53  ;;  %3214 = vmatprep.subr.bf16.mxu0 %v6912_v63 }
 0x3f8   :  { %3257 = vmatprep.subr.bf16.mxu1 %v6915_v0 }
 0x3fa   :  { %3215 = vmatpush1.bf16.msra.mxu0 %v6910_v18 }
 0x3fb   :  { %3258 = vmatpush1.bf16.msra.mxu1 %v6913_v21  ;;  %3216 = vmatprep.subr.bf16.mxu0 %v6918_v23  ;;  %v2467_v21 = vrot.slane %v2454_v52, %v7767_v10  ;;  %v2471_v23 = vrot.slane %v2454_v52, %v7769_v11 }
 0x3fc   :  { %3259 = vmatprep.subr.bf16.mxu1 %v6921_v24 }
 0x3fe   :  { %3217 = vmatpush1.bf16.msra.mxu0 %v6916_v25 }
 0x3ff   :  { %3260 = vmatpush1.bf16.msra.mxu1 %v6919_v26  ;;  %3218 = vmatprep.subr.bf16.mxu0 %v6924_v27 }
 0x400   :  { %3261 = vmatprep.subr.bf16.mxu1 %v6927_v28 }
 0x402   :  { %3219 = vmatpush2.bf16.msra.mxu0 %v6922_v29 }
 0x403   :  { %3262 = vmatpush2.bf16.msra.mxu1 %v6925_v30  ;;  %3220 = vmatprep.subr.bf16.mxu0 %v6930_v35 }
 0x404   :  { %3263 = vmatprep.subr.bf16.mxu1 %v6933_v36 }
 0x406   :  { %3221 = vmatpush2.bf16.msra.mxu0 %v6928_v37 }
 0x407   :  { %3264 = vmatpush2.bf16.msra.mxu1 %v6931_v38  ;;  %3222 = vmatprep.subr.bf16.mxu0 %v6936_v31 }
 0x408   :  { %3265 = vmatprep.subr.bf16.mxu1 %v6939_v32 }
 0x40a   :  { %3223 = vmatpush2.bf16.msra.mxu0 %v6934_v33 }
 0x40b   :  { %3266 = vmatpush2.bf16.msra.mxu1 %v6937_v34  ;;  %3224 = vmatprep.subr.bf16.mxu0 %v6942_v43 }
 0x40c   :  { %3267 = vmatprep.subr.bf16.mxu1 %v6945_v44 }
 0x40e   :  { %3225 = vmatpush2.bf16.msra.mxu0 %v6940_v50 }
 0x40f   :  { %3268 = vmatpush2.bf16.msra.mxu1 %v6943_v54  ;;  %3226 = vmatprep.subr.bf16.mxu0 %v6948_v57 }
 0x410   :  { %3269 = vmatprep.subr.bf16.mxu1 %v6951_v58 }
 0x412   :  { %3227 = vmatpush2.bf16.msra.mxu0 %v6946_v59 }
 0x413   :  { %3270 = vmatpush2.bf16.msra.mxu1 %v6949_v60  ;;  %3228 = vmatprep.subr.bf16.mxu0 %v6954_v61 }
 0x414   :  { %3271 = vmatprep.subr.bf16.mxu1 %v6957_v62 }
 0x416   :  { %3229 = vmatpush2.bf16.msra.mxu0 %v6952_v1 }
 0x417   :  { %3272 = vmatpush2.bf16.msra.mxu1 %v6955_v2  ;;  %3230 = vmatprep.subr.bf16.mxu0 %v6960_v3 }
 0x418   :  { %3273 = vmatprep.subr.bf16.mxu1 %v6963_v6 }
 0x41a   :  { %3231 = vmatpush2.bf16.msra.mxu0 %v6958_v45 }
 0x41b   :  { %3274 = vmatpush2.bf16.msra.mxu1 %v6961_v47  ;;  %3232 = vmatprep.subr.bf16.mxu0 %v6966_v7 }
 0x41c   :  { %3275 = vmatprep.subr.bf16.mxu1 %v6969_v20 }
 0x41e   :  { %3233 = vmatpush2.bf16.msra.mxu0 %v6964_v22 }
 0x41f   :  { %3276 = vmatpush2.bf16.msra.mxu1 %v6967_v48 }
 0x421   :  { %3235 = vmatmul.mubr.bf16.vlgmr.msra.gmra.mxu0 %v7915_v49 }
 0x422   :  { %3278 = vmatmul.mubr.bf16.vlgmr.msra.gmra.mxu1 %v7919_v51 }
 0x4a1   :  { %v3150_v19 = vpop.f32.mrf.mxu0 }
 0x4a2   :  { %v3193_v46 = vpop.f32.mrf.mxu1  ;;  %v3151_v41 = vadd.f32 %v3150_v19, %v2459_v12 }
 0x4a3   :  { %v3152_v13 = vpop.f32.mrf.mxu0 }
 0x4a4   :  { %v3195_v14 = vpop.f32.mrf.mxu1  ;;  %v3194_v15 = vadd.f32 %v3193_v46, %v3151_v41  ;;  %v3153_v16 = vadd.f32 %v3152_v13, %v2463_v40 }
 0x4a5   :  { %v3154_v17 = vpop.f32.mrf.mxu0 }
 0x4a6   :  { %v3197_v39 = vpop.f32.mrf.mxu1  ;;  %6970 = vtanh.f32 %v3194_v15  ;;  %v3196_v42 = vadd.f32 %v3195_v14, %v3153_v16  ;;  %v3155_v55 = vadd.f32 %v3154_v17, %v2459_v12 }
 0x4a7   :  { %v3156_v49 = vpop.f32.mrf.mxu0 }
 0x4a8   :  { %6972 = vtanh.f32 %v3196_v42  ;;  %v3198_v51 = vadd.f32 %v3197_v39, %v3155_v55  ;;  %v3157_v56 = vadd.f32 %v3156_v49, %v2463_v40  ;;  %v3199_v4 = vpop.f32.mrf.mxu1 }
 0x4aa   :  { %6974 = vtanh.f32 %v3198_v51  ;;  %v3200_v5 = vadd.f32 %v3199_v4, %v3157_v56 }
 0x4ac   :  { %6976 = vtanh.f32 %v3200_v5 }
 0x4b3   :  { %v7929_v53 = vpop.eup %6970 }
 0x4b5   :  { %v6973_v63 = vpop.eup %6972 }
 0x4b7   :  { %v7931_v0 = vpop.eup %6974 }
 0x4b9   :  { %v6977_v18 = vpop.eup %6976 }
 0x4e1   :  { %v3236_v24 = vpop.f32.mrf.mxu0 }
 0x4e2   :  { %v3279_v25 = vpop.f32.mrf.mxu1  ;;  %v3237_v26 = vadd.f32 %v3236_v24, %v2467_v21 }
 0x4e3   :  { %v3238_v27 = vpop.f32.mrf.mxu0 }
 0x4e4   :  { %v3281_v28 = vpop.f32.mrf.mxu1  ;;  %v3280_v29 = vadd.f32 %v3279_v25, %v3237_v26  ;;  %v3239_v30 = vadd.f32 %v3238_v27, %v2471_v23 }
 0x4e5   :  { %v3240_v35 = vpop.f32.mrf.mxu0 }
 0x4e6   :  { %v3283_v36 = vpop.f32.mrf.mxu1  ;;  %6978 = vtanh.f32 %v3280_v29  ;;  %v3282_v37 = vadd.f32 %v3281_v28, %v3239_v30  ;;  %v3241_v38 = vadd.f32 %v3240_v35, %v2467_v21 }
 0x4e7   :  { %v3242_v31 = vpop.f32.mrf.mxu0 }
 0x4e8   :  { %6980 = vtanh.f32 %v3282_v37  ;;  %v3284_v32 = vadd.f32 %v3283_v36, %v3241_v38  ;;  %v3243_v33 = vadd.f32 %v3242_v31, %v2471_v23  ;;  %v3285_v34 = vpop.f32.mrf.mxu1 }
 0x4ea   :  { %6982 = vtanh.f32 %v3284_v32  ;;  %v3286_v43 = vadd.f32 %v3285_v34, %v3243_v33 }
 0x4ec   :  { %6984 = vtanh.f32 %v3286_v43 }
 0x4f3   :  { %v7935_v44 = vpop.eup %6978 }
 0x4f5   :  { %v6981_v50 = vpop.eup %6980 }
 0x4f7   :  { %v7937_v54 = vpop.eup %6982 }
 0x4f9   :  { %v6985_v57 = vpop.eup %6984 }
 0x4fa   :  { %7652 = dma.done.wait [#allocation3 + $0x1], 16384 }
 0x4fb   :  { %7653 = vsyncadd [#allocation3 + $0x1], 4294950912  ;;  %s3298_s16 = scalar_lea.hbm %s8258_s3, 65536  ;;  %v7942_v58 = vpack.c.bf16 %v6977_v18, %v6973_v63  ;;  %v7944_v59 = vpack.c.bf16 %v6985_v57, %v6981_v50 }
 0x4fc   :  { %7636 = shalt.err (!%p7753_p6)  }
 0x4fd   :  { %3309 = dma.hbm_to_vmem [thread:$0]  %s3298_s16, 16384, %s7744_s20, [#allocation3]  ;;  %4137 = vmatprep.mubr.bf16.mxu0 %v7942_v58  ;;  %4180 = vmatprep.mubr.bf16.mxu1 %v7944_v59 }
 0x4fe   :  { %v6986_v60 = vld [vmem:[#allocation2 + $0x4e4] ss:$16 sps:$4 sm:$0xff]   ;;  %v6990_v62 = vld [vmem:[#allocation2 + $0x4e0] ss:$16 sps:$4 sm:$0xff]  }
 0x4ff   :  { %v6988_v61 = vld [vmem:[#allocation2 + $0x6e4] ss:$16 sps:$4 sm:$0xff]   ;;  %4105 = vmatprep.subr.bf16.mxu0 %v6986_v60  ;;  %v6991_v1 = vld [vmem:[#allocation2 + $0x6e0] ss:$16 sps:$4 sm:$0xff]  }
 0x500   :  { %4148 = vmatprep.subr.bf16.mxu1 %v6988_v61  ;;  %v6992_v2 = vld [vmem:[#allocation2 + $0x4c4] ss:$16 sps:$4 sm:$0xff]   ;;  %4106 = vmatpush1.bf16.msra.mxu0 %v6990_v62  ;;  %v6996_v6 = vld [vmem:[#allocation2 + $0x4c0] ss:$16 sps:$4 sm:$0xff]  }
 0x501   :  { %4149 = vmatpush1.bf16.msra.mxu1 %v6991_v1  ;;  %v6994_v3 = vld [vmem:[#allocation2 + $0x6c4] ss:$16 sps:$4 sm:$0xff]   ;;  %4107 = vmatprep.subr.bf16.mxu0 %v6992_v2  ;;  %v6997_v45 = vld [vmem:[#allocation2 + $0x6c0] ss:$16 sps:$4 sm:$0xff]  }
 0x502   :  { %4150 = vmatprep.subr.bf16.mxu1 %v6994_v3  ;;  %v6998_v47 = vld [vmem:[#allocation2 + $0x4a4] ss:$16 sps:$4 sm:$0xff]   ;;  %v7002_v20 = vld [vmem:[#allocation2 + $0x4a0] ss:$16 sps:$4 sm:$0xff]  }
 0x503   :  { %v7000_v7 = vld [vmem:[#allocation2 + $0x6a4] ss:$16 sps:$4 sm:$0xff]   ;;  %v7003_v22 = vld [vmem:[#allocation2 + $0x6a0] ss:$16 sps:$4 sm:$0xff]  }
 0x504   :  { %4108 = vmatpush1.bf16.msra.mxu0 %v6996_v6  ;;  %v7004_v48 = vld [vmem:[#allocation2 + $0x484] ss:$16 sps:$4 sm:$0xff]   ;;  %v7008_v12 = vld [vmem:[#allocation2 + $0x480] ss:$16 sps:$4 sm:$0xff]  }
 0x505   :  { %4151 = vmatpush1.bf16.msra.mxu1 %v6997_v45  ;;  %4109 = vmatprep.subr.bf16.mxu0 %v6998_v47  ;;  %v7006_v52 = vld [vmem:[#allocation2 + $0x684] ss:$16 sps:$4 sm:$0xff]   ;;  %v7009_v40 = vld [vmem:[#allocation2 + $0x680] ss:$16 sps:$4 sm:$0xff]  }
 0x506   :  { %4152 = vmatprep.subr.bf16.mxu1 %v7000_v7  ;;  %v7010_v19 = vld [vmem:[#allocation2 + $0x464] ss:$16 sps:$4 sm:$0xff]   ;;  %v7014_v41 = vld [vmem:[#allocation2 + $0x460] ss:$16 sps:$4 sm:$0xff]  }
 0x507   :  { %v7012_v46 = vld [vmem:[#allocation2 + $0x664] ss:$16 sps:$4 sm:$0xff]   ;;  %v7015_v13 = vld [vmem:[#allocation2 + $0x660] ss:$16 sps:$4 sm:$0xff]  }
 0x508   :  { %4110 = vmatpush1.bf16.msra.mxu0 %v7002_v20  ;;  %v7016_v14 = vld [vmem:[#allocation2 + $0x444] ss:$16 sps:$4 sm:$0xff]   ;;  %v7020_v16 = vld [vmem:[#allocation2 + $0x440] ss:$16 sps:$4 sm:$0xff]   ;;  %v7084_v20 = vld [vmem:[#allocation2 + $0x4ec] ss:$16 sps:$4 sm:$0xff]  }
 0x509   :  { %4153 = vmatpush1.bf16.msra.mxu1 %v7003_v22  ;;  %4111 = vmatprep.subr.bf16.mxu0 %v7004_v48  ;;  %v7018_v15 = vld [vmem:[#allocation2 + $0x644] ss:$16 sps:$4 sm:$0xff]   ;;  %v7021_v17 = vld [vmem:[#allocation2 + $0x640] ss:$16 sps:$4 sm:$0xff]   ;;  %v7087_v22 = vld [vmem:[#allocation2 + $0x6ec] ss:$16 sps:$4 sm:$0xff]   ;;  %v7953_v48 = vpack.c.bf16 %v7931_v0, %v7929_v53 }
 0x50a   :  { %4154 = vmatprep.subr.bf16.mxu1 %v7006_v52  ;;  %v7022_v39 = vld [vmem:[#allocation2 + $0x424] ss:$16 sps:$4 sm:$0xff]   ;;  %v7026_v55 = vld [vmem:[#allocation2 + $0x420] ss:$16 sps:$4 sm:$0xff]   ;;  %v7957_v52 = vpack.c.bf16 %v7937_v54, %v7935_v44  ;;  %v7096_v53 = vld [vmem:[#allocation2 + $0x4ac] ss:$16 sps:$4 sm:$0xff]  }
 0x50b   :  { %v7024_v42 = vld [vmem:[#allocation2 + $0x624] ss:$16 sps:$4 sm:$0xff]   ;;  %v7027_v49 = vld [vmem:[#allocation2 + $0x620] ss:$16 sps:$4 sm:$0xff]   ;;  %v7099_v0 = vld [vmem:[#allocation2 + $0x6ac] ss:$16 sps:$4 sm:$0xff]  }
 0x50c   :  { %4112 = vmatpush1.bf16.msra.mxu0 %v7008_v12  ;;  %v7028_v51 = vld [vmem:[#allocation2 + $0x404] ss:$16 sps:$4 sm:$0xff]   ;;  %v7032_v4 = vld [vmem:[#allocation2 + $0x400] ss:$16 sps:$4 sm:$0xff]   ;;  %v7082_v12 = vld [vmem:[#allocation2 + $0x4e8] ss:$16 sps:$4 sm:$0xff]  }
 0x50d   :  { %4155 = vmatpush1.bf16.msra.mxu1 %v7009_v40  ;;  %4113 = vmatprep.subr.bf16.mxu0 %v7010_v19  ;;  %v7030_v56 = vld [vmem:[#allocation2 + $0x604] ss:$16 sps:$4 sm:$0xff]   ;;  %v7033_v5 = vld [vmem:[#allocation2 + $0x600] ss:$16 sps:$4 sm:$0xff]   ;;  %v7085_v40 = vld [vmem:[#allocation2 + $0x6e8] ss:$16 sps:$4 sm:$0xff]  }
 0x50e   :  { %4156 = vmatprep.subr.bf16.mxu1 %v7012_v46  ;;  %v7034_v63 = vld [vmem:[#allocation2 + $0x5e4] ss:$16 sps:$4 sm:$0xff]   ;;  %v7038_v21 = vld [vmem:[#allocation2 + $0x5e0] ss:$16 sps:$4 sm:$0xff]   ;;  %v7090_v19 = vld [vmem:[#allocation2 + $0x4cc] ss:$16 sps:$4 sm:$0xff]  }
 0x50f   :  { %v7036_v18 = vld [vmem:[#allocation2 + $0x7e4] ss:$16 sps:$4 sm:$0xff]   ;;  %v7039_v23 = vld [vmem:[#allocation2 + $0x7e0] ss:$16 sps:$4 sm:$0xff]   ;;  %v7093_v46 = vld [vmem:[#allocation2 + $0x6cc] ss:$16 sps:$4 sm:$0xff]  }
 0x510   :  { %4114 = vmatpush1.bf16.msra.mxu0 %v7014_v41  ;;  %v7040_v24 = vld [vmem:[#allocation2 + $0x5c4] ss:$16 sps:$4 sm:$0xff]   ;;  %v7044_v26 = vld [vmem:[#allocation2 + $0x5c0] ss:$16 sps:$4 sm:$0xff]   ;;  %v7088_v41 = vld [vmem:[#allocation2 + $0x4c8] ss:$16 sps:$4 sm:$0xff]  }
 0x511   :  { %4157 = vmatpush1.bf16.msra.mxu1 %v7015_v13  ;;  %4115 = vmatprep.subr.bf16.mxu0 %v7016_v14  ;;  %v7042_v25 = vld [vmem:[#allocation2 + $0x7c4] ss:$16 sps:$4 sm:$0xff]   ;;  %v7045_v27 = vld [vmem:[#allocation2 + $0x7c0] ss:$16 sps:$4 sm:$0xff]   ;;  %v7091_v13 = vld [vmem:[#allocation2 + $0x6c8] ss:$16 sps:$4 sm:$0xff]  }
 0x512   :  { %4158 = vmatprep.subr.bf16.mxu1 %v7018_v15  ;;  %v7046_v28 = vld [vmem:[#allocation2 + $0x5a4] ss:$16 sps:$4 sm:$0xff]   ;;  %v7050_v30 = vld [vmem:[#allocation2 + $0x5a0] ss:$16 sps:$4 sm:$0xff]   ;;  %v7094_v44 = vld [vmem:[#allocation2 + $0x4a8] ss:$16 sps:$4 sm:$0xff]  }
 0x513   :  { %v7048_v29 = vld [vmem:[#allocation2 + $0x7a4] ss:$16 sps:$4 sm:$0xff]   ;;  %v7051_v35 = vld [vmem:[#allocation2 + $0x7a0] ss:$16 sps:$4 sm:$0xff]   ;;  %v7097_v54 = vld [vmem:[#allocation2 + $0x6a8] ss:$16 sps:$4 sm:$0xff]  }
 0x514   :  { %4116 = vmatpush1.bf16.msra.mxu0 %v7020_v16  ;;  %v7052_v36 = vld [vmem:[#allocation2 + $0x584] ss:$16 sps:$4 sm:$0xff]   ;;  %v7056_v38 = vld [vmem:[#allocation2 + $0x580] ss:$16 sps:$4 sm:$0xff]   ;;  %v7102_v14 = vld [vmem:[#allocation2 + $0x48c] ss:$16 sps:$4 sm:$0xff]  }
 0x515   :  { %4159 = vmatpush1.bf16.msra.mxu1 %v7021_v17  ;;  %4117 = vmatprep.subr.bf16.mxu0 %v7022_v39  ;;  %v7054_v37 = vld [vmem:[#allocation2 + $0x784] ss:$16 sps:$4 sm:$0xff]   ;;  %v7057_v31 = vld [vmem:[#allocation2 + $0x780] ss:$16 sps:$4 sm:$0xff]   ;;  %v7105_v15 = vld [vmem:[#allocation2 + $0x68c] ss:$16 sps:$4 sm:$0xff]  }
 0x516   :  { %4160 = vmatprep.subr.bf16.mxu1 %v7024_v42  ;;  %v7058_v32 = vld [vmem:[#allocation2 + $0x564] ss:$16 sps:$4 sm:$0xff]   ;;  %v7062_v34 = vld [vmem:[#allocation2 + $0x560] ss:$16 sps:$4 sm:$0xff]   ;;  %v7100_v16 = vld [vmem:[#allocation2 + $0x488] ss:$16 sps:$4 sm:$0xff]  }
 0x517   :  { %v7060_v33 = vld [vmem:[#allocation2 + $0x764] ss:$16 sps:$4 sm:$0xff]   ;;  %v7063_v43 = vld [vmem:[#allocation2 + $0x760] ss:$16 sps:$4 sm:$0xff]   ;;  %v7103_v17 = vld [vmem:[#allocation2 + $0x688] ss:$16 sps:$4 sm:$0xff]  }
 0x518   :  { %4118 = vmatpush1.bf16.msra.mxu0 %v7026_v55  ;;  %v7064_v50 = vld [vmem:[#allocation2 + $0x544] ss:$16 sps:$4 sm:$0xff]   ;;  %v7068_v60 = vld [vmem:[#allocation2 + $0x540] ss:$16 sps:$4 sm:$0xff]   ;;  %v7108_v39 = vld [vmem:[#allocation2 + $0x46c] ss:$16 sps:$4 sm:$0xff]  }
 0x519   :  { %4161 = vmatpush1.bf16.msra.mxu1 %v7027_v49  ;;  %4119 = vmatprep.subr.bf16.mxu0 %v7028_v51  ;;  %v7066_v57 = vld [vmem:[#allocation2 + $0x744] ss:$16 sps:$4 sm:$0xff]   ;;  %v7069_v61 = vld [vmem:[#allocation2 + $0x740] ss:$16 sps:$4 sm:$0xff]   ;;  %v7111_v42 = vld [vmem:[#allocation2 + $0x66c] ss:$16 sps:$4 sm:$0xff]  }
 0x51a   :  { %4162 = vmatprep.subr.bf16.mxu1 %v7030_v56  ;;  %v7070_v62 = vld [vmem:[#allocation2 + $0x524] ss:$16 sps:$4 sm:$0xff]   ;;  %v7074_v2 = vld [vmem:[#allocation2 + $0x520] ss:$16 sps:$4 sm:$0xff]   ;;  %v7106_v55 = vld [vmem:[#allocation2 + $0x468] ss:$16 sps:$4 sm:$0xff]  }
 0x51b   :  { %v7072_v1 = vld [vmem:[#allocation2 + $0x724] ss:$16 sps:$4 sm:$0xff]   ;;  %v7075_v3 = vld [vmem:[#allocation2 + $0x720] ss:$16 sps:$4 sm:$0xff]   ;;  %v7117_v49 = vld [vmem:[#allocation2 + $0x64c] ss:$16 sps:$4 sm:$0xff]  }
 0x51c   :  { %4120 = vmatpush1.bf16.msra.mxu0 %v7032_v4  ;;  %v7076_v6 = vld [vmem:[#allocation2 + $0x504] ss:$16 sps:$4 sm:$0xff]   ;;  %v7080_v47 = vld [vmem:[#allocation2 + $0x500] ss:$16 sps:$4 sm:$0xff]   ;;  %v7112_v51 = vld [vmem:[#allocation2 + $0x448] ss:$16 sps:$4 sm:$0xff]  }
 0x51d   :  { %4163 = vmatpush1.bf16.msra.mxu1 %v7033_v5  ;;  %4121 = vmatprep.subr.bf16.mxu0 %v7034_v63  ;;  %v7078_v45 = vld [vmem:[#allocation2 + $0x704] ss:$16 sps:$4 sm:$0xff]   ;;  %v7081_v7 = vld [vmem:[#allocation2 + $0x700] ss:$16 sps:$4 sm:$0xff]   ;;  %v7115_v56 = vld [vmem:[#allocation2 + $0x648] ss:$16 sps:$4 sm:$0xff]  }
 0x51e   :  { %4164 = vmatprep.subr.bf16.mxu1 %v7036_v18  ;;  %v7120_v4 = vld [vmem:[#allocation2 + $0x42c] ss:$16 sps:$4 sm:$0xff]   ;;  %v7118_v63 = vld [vmem:[#allocation2 + $0x428] ss:$16 sps:$4 sm:$0xff]  }
 0x51f   :  { %v7123_v5 = vld [vmem:[#allocation2 + $0x62c] ss:$16 sps:$4 sm:$0xff]   ;;  %v7121_v18 = vld [vmem:[#allocation2 + $0x628] ss:$16 sps:$4 sm:$0xff]  }
 0x520   :  { %4122 = vmatpush2.bf16.msra.mxu0 %v7038_v21  ;;  %v7126_v21 = vld [vmem:[#allocation2 + $0x40c] ss:$16 sps:$4 sm:$0xff]  }
 0x521   :  { %4165 = vmatpush2.bf16.msra.mxu1 %v7039_v23  ;;  %4123 = vmatprep.subr.bf16.mxu0 %v7040_v24  ;;  %v7129_v23 = vld [vmem:[#allocation2 + $0x60c] ss:$16 sps:$4 sm:$0xff]   ;;  %v7124_v24 = vld [vmem:[#allocation2 + $0x408] ss:$16 sps:$4 sm:$0xff]  }
 0x522   :  { %4166 = vmatprep.subr.bf16.mxu1 %v7042_v25  ;;  %v7127_v25 = vld [vmem:[#allocation2 + $0x608] ss:$16 sps:$4 sm:$0xff]  }
 0x524   :  { %4124 = vmatpush2.bf16.msra.mxu0 %v7044_v26  ;;  %v7132_v26 = vld [vmem:[#allocation2 + $0x5ec] ss:$16 sps:$4 sm:$0xff]  }
 0x525   :  { %4167 = vmatpush2.bf16.msra.mxu1 %v7045_v27  ;;  %4125 = vmatprep.subr.bf16.mxu0 %v7046_v28  ;;  %v7135_v27 = vld [vmem:[#allocation2 + $0x7ec] ss:$16 sps:$4 sm:$0xff]   ;;  %v7130_v28 = vld [vmem:[#allocation2 + $0x5e8] ss:$16 sps:$4 sm:$0xff]  }
 0x526   :  { %4168 = vmatprep.subr.bf16.mxu1 %v7048_v29  ;;  %v7133_v29 = vld [vmem:[#allocation2 + $0x7e8] ss:$16 sps:$4 sm:$0xff]  }
 0x528   :  { %4126 = vmatpush2.bf16.msra.mxu0 %v7050_v30  ;;  %v7138_v30 = vld [vmem:[#allocation2 + $0x5cc] ss:$16 sps:$4 sm:$0xff]  }
 0x529   :  { %4169 = vmatpush2.bf16.msra.mxu1 %v7051_v35  ;;  %4127 = vmatprep.subr.bf16.mxu0 %v7052_v36  ;;  %v7141_v35 = vld [vmem:[#allocation2 + $0x7cc] ss:$16 sps:$4 sm:$0xff]   ;;  %v7136_v36 = vld [vmem:[#allocation2 + $0x5c8] ss:$16 sps:$4 sm:$0xff]  }
 0x52a   :  { %4170 = vmatprep.subr.bf16.mxu1 %v7054_v37  ;;  %v7139_v37 = vld [vmem:[#allocation2 + $0x7c8] ss:$16 sps:$4 sm:$0xff]  }
 0x52c   :  { %4128 = vmatpush2.bf16.msra.mxu0 %v7056_v38  ;;  %v7144_v38 = vld [vmem:[#allocation2 + $0x5ac] ss:$16 sps:$4 sm:$0xff]  }
 0x52d   :  { %4171 = vmatpush2.bf16.msra.mxu1 %v7057_v31  ;;  %4129 = vmatprep.subr.bf16.mxu0 %v7058_v32  ;;  %v7147_v31 = vld [vmem:[#allocation2 + $0x7ac] ss:$16 sps:$4 sm:$0xff]   ;;  %v7142_v32 = vld [vmem:[#allocation2 + $0x5a8] ss:$16 sps:$4 sm:$0xff]  }
 0x52e   :  { %4172 = vmatprep.subr.bf16.mxu1 %v7060_v33  ;;  %v7145_v33 = vld [vmem:[#allocation2 + $0x7a8] ss:$16 sps:$4 sm:$0xff]  }
 0x530   :  { %4130 = vmatpush2.bf16.msra.mxu0 %v7062_v34  ;;  %v7150_v34 = vld [vmem:[#allocation2 + $0x58c] ss:$16 sps:$4 sm:$0xff]  }
 0x531   :  { %4173 = vmatpush2.bf16.msra.mxu1 %v7063_v43  ;;  %4131 = vmatprep.subr.bf16.mxu0 %v7064_v50  ;;  %v7153_v43 = vld [vmem:[#allocation2 + $0x78c] ss:$16 sps:$4 sm:$0xff]   ;;  %v7148_v50 = vld [vmem:[#allocation2 + $0x588] ss:$16 sps:$4 sm:$0xff]  }
 0x532   :  { %4174 = vmatprep.subr.bf16.mxu1 %v7066_v57  ;;  %v7151_v57 = vld [vmem:[#allocation2 + $0x788] ss:$16 sps:$4 sm:$0xff]  }
 0x534   :  { %4132 = vmatpush2.bf16.msra.mxu0 %v7068_v60  ;;  %v7156_v60 = vld [vmem:[#allocation2 + $0x56c] ss:$16 sps:$4 sm:$0xff]  }
 0x535   :  { %4175 = vmatpush2.bf16.msra.mxu1 %v7069_v61  ;;  %4133 = vmatprep.subr.bf16.mxu0 %v7070_v62  ;;  %v7159_v61 = vld [vmem:[#allocation2 + $0x76c] ss:$16 sps:$4 sm:$0xff]   ;;  %v7154_v62 = vld [vmem:[#allocation2 + $0x568] ss:$16 sps:$4 sm:$0xff]  }
 0x536   :  { %4176 = vmatprep.subr.bf16.mxu1 %v7072_v1  ;;  %v7157_v1 = vld [vmem:[#allocation2 + $0x768] ss:$16 sps:$4 sm:$0xff]  }
 0x538   :  { %4134 = vmatpush2.bf16.msra.mxu0 %v7074_v2  ;;  %v7162_v2 = vld [vmem:[#allocation2 + $0x54c] ss:$16 sps:$4 sm:$0xff]  }
 0x539   :  { %4177 = vmatpush2.bf16.msra.mxu1 %v7075_v3  ;;  %4135 = vmatprep.subr.bf16.mxu0 %v7076_v6  ;;  %v7165_v3 = vld [vmem:[#allocation2 + $0x74c] ss:$16 sps:$4 sm:$0xff]   ;;  %v7160_v6 = vld [vmem:[#allocation2 + $0x548] ss:$16 sps:$4 sm:$0xff]  }
 0x53a   :  { %4178 = vmatprep.subr.bf16.mxu1 %v7078_v45  ;;  %v7163_v45 = vld [vmem:[#allocation2 + $0x748] ss:$16 sps:$4 sm:$0xff]  }
 0x53c   :  { %4136 = vmatpush2.bf16.msra.mxu0 %v7080_v47  ;;  %v7168_v47 = vld [vmem:[#allocation2 + $0x52c] ss:$16 sps:$4 sm:$0xff]  }
 0x53d   :  { %4179 = vmatpush2.bf16.msra.mxu1 %v7081_v7  ;;  %4191 = vmatprep.subr.bf16.mxu0 %v7084_v20  ;;  %v7171_v7 = vld [vmem:[#allocation2 + $0x72c] ss:$16 sps:$4 sm:$0xff]   ;;  %v7166_v20 = vld [vmem:[#allocation2 + $0x528] ss:$16 sps:$4 sm:$0xff]  }
 0x53e   :  { %4234 = vmatprep.subr.bf16.mxu1 %v7087_v22  ;;  %v7169_v22 = vld [vmem:[#allocation2 + $0x728] ss:$16 sps:$4 sm:$0xff]  }
 0x53f   :  { %4138 = vmatmul.mubr.bf16.vlgmr.msra.gmra.mxu0 %v7953_v48 }
 0x540   :  { %4181 = vmatmul.mubr.bf16.vlgmr.msra.gmra.mxu1 %v7957_v52  ;;  %4192 = vmatpush1.bf16.msra.mxu0 %v7082_v12  ;;  %v7174_v12 = vld [vmem:[#allocation2 + $0x50c] ss:$16 sps:$4 sm:$0xff]  }
 0x541   :  { %4235 = vmatpush1.bf16.msra.mxu1 %v7085_v40  ;;  %4193 = vmatprep.subr.bf16.mxu0 %v7090_v19  ;;  %v7177_v40 = vld [vmem:[#allocation2 + $0x70c] ss:$16 sps:$4 sm:$0xff]   ;;  %v7172_v19 = vld [vmem:[#allocation2 + $0x508] ss:$16 sps:$4 sm:$0xff]  }
 0x542   :  { %4236 = vmatprep.subr.bf16.mxu1 %v7093_v46  ;;  %4223 = vmatprep.mubr.bf16.mxu0 %v7942_v58  ;;  %v7109_v58 = vld [vmem:[#allocation2 + $0x668] ss:$16 sps:$4 sm:$0xff]  }
 0x543   :  { %4266 = vmatprep.mubr.bf16.mxu1 %v7944_v59  ;;  %v7114_v59 = vld [vmem:[#allocation2 + $0x44c] ss:$16 sps:$4 sm:$0xff]   ;;  %v7175_v46 = vld [vmem:[#allocation2 + $0x708] ss:$16 sps:$4 sm:$0xff]  }
 0x544   :  { %4194 = vmatpush1.bf16.msra.mxu0 %v7088_v41  ;;  %v3443_v41 = vld [vmem:[#allocation8 + $0xc] sm:$0xf] }
 0x545   :  { %4237 = vmatpush1.bf16.msra.mxu1 %v7091_v13  ;;  %4195 = vmatprep.subr.bf16.mxu0 %v7096_v53  ;;  %v3448_v13 = vrot.slane %v3443_v41, %v7763_v8  ;;  %v3452_v53 = vrot.slane %v3443_v41, %v7765_v9 }
 0x546   :  { %4238 = vmatprep.subr.bf16.mxu1 %v7099_v0 }
 0x548   :  { %4196 = vmatpush1.bf16.msra.mxu0 %v7094_v44 }
 0x549   :  { %4239 = vmatpush1.bf16.msra.mxu1 %v7097_v54  ;;  %4197 = vmatprep.subr.bf16.mxu0 %v7102_v14 }
 0x54a   :  { %4240 = vmatprep.subr.bf16.mxu1 %v7105_v15 }
 0x54c   :  { %4198 = vmatpush1.bf16.msra.mxu0 %v7100_v16 }
 0x54d   :  { %4241 = vmatpush1.bf16.msra.mxu1 %v7103_v17  ;;  %4199 = vmatprep.subr.bf16.mxu0 %v7108_v39 }
 0x54e   :  { %4242 = vmatprep.subr.bf16.mxu1 %v7111_v42 }
 0x550   :  { %4200 = vmatpush1.bf16.msra.mxu0 %v7106_v55 }
 0x551   :  { %4243 = vmatpush1.bf16.msra.mxu1 %v7109_v58  ;;  %4201 = vmatprep.subr.bf16.mxu0 %v7114_v59 }
 0x552   :  { %4244 = vmatprep.subr.bf16.mxu1 %v7117_v49 }
 0x554   :  { %4202 = vmatpush1.bf16.msra.mxu0 %v7112_v51 }
 0x555   :  { %4245 = vmatpush1.bf16.msra.mxu1 %v7115_v56  ;;  %4203 = vmatprep.subr.bf16.mxu0 %v7120_v4 }
 0x556   :  { %4246 = vmatprep.subr.bf16.mxu1 %v7123_v5 }
 0x558   :  { %4204 = vmatpush1.bf16.msra.mxu0 %v7118_v63 }
 0x559   :  { %4247 = vmatpush1.bf16.msra.mxu1 %v7121_v18  ;;  %4205 = vmatprep.subr.bf16.mxu0 %v7126_v21  ;;  %v3456_v18 = vrot.slane %v3443_v41, %v7767_v10  ;;  %v3460_v21 = vrot.slane %v3443_v41, %v7769_v11 }
 0x55a   :  { %4248 = vmatprep.subr.bf16.mxu1 %v7129_v23 }
 0x55c   :  { %4206 = vmatpush1.bf16.msra.mxu0 %v7124_v24 }
 0x55d   :  { %4249 = vmatpush1.bf16.msra.mxu1 %v7127_v25  ;;  %4207 = vmatprep.subr.bf16.mxu0 %v7132_v26 }
 0x55e   :  { %4250 = vmatprep.subr.bf16.mxu1 %v7135_v27 }
 0x560   :  { %4208 = vmatpush2.bf16.msra.mxu0 %v7130_v28 }
 0x561   :  { %4251 = vmatpush2.bf16.msra.mxu1 %v7133_v29  ;;  %4209 = vmatprep.subr.bf16.mxu0 %v7138_v30 }
 0x562   :  { %4252 = vmatprep.subr.bf16.mxu1 %v7141_v35 }
 0x564   :  { %4210 = vmatpush2.bf16.msra.mxu0 %v7136_v36 }
 0x565   :  { %4253 = vmatpush2.bf16.msra.mxu1 %v7139_v37  ;;  %4211 = vmatprep.subr.bf16.mxu0 %v7144_v38 }
 0x566   :  { %4254 = vmatprep.subr.bf16.mxu1 %v7147_v31 }
 0x568   :  { %4212 = vmatpush2.bf16.msra.mxu0 %v7142_v32 }
 0x569   :  { %4255 = vmatpush2.bf16.msra.mxu1 %v7145_v33  ;;  %4213 = vmatprep.subr.bf16.mxu0 %v7150_v34 }
 0x56a   :  { %4256 = vmatprep.subr.bf16.mxu1 %v7153_v43 }
 0x56c   :  { %4214 = vmatpush2.bf16.msra.mxu0 %v7148_v50 }
 0x56d   :  { %4257 = vmatpush2.bf16.msra.mxu1 %v7151_v57  ;;  %4215 = vmatprep.subr.bf16.mxu0 %v7156_v60 }
 0x56e   :  { %4258 = vmatprep.subr.bf16.mxu1 %v7159_v61 }
 0x570   :  { %4216 = vmatpush2.bf16.msra.mxu0 %v7154_v62 }
 0x571   :  { %4259 = vmatpush2.bf16.msra.mxu1 %v7157_v1  ;;  %4217 = vmatprep.subr.bf16.mxu0 %v7162_v2 }
 0x572   :  { %4260 = vmatprep.subr.bf16.mxu1 %v7165_v3 }
 0x574   :  { %4218 = vmatpush2.bf16.msra.mxu0 %v7160_v6 }
 0x575   :  { %4261 = vmatpush2.bf16.msra.mxu1 %v7163_v45  ;;  %4219 = vmatprep.subr.bf16.mxu0 %v7168_v47 }
 0x576   :  { %4262 = vmatprep.subr.bf16.mxu1 %v7171_v7 }
 0x578   :  { %4220 = vmatpush2.bf16.msra.mxu0 %v7166_v20 }
 0x579   :  { %4263 = vmatpush2.bf16.msra.mxu1 %v7169_v22  ;;  %4221 = vmatprep.subr.bf16.mxu0 %v7174_v12 }
 0x57a   :  { %4264 = vmatprep.subr.bf16.mxu1 %v7177_v40 }
 0x57c   :  { %4222 = vmatpush2.bf16.msra.mxu0 %v7172_v19 }
 0x57d   :  { %4265 = vmatpush2.bf16.msra.mxu1 %v7175_v46 }
 0x57f   :  { %4224 = vmatmul.mubr.bf16.vlgmr.msra.gmra.mxu0 %v7953_v48 }
 0x580   :  { %4267 = vmatmul.mubr.bf16.vlgmr.msra.gmra.mxu1 %v7957_v52 }
 0x5ff   :  { %v4139_v0 = vpop.f32.mrf.mxu0 }
 0x600   :  { %v4182_v44 = vpop.f32.mrf.mxu1  ;;  %v4140_v54 = vadd.f32 %v4139_v0, %v3448_v13 }
 0x601   :  { %v4141_v14 = vpop.f32.mrf.mxu0 }
 0x602   :  { %v4184_v15 = vpop.f32.mrf.mxu1  ;;  %v4183_v16 = vadd.f32 %v4182_v44, %v4140_v54  ;;  %v4142_v17 = vadd.f32 %v4141_v14, %v3452_v53 }
 0x603   :  { %v4143_v39 = vpop.f32.mrf.mxu0 }
 0x604   :  { %v4186_v42 = vpop.f32.mrf.mxu1  ;;  %7178 = vtanh.f32 %v4183_v16  ;;  %v4185_v55 = vadd.f32 %v4184_v15, %v4142_v17  ;;  %v4144_v58 = vadd.f32 %v4143_v39, %v3448_v13 }
 0x605   :  { %v4145_v48 = vpop.f32.mrf.mxu0 }
 0x606   :  { %7180 = vtanh.f32 %v4185_v55  ;;  %v4187_v52 = vadd.f32 %v4186_v42, %v4144_v58  ;;  %v4146_v59 = vadd.f32 %v4145_v48, %v3452_v53  ;;  %v4188_v49 = vpop.f32.mrf.mxu1 }
 0x608   :  { %7182 = vtanh.f32 %v4187_v52  ;;  %v4189_v51 = vadd.f32 %v4188_v49, %v4146_v59 }
 0x60a   :  { %7184 = vtanh.f32 %v4189_v51 }
 0x611   :  { %v7967_v56 = vpop.eup %7178 }
 0x613   :  { %v7181_v4 = vpop.eup %7180 }
 0x615   :  { %v7969_v5 = vpop.eup %7182 }
 0x617   :  { %v7185_v63 = vpop.eup %7184 }
 0x63f   :  { %v4225_v23 = vpop.f32.mrf.mxu0 }
 0x640   :  { %v4268_v24 = vpop.f32.mrf.mxu1  ;;  %v4226_v25 = vadd.f32 %v4225_v23, %v3456_v18 }
 0x641   :  { %v4227_v26 = vpop.f32.mrf.mxu0 }
 0x642   :  { %v4270_v27 = vpop.f32.mrf.mxu1  ;;  %v4269_v28 = vadd.f32 %v4268_v24, %v4226_v25  ;;  %v4228_v29 = vadd.f32 %v4227_v26, %v3460_v21 }
 0x643   :  { %v4229_v30 = vpop.f32.mrf.mxu0 }
 0x644   :  { %v4272_v35 = vpop.f32.mrf.mxu1  ;;  %7186 = vtanh.f32 %v4269_v28  ;;  %v4271_v36 = vadd.f32 %v4270_v27, %v4228_v29  ;;  %v4230_v37 = vadd.f32 %v4229_v30, %v3456_v18 }
 0x645   :  { %v4231_v38 = vpop.f32.mrf.mxu0 }
 0x646   :  { %7188 = vtanh.f32 %v4271_v36  ;;  %v4273_v31 = vadd.f32 %v4272_v35, %v4230_v37  ;;  %v4232_v32 = vadd.f32 %v4231_v38, %v3460_v21  ;;  %v4274_v33 = vpop.f32.mrf.mxu1 }
 0x648   :  { %7190 = vtanh.f32 %v4273_v31  ;;  %v4275_v34 = vadd.f32 %v4274_v33, %v4232_v32 }
 0x64a   :  { %7192 = vtanh.f32 %v4275_v34 }
 0x651   :  { %v7973_v43 = vpop.eup %7186 }
 0x653   :  { %v7189_v50 = vpop.eup %7188 }
 0x655   :  { %v7975_v57 = vpop.eup %7190 }
 0x657   :  { %v7193_v60 = vpop.eup %7192 }
 0x658   :  { %7654 = dma.done.wait [#allocation3], 16384 }
 0x659   :  { %7655 = vsyncadd [#allocation3], 4294950912  ;;  %v7977_v61 = vpack.c.bf16 %v7185_v63, %v7181_v4  ;;  %v7979_v62 = vpack.c.bf16 %v7193_v60, %v7189_v50  ;;  %v7194_v1 = vld [vmem:[#allocation2 + $0xe4] ss:$16 sps:$4 sm:$0xff]   ;;  %v7198_v3 = vld [vmem:[#allocation2 + $0xe0] ss:$16 sps:$4 sm:$0xff]  }
 0x65a   :  { %v7196_v2 = vld [vmem:[#allocation2 + $0x2e4] ss:$16 sps:$4 sm:$0xff]   ;;  %5082 = vmatprep.subr.bf16.mxu0 %v7194_v1  ;;  %v7199_v6 = vld [vmem:[#allocation2 + $0x2e0] ss:$16 sps:$4 sm:$0xff]   ;;  %vm5599_vm0 = vcmask 15360  }
 0x65b   :  { %5114 = vmatprep.mubr.bf16.mxu0 %v7977_v61  ;;  %5157 = vmatprep.mubr.bf16.mxu1 %v7979_v62  ;;  %v7200_v45 = vld [vmem:[#allocation2 + $0xc4] ss:$16 sps:$4 sm:$0xff]   ;;  %v7204_v7 = vld [vmem:[#allocation2 + $0xc0] ss:$16 sps:$4 sm:$0xff]  }
 0x65c   :  { %5125 = vmatprep.subr.bf16.mxu1 %v7196_v2  ;;  %5083 = vmatpush1.bf16.msra.mxu0 %v7198_v3  ;;  %v7202_v47 = vld [vmem:[#allocation2 + $0x2c4] ss:$16 sps:$4 sm:$0xff]   ;;  %v7205_v20 = vld [vmem:[#allocation2 + $0x2c0] ss:$16 sps:$4 sm:$0xff]  }
 0x65d   :  { %5126 = vmatpush1.bf16.msra.mxu1 %v7199_v6  ;;  %5084 = vmatprep.subr.bf16.mxu0 %v7200_v45  ;;  %v7206_v22 = vld [vmem:[#allocation2 + $0xa4] ss:$16 sps:$4 sm:$0xff]   ;;  %v7210_v40 = vld [vmem:[#allocation2 + $0xa0] ss:$16 sps:$4 sm:$0xff]  }
 0x65e   :  { %5127 = vmatprep.subr.bf16.mxu1 %v7202_v47  ;;  %v7208_v12 = vld [vmem:[#allocation2 + $0x2a4] ss:$16 sps:$4 sm:$0xff]   ;;  %v7211_v19 = vld [vmem:[#allocation2 + $0x2a0] ss:$16 sps:$4 sm:$0xff]  }
 0x65f   :  { %v7212_v46 = vld [vmem:[#allocation2 + $0x84] ss:$16 sps:$4 sm:$0xff]   ;;  %v7216_v13 = vld [vmem:[#allocation2 + $0x80] ss:$16 sps:$4 sm:$0xff]  }
 0x660   :  { %5085 = vmatpush1.bf16.msra.mxu0 %v7204_v7  ;;  %v7214_v41 = vld [vmem:[#allocation2 + $0x284] ss:$16 sps:$4 sm:$0xff]   ;;  %v7217_v53 = vld [vmem:[#allocation2 + $0x280] ss:$16 sps:$4 sm:$0xff]  }
 0x661   :  { %5128 = vmatpush1.bf16.msra.mxu1 %v7205_v20  ;;  %5086 = vmatprep.subr.bf16.mxu0 %v7206_v22  ;;  %v7218_v0 = vld [vmem:[#allocation2 + $0x64] ss:$16 sps:$4 sm:$0xff]   ;;  %v7222_v54 = vld [vmem:[#allocation2 + $0x60] ss:$16 sps:$4 sm:$0xff]  }
 0x662   :  { %5129 = vmatprep.subr.bf16.mxu1 %v7208_v12  ;;  %v7220_v44 = vld [vmem:[#allocation2 + $0x264] ss:$16 sps:$4 sm:$0xff]   ;;  %v7223_v14 = vld [vmem:[#allocation2 + $0x260] ss:$16 sps:$4 sm:$0xff]  }
 0x663   :  { %v7224_v15 = vld [vmem:[#allocation2 + $0x44] ss:$16 sps:$4 sm:$0xff]   ;;  %v7228_v17 = vld [vmem:[#allocation2 + $0x40] ss:$16 sps:$4 sm:$0xff]  }
 0x664   :  { %5087 = vmatpush1.bf16.msra.mxu0 %v7210_v40  ;;  %v7226_v16 = vld [vmem:[#allocation2 + $0x244] ss:$16 sps:$4 sm:$0xff]   ;;  %v7229_v39 = vld [vmem:[#allocation2 + $0x240] ss:$16 sps:$4 sm:$0xff]   ;;  %v7292_v40 = vld [vmem:[#allocation2 + $0xec] ss:$16 sps:$4 sm:$0xff]  }
 0x665   :  { %5130 = vmatpush1.bf16.msra.mxu1 %v7211_v19  ;;  %5088 = vmatprep.subr.bf16.mxu0 %v7212_v46  ;;  %v7230_v42 = vld [vmem:[#allocation2 + $0x24] ss:$16 sps:$4 sm:$0xff]   ;;  %v7234_v58 = vld [vmem:[#allocation2 + $0x20] ss:$16 sps:$4 sm:$0xff]   ;;  %v7295_v19 = vld [vmem:[#allocation2 + $0x2ec] ss:$16 sps:$4 sm:$0xff]   ;;  %v7985_v46 = vpack.c.bf16 %v7969_v5, %v7967_v56 }
 0x666   :  { %5131 = vmatprep.subr.bf16.mxu1 %v7214_v41  ;;  %v7232_v55 = vld [vmem:[#allocation2 + $0x224] ss:$16 sps:$4 sm:$0xff]   ;;  %v7235_v48 = vld [vmem:[#allocation2 + $0x220] ss:$16 sps:$4 sm:$0xff]   ;;  %v7989_v41 = vpack.c.bf16 %v7975_v57, %v7973_v43  ;;  %v7304_v56 = vld [vmem:[#allocation2 + $0xac] ss:$16 sps:$4 sm:$0xff]  }
 0x667   :  { %v7236_v52 = vld [vmem:[#allocation2 + $0x4] ss:$16 sps:$4 sm:$0xff]   ;;  %v7240_v49 = vld [vmem:[#allocation2] ss:$16 sps:$4 sm:$0xff]   ;;  %v7307_v5 = vld [vmem:[#allocation2 + $0x2ac] ss:$16 sps:$4 sm:$0xff]  }
 0x668   :  { %5089 = vmatpush1.bf16.msra.mxu0 %v7216_v13  ;;  %v7238_v59 = vld [vmem:[#allocation2 + $0x204] ss:$16 sps:$4 sm:$0xff]   ;;  %v7241_v51 = vld [vmem:[#allocation2 + $0x200] ss:$16 sps:$4 sm:$0xff]   ;;  %v7290_v13 = vld [vmem:[#allocation2 + $0xe8] ss:$16 sps:$4 sm:$0xff]  }
 0x669   :  { %5132 = vmatpush1.bf16.msra.mxu1 %v7217_v53  ;;  %5090 = vmatprep.subr.bf16.mxu0 %v7218_v0  ;;  %v7242_v4 = vld [vmem:[#allocation2 + $0x1e4] ss:$16 sps:$4 sm:$0xff]   ;;  %v7246_v18 = vld [vmem:[#allocation2 + $0x1e0] ss:$16 sps:$4 sm:$0xff]   ;;  %v7293_v53 = vld [vmem:[#allocation2 + $0x2e8] ss:$16 sps:$4 sm:$0xff]  }
 0x66a   :  { %5133 = vmatprep.subr.bf16.mxu1 %v7220_v44  ;;  %v7244_v63 = vld [vmem:[#allocation2 + $0x3e4] ss:$16 sps:$4 sm:$0xff]   ;;  %v7247_v21 = vld [vmem:[#allocation2 + $0x3e0] ss:$16 sps:$4 sm:$0xff]   ;;  %v7298_v0 = vld [vmem:[#allocation2 + $0xcc] ss:$16 sps:$4 sm:$0xff]  }
 0x66b   :  { %v7248_v23 = vld [vmem:[#allocation2 + $0x1c4] ss:$16 sps:$4 sm:$0xff]   ;;  %v7252_v25 = vld [vmem:[#allocation2 + $0x1c0] ss:$16 sps:$4 sm:$0xff]   ;;  %v7301_v44 = vld [vmem:[#allocation2 + $0x2cc] ss:$16 sps:$4 sm:$0xff]  }
 0x66c   :  { %5091 = vmatpush1.bf16.msra.mxu0 %v7222_v54  ;;  %v7250_v24 = vld [vmem:[#allocation2 + $0x3c4] ss:$16 sps:$4 sm:$0xff]   ;;  %v7253_v26 = vld [vmem:[#allocation2 + $0x3c0] ss:$16 sps:$4 sm:$0xff]   ;;  %v7296_v54 = vld [vmem:[#allocation2 + $0xc8] ss:$16 sps:$4 sm:$0xff]  }
 0x66d   :  { %5134 = vmatpush1.bf16.msra.mxu1 %v7223_v14  ;;  %5092 = vmatprep.subr.bf16.mxu0 %v7224_v15  ;;  %v7254_v27 = vld [vmem:[#allocation2 + $0x1a4] ss:$16 sps:$4 sm:$0xff]   ;;  %v7258_v29 = vld [vmem:[#allocation2 + $0x1a0] ss:$16 sps:$4 sm:$0xff]   ;;  %v7299_v14 = vld [vmem:[#allocation2 + $0x2c8] ss:$16 sps:$4 sm:$0xff]  }
 0x66e   :  { %5135 = vmatprep.subr.bf16.mxu1 %v7226_v16  ;;  %v7256_v28 = vld [vmem:[#allocation2 + $0x3a4] ss:$16 sps:$4 sm:$0xff]   ;;  %v7259_v30 = vld [vmem:[#allocation2 + $0x3a0] ss:$16 sps:$4 sm:$0xff]   ;;  %v7302_v43 = vld [vmem:[#allocation2 + $0xa8] ss:$16 sps:$4 sm:$0xff]  }
 0x66f   :  { %v7260_v35 = vld [vmem:[#allocation2 + $0x184] ss:$16 sps:$4 sm:$0xff]   ;;  %v7264_v37 = vld [vmem:[#allocation2 + $0x180] ss:$16 sps:$4 sm:$0xff]   ;;  %v7305_v57 = vld [vmem:[#allocation2 + $0x2a8] ss:$16 sps:$4 sm:$0xff]  }
 0x670   :  { %5093 = vmatpush1.bf16.msra.mxu0 %v7228_v17  ;;  %v7262_v36 = vld [vmem:[#allocation2 + $0x384] ss:$16 sps:$4 sm:$0xff]   ;;  %v7265_v38 = vld [vmem:[#allocation2 + $0x380] ss:$16 sps:$4 sm:$0xff]   ;;  %v7310_v15 = vld [vmem:[#allocation2 + $0x8c] ss:$16 sps:$4 sm:$0xff]  }
 0x671   :  { %5136 = vmatpush1.bf16.msra.mxu1 %v7229_v39  ;;  %5094 = vmatprep.subr.bf16.mxu0 %v7230_v42  ;;  %v7266_v31 = vld [vmem:[#allocation2 + $0x164] ss:$16 sps:$4 sm:$0xff]   ;;  %v7270_v33 = vld [vmem:[#allocation2 + $0x160] ss:$16 sps:$4 sm:$0xff]   ;;  %v7313_v16 = vld [vmem:[#allocation2 + $0x28c] ss:$16 sps:$4 sm:$0xff]  }
 0x672   :  { %5137 = vmatprep.subr.bf16.mxu1 %v7232_v55  ;;  %v7268_v32 = vld [vmem:[#allocation2 + $0x364] ss:$16 sps:$4 sm:$0xff]   ;;  %v7271_v34 = vld [vmem:[#allocation2 + $0x360] ss:$16 sps:$4 sm:$0xff]   ;;  %v7308_v17 = vld [vmem:[#allocation2 + $0x88] ss:$16 sps:$4 sm:$0xff]  }
 0x673   :  { %v7272_v50 = vld [vmem:[#allocation2 + $0x144] ss:$16 sps:$4 sm:$0xff]   ;;  %v7276_v1 = vld [vmem:[#allocation2 + $0x140] ss:$16 sps:$4 sm:$0xff]   ;;  %v7311_v39 = vld [vmem:[#allocation2 + $0x288] ss:$16 sps:$4 sm:$0xff]  }
 0x674   :  { %5095 = vmatpush1.bf16.msra.mxu0 %v7234_v58  ;;  %v7274_v60 = vld [vmem:[#allocation2 + $0x344] ss:$16 sps:$4 sm:$0xff]   ;;  %v7277_v2 = vld [vmem:[#allocation2 + $0x340] ss:$16 sps:$4 sm:$0xff]   ;;  %v7316_v42 = vld [vmem:[#allocation2 + $0x6c] ss:$16 sps:$4 sm:$0xff]  }
 0x675   :  { %5138 = vmatpush1.bf16.msra.mxu1 %v7235_v48  ;;  %5096 = vmatprep.subr.bf16.mxu0 %v7236_v52  ;;  %v7278_v3 = vld [vmem:[#allocation2 + $0x124] ss:$16 sps:$4 sm:$0xff]   ;;  %v7282_v45 = vld [vmem:[#allocation2 + $0x120] ss:$16 sps:$4 sm:$0xff]   ;;  %v7319_v55 = vld [vmem:[#allocation2 + $0x26c] ss:$16 sps:$4 sm:$0xff]  }
 0x676   :  { %5139 = vmatprep.subr.bf16.mxu1 %v7238_v59  ;;  %v7280_v6 = vld [vmem:[#allocation2 + $0x324] ss:$16 sps:$4 sm:$0xff]   ;;  %v7283_v47 = vld [vmem:[#allocation2 + $0x320] ss:$16 sps:$4 sm:$0xff]   ;;  %v7314_v58 = vld [vmem:[#allocation2 + $0x68] ss:$16 sps:$4 sm:$0xff]  }
 0x677   :  { %v7284_v7 = vld [vmem:[#allocation2 + $0x104] ss:$16 sps:$4 sm:$0xff]   ;;  %v7288_v22 = vld [vmem:[#allocation2 + $0x100] ss:$16 sps:$4 sm:$0xff]   ;;  %v7325_v48 = vld [vmem:[#allocation2 + $0x24c] ss:$16 sps:$4 sm:$0xff]  }
 0x678   :  { %5097 = vmatpush1.bf16.msra.mxu0 %v7240_v49  ;;  %v7286_v20 = vld [vmem:[#allocation2 + $0x304] ss:$16 sps:$4 sm:$0xff]   ;;  %v7289_v12 = vld [vmem:[#allocation2 + $0x300] ss:$16 sps:$4 sm:$0xff]   ;;  %v7320_v52 = vld [vmem:[#allocation2 + $0x48] ss:$16 sps:$4 sm:$0xff]  }
 0x679   :  { %5140 = vmatpush1.bf16.msra.mxu1 %v7241_v51  ;;  %5098 = vmatprep.subr.bf16.mxu0 %v7242_v4  ;;  %v7323_v59 = vld [vmem:[#allocation2 + $0x248] ss:$16 sps:$4 sm:$0xff]   ;;  %v7328_v49 = vld [vmem:[#allocation2 + $0x2c] ss:$16 sps:$4 sm:$0xff]  }
 0x67a   :  { %5141 = vmatprep.subr.bf16.mxu1 %v7244_v63  ;;  %v7331_v51 = vld [vmem:[#allocation2 + $0x22c] ss:$16 sps:$4 sm:$0xff]   ;;  %v7326_v4 = vld [vmem:[#allocation2 + $0x28] ss:$16 sps:$4 sm:$0xff]  }
 0x67b   :  { %v7329_v63 = vld [vmem:[#allocation2 + $0x228] ss:$16 sps:$4 sm:$0xff]  }
 0x67c   :  { %5099 = vmatpush2.bf16.msra.mxu0 %v7246_v18  ;;  %v7334_v18 = vld [vmem:[#allocation2 + $0xc] ss:$16 sps:$4 sm:$0xff]  }
 0x67d   :  { %5142 = vmatpush2.bf16.msra.mxu1 %v7247_v21  ;;  %5100 = vmatprep.subr.bf16.mxu0 %v7248_v23  ;;  %v7337_v21 = vld [vmem:[#allocation2 + $0x20c] ss:$16 sps:$4 sm:$0xff]   ;;  %v7332_v23 = vld [vmem:[#allocation2 + $0x8] ss:$16 sps:$4 sm:$0xff]  }
 0x67e   :  { %5143 = vmatprep.subr.bf16.mxu1 %v7250_v24  ;;  %v7335_v24 = vld [vmem:[#allocation2 + $0x208] ss:$16 sps:$4 sm:$0xff]  }
 0x680   :  { %5101 = vmatpush2.bf16.msra.mxu0 %v7252_v25  ;;  %v7340_v25 = vld [vmem:[#allocation2 + $0x1ec] ss:$16 sps:$4 sm:$0xff]  }
 0x681   :  { %5144 = vmatpush2.bf16.msra.mxu1 %v7253_v26  ;;  %5102 = vmatprep.subr.bf16.mxu0 %v7254_v27  ;;  %v7343_v26 = vld [vmem:[#allocation2 + $0x3ec] ss:$16 sps:$4 sm:$0xff]   ;;  %v7338_v27 = vld [vmem:[#allocation2 + $0x1e8] ss:$16 sps:$4 sm:$0xff]  }
 0x682   :  { %5145 = vmatprep.subr.bf16.mxu1 %v7256_v28  ;;  %v7341_v28 = vld [vmem:[#allocation2 + $0x3e8] ss:$16 sps:$4 sm:$0xff]  }
 0x684   :  { %5103 = vmatpush2.bf16.msra.mxu0 %v7258_v29  ;;  %v7346_v29 = vld [vmem:[#allocation2 + $0x1cc] ss:$16 sps:$4 sm:$0xff]  }
 0x685   :  { %5146 = vmatpush2.bf16.msra.mxu1 %v7259_v30  ;;  %5104 = vmatprep.subr.bf16.mxu0 %v7260_v35  ;;  %v7349_v30 = vld [vmem:[#allocation2 + $0x3cc] ss:$16 sps:$4 sm:$0xff]   ;;  %v7344_v35 = vld [vmem:[#allocation2 + $0x1c8] ss:$16 sps:$4 sm:$0xff]  }
 0x686   :  { %5147 = vmatprep.subr.bf16.mxu1 %v7262_v36  ;;  %v7347_v36 = vld [vmem:[#allocation2 + $0x3c8] ss:$16 sps:$4 sm:$0xff]  }
 0x688   :  { %5105 = vmatpush2.bf16.msra.mxu0 %v7264_v37  ;;  %v7352_v37 = vld [vmem:[#allocation2 + $0x1ac] ss:$16 sps:$4 sm:$0xff]  }
 0x689   :  { %5148 = vmatpush2.bf16.msra.mxu1 %v7265_v38  ;;  %5106 = vmatprep.subr.bf16.mxu0 %v7266_v31  ;;  %v7355_v38 = vld [vmem:[#allocation2 + $0x3ac] ss:$16 sps:$4 sm:$0xff]   ;;  %v7350_v31 = vld [vmem:[#allocation2 + $0x1a8] ss:$16 sps:$4 sm:$0xff]  }
 0x68a   :  { %5149 = vmatprep.subr.bf16.mxu1 %v7268_v32  ;;  %v7353_v32 = vld [vmem:[#allocation2 + $0x3a8] ss:$16 sps:$4 sm:$0xff]  }
 0x68c   :  { %5107 = vmatpush2.bf16.msra.mxu0 %v7270_v33  ;;  %v7358_v33 = vld [vmem:[#allocation2 + $0x18c] ss:$16 sps:$4 sm:$0xff]  }
 0x68d   :  { %5150 = vmatpush2.bf16.msra.mxu1 %v7271_v34  ;;  %5108 = vmatprep.subr.bf16.mxu0 %v7272_v50  ;;  %v7361_v34 = vld [vmem:[#allocation2 + $0x38c] ss:$16 sps:$4 sm:$0xff]   ;;  %v7356_v50 = vld [vmem:[#allocation2 + $0x188] ss:$16 sps:$4 sm:$0xff]  }
 0x68e   :  { %5151 = vmatprep.subr.bf16.mxu1 %v7274_v60  ;;  %v7359_v60 = vld [vmem:[#allocation2 + $0x388] ss:$16 sps:$4 sm:$0xff]  }
 0x690   :  { %5109 = vmatpush2.bf16.msra.mxu0 %v7276_v1  ;;  %v7364_v1 = vld [vmem:[#allocation2 + $0x16c] ss:$16 sps:$4 sm:$0xff]  }
 0x691   :  { %5152 = vmatpush2.bf16.msra.mxu1 %v7277_v2  ;;  %5110 = vmatprep.subr.bf16.mxu0 %v7278_v3  ;;  %v7367_v2 = vld [vmem:[#allocation2 + $0x36c] ss:$16 sps:$4 sm:$0xff]   ;;  %v7362_v3 = vld [vmem:[#allocation2 + $0x168] ss:$16 sps:$4 sm:$0xff]  }
 0x692   :  { %5153 = vmatprep.subr.bf16.mxu1 %v7280_v6  ;;  %v7365_v6 = vld [vmem:[#allocation2 + $0x368] ss:$16 sps:$4 sm:$0xff]  }
 0x694   :  { %5111 = vmatpush2.bf16.msra.mxu0 %v7282_v45  ;;  %v7370_v45 = vld [vmem:[#allocation2 + $0x14c] ss:$16 sps:$4 sm:$0xff]  }
 0x695   :  { %5154 = vmatpush2.bf16.msra.mxu1 %v7283_v47  ;;  %5112 = vmatprep.subr.bf16.mxu0 %v7284_v7  ;;  %v7373_v47 = vld [vmem:[#allocation2 + $0x34c] ss:$16 sps:$4 sm:$0xff]   ;;  %v7368_v7 = vld [vmem:[#allocation2 + $0x148] ss:$16 sps:$4 sm:$0xff]  }
 0x696   :  { %5155 = vmatprep.subr.bf16.mxu1 %v7286_v20  ;;  %v7371_v20 = vld [vmem:[#allocation2 + $0x348] ss:$16 sps:$4 sm:$0xff]  }
 0x698   :  { %5113 = vmatpush2.bf16.msra.mxu0 %v7288_v22  ;;  %v7376_v22 = vld [vmem:[#allocation2 + $0x12c] ss:$16 sps:$4 sm:$0xff]  }
 0x699   :  { %5156 = vmatpush2.bf16.msra.mxu1 %v7289_v12  ;;  %5168 = vmatprep.subr.bf16.mxu0 %v7292_v40  ;;  %v7379_v12 = vld [vmem:[#allocation2 + $0x32c] ss:$16 sps:$4 sm:$0xff]   ;;  %v7374_v40 = vld [vmem:[#allocation2 + $0x128] ss:$16 sps:$4 sm:$0xff]  }
 0x69a   :  { %5211 = vmatprep.subr.bf16.mxu1 %v7295_v19  ;;  %v7377_v19 = vld [vmem:[#allocation2 + $0x328] ss:$16 sps:$4 sm:$0xff]  }
 0x69b   :  { %5115 = vmatmul.mubr.bf16.vlgmr.msra.gmra.mxu0 %v7985_v46 }
 0x69c   :  { %5158 = vmatmul.mubr.bf16.vlgmr.msra.gmra.mxu1 %v7989_v41  ;;  %5169 = vmatpush1.bf16.msra.mxu0 %v7290_v13  ;;  %v7382_v13 = vld [vmem:[#allocation2 + $0x10c] ss:$16 sps:$4 sm:$0xff]  }
 0x69d   :  { %5212 = vmatpush1.bf16.msra.mxu1 %v7293_v53  ;;  %5170 = vmatprep.subr.bf16.mxu0 %v7298_v0  ;;  %v7385_v53 = vld [vmem:[#allocation2 + $0x30c] ss:$16 sps:$4 sm:$0xff]   ;;  %v7380_v0 = vld [vmem:[#allocation2 + $0x108] ss:$16 sps:$4 sm:$0xff]  }
 0x69e   :  { %5213 = vmatprep.subr.bf16.mxu1 %v7301_v44  ;;  %5200 = vmatprep.mubr.bf16.mxu0 %v7977_v61  ;;  %v7317_v61 = vld [vmem:[#allocation2 + $0x268] ss:$16 sps:$4 sm:$0xff]  }
 0x69f   :  { %5243 = vmatprep.mubr.bf16.mxu1 %v7979_v62  ;;  %v7322_v62 = vld [vmem:[#allocation2 + $0x4c] ss:$16 sps:$4 sm:$0xff]   ;;  %v7383_v44 = vld [vmem:[#allocation2 + $0x308] ss:$16 sps:$4 sm:$0xff]  }
 0x6a0   :  { %5171 = vmatpush1.bf16.msra.mxu0 %v7296_v54  ;;  %v5409_v54 = vld [vmem:[%s8262_s7 + $0xf8] sm:$0xff] }
 0x6a1   :  { %5214 = vmatpush1.bf16.msra.mxu1 %v7299_v14  ;;  %5172 = vmatprep.subr.bf16.mxu0 %v7304_v56  ;;  %v5441_v14 = vld [vmem:[%s8262_s7 + $0x1f8] sm:$0xff] }
 0x6a2   :  { %5215 = vmatprep.subr.bf16.mxu1 %v7307_v5  ;;  %v4420_v5 = vld [vmem:[#allocation8 + $0x10] sm:$0xf] }
 0x6a4   :  { %5173 = vmatpush1.bf16.msra.mxu0 %v7302_v43 }
 0x6a5   :  { %5216 = vmatpush1.bf16.msra.mxu1 %v7305_v57  ;;  %5174 = vmatprep.subr.bf16.mxu0 %v7310_v15  ;;  %v4425_v57 = vrot.slane %v4420_v5, %v7763_v8 }
 0x6a6   :  { %5217 = vmatprep.subr.bf16.mxu1 %v7313_v16 }
 0x6a8   :  { %5175 = vmatpush1.bf16.msra.mxu0 %v7308_v17 }
 0x6a9   :  { %5218 = vmatpush1.bf16.msra.mxu1 %v7311_v39  ;;  %5176 = vmatprep.subr.bf16.mxu0 %v7316_v42 }
 0x6aa   :  { %5219 = vmatprep.subr.bf16.mxu1 %v7319_v55 }
 0x6ac   :  { %5177 = vmatpush1.bf16.msra.mxu0 %v7314_v58 }
 0x6ad   :  { %5220 = vmatpush1.bf16.msra.mxu1 %v7317_v61  ;;  %5178 = vmatprep.subr.bf16.mxu0 %v7322_v62 }
 0x6ae   :  { %5221 = vmatprep.subr.bf16.mxu1 %v7325_v48 }
 0x6b0   :  { %5179 = vmatpush1.bf16.msra.mxu0 %v7320_v52  ;;  %v4433_v52 = vrot.slane %v4420_v5, %v7767_v10 }
 0x6b1   :  { %5222 = vmatpush1.bf16.msra.mxu1 %v7323_v59  ;;  %5180 = vmatprep.subr.bf16.mxu0 %v7328_v49 }
 0x6b2   :  { %5223 = vmatprep.subr.bf16.mxu1 %v7331_v51  ;;  %v4437_v51 = vrot.slane %v4420_v5, %v7769_v11 }
 0x6b4   :  { %5181 = vmatpush1.bf16.msra.mxu0 %v7326_v4 }
 0x6b5   :  { %5224 = vmatpush1.bf16.msra.mxu1 %v7329_v63  ;;  %5182 = vmatprep.subr.bf16.mxu0 %v7334_v18 }
 0x6b6   :  { %5225 = vmatprep.subr.bf16.mxu1 %v7337_v21 }
 0x6b8   :  { %5183 = vmatpush1.bf16.msra.mxu0 %v7332_v23 }
 0x6b9   :  { %5226 = vmatpush1.bf16.msra.mxu1 %v7335_v24  ;;  %5184 = vmatprep.subr.bf16.mxu0 %v7340_v25 }
 0x6ba   :  { %5227 = vmatprep.subr.bf16.mxu1 %v7343_v26 }
 0x6bc   :  { %5185 = vmatpush2.bf16.msra.mxu0 %v7338_v27 }
 0x6bd   :  { %5228 = vmatpush2.bf16.msra.mxu1 %v7341_v28  ;;  %5186 = vmatprep.subr.bf16.mxu0 %v7346_v29 }
 0x6be   :  { %5229 = vmatprep.subr.bf16.mxu1 %v7349_v30 }
 0x6c0   :  { %5187 = vmatpush2.bf16.msra.mxu0 %v7344_v35 }
 0x6c1   :  { %5230 = vmatpush2.bf16.msra.mxu1 %v7347_v36  ;;  %5188 = vmatprep.subr.bf16.mxu0 %v7352_v37 }
 0x6c2   :  { %5231 = vmatprep.subr.bf16.mxu1 %v7355_v38 }
 0x6c4   :  { %5189 = vmatpush2.bf16.msra.mxu0 %v7350_v31 }
 0x6c5   :  { %5232 = vmatpush2.bf16.msra.mxu1 %v7353_v32  ;;  %5190 = vmatprep.subr.bf16.mxu0 %v7358_v33 }
 0x6c6   :  { %5233 = vmatprep.subr.bf16.mxu1 %v7361_v34 }
 0x6c8   :  { %5191 = vmatpush2.bf16.msra.mxu0 %v7356_v50 }
 0x6c9   :  { %5234 = vmatpush2.bf16.msra.mxu1 %v7359_v60  ;;  %5192 = vmatprep.subr.bf16.mxu0 %v7364_v1 }
 0x6ca   :  { %5235 = vmatprep.subr.bf16.mxu1 %v7367_v2 }
 0x6cc   :  { %5193 = vmatpush2.bf16.msra.mxu0 %v7362_v3 }
 0x6cd   :  { %5236 = vmatpush2.bf16.msra.mxu1 %v7365_v6  ;;  %5194 = vmatprep.subr.bf16.mxu0 %v7370_v45 }
 0x6ce   :  { %5237 = vmatprep.subr.bf16.mxu1 %v7373_v47 }
 0x6d0   :  { %5195 = vmatpush2.bf16.msra.mxu0 %v7368_v7 }
 0x6d1   :  { %5238 = vmatpush2.bf16.msra.mxu1 %v7371_v20  ;;  %5196 = vmatprep.subr.bf16.mxu0 %v7376_v22 }
 0x6d2   :  { %5239 = vmatprep.subr.bf16.mxu1 %v7379_v12 }
 0x6d4   :  { %5197 = vmatpush2.bf16.msra.mxu0 %v7374_v40 }
 0x6d5   :  { %5240 = vmatpush2.bf16.msra.mxu1 %v7377_v19  ;;  %5198 = vmatprep.subr.bf16.mxu0 %v7382_v13 }
 0x6d6   :  { %5241 = vmatprep.subr.bf16.mxu1 %v7385_v53 }
 0x6d8   :  { %5199 = vmatpush2.bf16.msra.mxu0 %v7380_v0 }
 0x6d9   :  { %5242 = vmatpush2.bf16.msra.mxu1 %v7383_v44  ;;  %6266 = vmatprep.subr.mxu0 %v5409_v54 }
 0x6da   :  { %6304 = vmatprep.subr.mxu1 %v5441_v14 }
 0x6db   :  { %5201 = vmatmul.mubr.bf16.vlgmr.msra.gmra.mxu0 %v7985_v46  ;;  %v4429_v46 = vrot.slane %v4420_v5, %v7765_v9 }
 0x6dc   :  { %5244 = vmatmul.mubr.bf16.vlgmr.msra.gmra.mxu1 %v7989_v41 }
 0x75b   :  { %v5116_v56 = vpop.f32.mrf.mxu0 }
 0x75c   :  { %v5159_v15 = vpop.f32.mrf.mxu1  ;;  %v5117_v41 = vadd.f32 %v5116_v56, %v4425_v57 }
 0x75d   :  { %v5118_v43 = vpop.f32.mrf.mxu0 }
 0x75e   :  { %v5161_v17 = vpop.f32.mrf.mxu1  ;;  %v5119_v39 = vadd.f32 %v5118_v43, %v4429_v46  ;;  %v5160_v55 = vadd.f32 %v5159_v15, %v5117_v41  ;;  %v5408_v41 = vld [vmem:[%s8262_s7 + $0xf0] sm:$0xff] }
 0x75f   :  { %v5120_v16 = vpop.f32.mrf.mxu0 }
 0x760   :  { %v5163_v58 = vpop.f32.mrf.mxu1  ;;  %v5162_v61 = vadd.f32 %v5161_v17, %v5119_v39  ;;  %v5121_v48 = vadd.f32 %v5120_v16, %v4425_v57  ;;  %7386 = vtanh.f32 %v5160_v55  ;;  %v5425_v16 = vld [vmem:[%s8262_s7 + $0x178] sm:$0xff]  ;;  %v5440_v17 = vld [vmem:[%s8262_s7 + $0x1f0] sm:$0xff]  ;;  %v5407_v55 = vld [vmem:[%s8262_s7 + $0xe8] sm:$0xff] }
 0x761   :  { %v5122_v42 = vpop.f32.mrf.mxu0  ;;  %6305 = vmatpush3.msra.mxu1 %v5425_v16  ;;  %v5392_v39 = vld [vmem:[%s8262_s7 + $0x70] sm:$0xff] }
 0x762   :  { %v5123_v62 = vadd.f32 %v5122_v42, %v4429_v46  ;;  %v5165_v59 = vpop.f32.mrf.mxu1  ;;  %7388 = vtanh.f32 %v5162_v61  ;;  %v5164_v4 = vadd.f32 %v5163_v58, %v5121_v48  ;;  %v5393_v46 = vld [vmem:[%s8262_s7 + $0x78] sm:$0xff]  ;;  %6306 = vmatprep.subr.mxu1 %v5440_v17  ;;  %v5424_v42 = vld [vmem:[%s8262_s7 + $0x170] sm:$0xff]  ;;  %v5439_v58 = vld [vmem:[%s8262_s7 + $0x1e8] sm:$0xff] }
 0x763   :  { %6267 = vmatpush3.msra.mxu0 %v5393_v46  ;;  %6307 = vmatpush3.msra.mxu1 %v5424_v42  ;;  %v5391_v61 = vld [vmem:[%s8262_s7 + $0x68] sm:$0xff]  ;;  %v5406_v48 = vld [vmem:[%s8262_s7 + $0xe0] sm:$0xff]  ;;  %v5380_v46 = vld [vmem:[%s8262_s7 + $0x10] sm:$0xff] }
 0x764   :  { %v5166_v49 = vadd.f32 %v5165_v59, %v5123_v62  ;;  %6268 = vmatprep.subr.mxu0 %v5408_v41  ;;  %6308 = vmatprep.subr.mxu1 %v5439_v58  ;;  %v5423_v62 = vld [vmem:[%s8262_s7 + $0x168] sm:$0xff]  ;;  %v5390_v59 = vld [vmem:[%s8262_s7 + $0x60] sm:$0xff]  ;;  %v5412_v16 = vld [vmem:[%s8262_s7 + $0x110] sm:$0xff] }
 0x765   :  { %6269 = vmatpush3.msra.mxu0 %v5392_v39  ;;  %6309 = vmatpush3.msra.mxu1 %v5423_v62  ;;  %v5395_v41 = vld [vmem:[%s8262_s7 + $0x88] sm:$0xff]  ;;  %v5426_v58 = vld [vmem:[%s8262_s7 + $0x180] sm:$0xff] }
 0x766   :  { %7390 = vtanh.f32 %v5166_v49  ;;  %6270 = vmatprep.subr.mxu0 %v5407_v55  ;;  %v5422_v49 = vld [vmem:[%s8262_s7 + $0x160] sm:$0xff]  ;;  %v5427_v17 = vld [vmem:[%s8262_s7 + $0x188] sm:$0xff] }
 0x767   :  { %7392 = vtanh.f32 %v5164_v4  ;;  %6271 = vmatpush3.msra.mxu0 %v5391_v61  ;;  %v5437_v4 = vld [vmem:[%s8262_s7 + $0x1d8] sm:$0xff]  ;;  %v5379_v39 = vld [vmem:[%s8262_s7 + $0x8] sm:$0xff]  ;;  %v5394_v55 = vld [vmem:[%s8262_s7 + $0x80] sm:$0xff] }
 0x768   :  { %6272 = vmatprep.subr.mxu0 %v5406_v48  ;;  %v5411_v42 = vld [vmem:[%s8262_s7 + $0x108] sm:$0xff]  ;;  %v5378_v61 = vld [vmem:[%s8262_s7] sm:$0xff] }
 0x769   :  { %6273 = vmatpush3.msra.mxu0 %v5390_v59  ;;  %v5410_v62 = vld [vmem:[%s8262_s7 + $0x100] sm:$0xff] }
 0x76d   :  { %v8007_v32 = vpop.eup %7386 }
 0x76e   :  { %v5272_v34 = vmul.f32 %v8007_v32, %v8007_v32 }
 0x76f   :  { %v8009_v33 = vpop.eup %7388 }
 0x770   :  { %v5273_v50 = vmul.f32 %v8009_v33, %v8009_v33  ;;  %v5262_v2 = vadd.f32 %v8009_v33, %v8007_v32 }
 0x772   :  { %v5280_v47 = vadd.f32 %v5273_v50, %v5272_v34  ;;  %v5385_v34 = vld [vmem:[%s8262_s7 + $0x38] sm:$0xff] }
 0x773   :  { %v8015_v60 = vpop.eup %7390  ;;  %v5417_v50 = vld [vmem:[%s8262_s7 + $0x138] sm:$0xff] }
 0x774   :  { %v8017_v1 = vpop.eup %7392  ;;  %v5277_v7 = vmul.f32 %v8015_v60, %v8015_v60 }
 0x775   :  { %v5276_v22 = vmul.f32 %v8017_v1, %v8017_v1  ;;  %v5267_v40 = vadd.f32 %v8017_v1, %v8015_v60 }
 0x777   :  { %v5285_v54 = vadd.f32 %v5277_v7, %v5276_v22  ;;  %v5399_v7 = vld [vmem:[%s8262_s7 + $0xa8] sm:$0xff] }
 0x778   :  { %v5431_v22 = vld [vmem:[%s8262_s7 + $0x1a8] sm:$0xff] }
 0x79b   :  { %v5202_v63 = vpop.f32.mrf.mxu0 }
 0x79c   :  { %v5245_v18 = vpop.f32.mrf.mxu1  ;;  %v5203_v21 = vadd.f32 %v5202_v63, %v4433_v52  ;;  %v5389_v63 = vld [vmem:[%s8262_s7 + $0x58] sm:$0xff] }
 0x79d   :  { %v5204_v23 = vpop.f32.mrf.mxu0 }
 0x79e   :  { %v5247_v24 = vpop.f32.mrf.mxu1  ;;  %v5246_v25 = vadd.f32 %v5245_v18, %v5203_v21  ;;  %v5205_v26 = vadd.f32 %v5204_v23, %v4437_v51  ;;  %v5421_v18 = vld [vmem:[%s8262_s7 + $0x158] sm:$0xff]  ;;  %v5404_v21 = vld [vmem:[%s8262_s7 + $0xd0] sm:$0xff] }
 0x79f   :  { %v5206_v27 = vpop.f32.mrf.mxu0  ;;  %v5436_v23 = vld [vmem:[%s8262_s7 + $0x1d0] sm:$0xff] }
 0x7a0   :  { %v5249_v28 = vpop.f32.mrf.mxu1  ;;  %7394 = vtanh.f32 %v5246_v25  ;;  %v5248_v29 = vadd.f32 %v5247_v24, %v5205_v26  ;;  %v5207_v30 = vadd.f32 %v5206_v27, %v4433_v52  ;;  %v5438_v52 = vld [vmem:[%s8262_s7 + $0x1e0] sm:$0xff]  ;;  %v5388_v24 = vld [vmem:[%s8262_s7 + $0x50] sm:$0xff]  ;;  %v5403_v26 = vld [vmem:[%s8262_s7 + $0xc8] sm:$0xff] }
 0x7a1   :  { %v5208_v35 = vpop.f32.mrf.mxu0  ;;  %6310 = vmatprep.subr.mxu1 %v5438_v52  ;;  %v5420_v25 = vld [vmem:[%s8262_s7 + $0x150] sm:$0xff]  ;;  %v5435_v27 = vld [vmem:[%s8262_s7 + $0x1c8] sm:$0xff] }
 0x7a2   :  { %7396 = vtanh.f32 %v5248_v29  ;;  %v5250_v36 = vadd.f32 %v5249_v28, %v5207_v30  ;;  %v5209_v37 = vadd.f32 %v5208_v35, %v4437_v51  ;;  %v5251_v38 = vpop.f32.mrf.mxu1  ;;  %6311 = vmatpush3.msra.mxu1 %v5422_v49  ;;  %v5405_v51 = vld [vmem:[%s8262_s7 + $0xd8] sm:$0xff]  ;;  %v5387_v28 = vld [vmem:[%s8262_s7 + $0x48] sm:$0xff]  ;;  %v5402_v30 = vld [vmem:[%s8262_s7 + $0xc0] sm:$0xff] }
 0x7a3   :  { %6274 = vmatprep.subr.mxu0 %v5405_v51  ;;  %6312 = vmatprep.subr.mxu1 %v5437_v4  ;;  %v5419_v29 = vld [vmem:[%s8262_s7 + $0x148] sm:$0xff]  ;;  %v5434_v35 = vld [vmem:[%s8262_s7 + $0x1c0] sm:$0xff] }
 0x7a4   :  { %7398 = vtanh.f32 %v5250_v36  ;;  %v5252_v31 = vadd.f32 %v5251_v38, %v5209_v37  ;;  %6275 = vmatpush3.msra.mxu0 %v5389_v63  ;;  %6313 = vmatpush3.msra.mxu1 %v5421_v18  ;;  %v5386_v36 = vld [vmem:[%s8262_s7 + $0x40] sm:$0xff]  ;;  %v5401_v38 = vld [vmem:[%s8262_s7 + $0xb8] sm:$0xff] }
 0x7a5   :  { %6276 = vmatprep.subr.mxu0 %v5404_v21  ;;  %6314 = vmatprep.subr.mxu1 %v5436_v23  ;;  %v5418_v37 = vld [vmem:[%s8262_s7 + $0x140] sm:$0xff] }
 0x7a6   :  { %7400 = vtanh.f32 %v5252_v31  ;;  %6277 = vmatpush3.msra.mxu0 %v5388_v24  ;;  %6315 = vmatpush3.msra.mxu1 %v5420_v25  ;;  %v5433_v31 = vld [vmem:[%s8262_s7 + $0x1b8] sm:$0xff] }
 0x7a7   :  { %6278 = vmatprep.subr.mxu0 %v5403_v26  ;;  %6316 = vmatprep.subr.mxu1 %v5435_v27 }
 0x7a8   :  { %6279 = vmatpush3.msra.mxu0 %v5387_v28  ;;  %6317 = vmatpush3.msra.mxu1 %v5419_v29  ;;  %v5318_v28 = vld [vmem:[#allocation9] sm:$0xf]  ;;  %v5348_v29 = vld [vmem:[#allocation11] sm:$0xf] }
 0x7a9   :  { %6280 = vmatprep.subr.mxu0 %v5402_v30  ;;  %6318 = vmatprep.subr.mxu1 %v5434_v35  ;;  %v5327_v30 = vrot.slane %v5318_v28, %v7765_v9  ;;  %v5335_v35 = vrot.slane %v5318_v28, %v7769_v11 }
 0x7aa   :  { %6281 = vmatpush3.msra.mxu0 %v5386_v36  ;;  %6319 = vmatpush3.msra.mxu1 %v5418_v37  ;;  %v5323_v36 = vrot.slane %v5318_v28, %v7763_v8  ;;  %v5331_v37 = vrot.slane %v5318_v28, %v7767_v10 }
 0x7ab   :  { %6282 = vmatprep.subr.mxu0 %v5401_v38  ;;  %6320 = vmatprep.subr.mxu1 %v5433_v31 }
 0x7ac   :  { %6283 = vmatpush3.msra.mxu0 %v5385_v34  ;;  %6321 = vmatpush3.msra.mxu1 %v5417_v50 }
 0x7ad   :  { %v8021_v3 = vpop.eup %7394 }
 0x7ae   :  { %v5263_v6 = vadd.f32 %v8021_v3, %v5262_v2  ;;  %v5274_v45 = vmul.f32 %v8021_v3, %v8021_v3  ;;  %v5400_v2 = vld [vmem:[%s8262_s7 + $0xb0] sm:$0xff] }
 0x7af   :  { %v8028_v20 = vpop.eup %7396  ;;  %6284 = vmatprep.subr.mxu0 %v5400_v2 }
 0x7b0   :  { %v5264_v12 = vadd.f32 %v8028_v20, %v5263_v6  ;;  %v5275_v19 = vmul.f32 %v8028_v20, %v8028_v20  ;;  %v5281_v13 = vadd.f32 %v5280_v47, %v5274_v45  ;;  %v5432_v6 = vld [vmem:[%s8262_s7 + $0x1b0] sm:$0xff] }
 0x7b1   :  { %v8037_v53 = vpop.eup %7398  ;;  %v5384_v45 = vld [vmem:[%s8262_s7 + $0x30] sm:$0xff]  ;;  %6322 = vmatprep.subr.mxu1 %v5432_v6  ;;  %v5357_v6 = vrot.slane %v5348_v29, %v7765_v9 }
 0x7b2   :  { %5265 = vadd.xlane.f32.xlu0 %v5264_v12  ;;  %v5268_v0 = vadd.f32 %v8037_v53, %v5267_v40  ;;  %v5278_v44 = vmul.f32 %v8037_v53, %v8037_v53  ;;  %v5282_v5 = vadd.f32 %v5281_v13, %v5275_v19  ;;  %v5416_v47 = vld [vmem:[%s8262_s7 + $0x130] sm:$0xff]  ;;  %v5383_v12 = vld [vmem:[%s8262_s7 + $0x28] sm:$0xff]  ;;  %6285 = vmatpush3.msra.mxu0 %v5384_v45  ;;  %v5398_v19 = vld [vmem:[%s8262_s7 + $0xa0] sm:$0xff] }
 0x7b3   :  { %v8042_v14 = vpop.eup %7400  ;;  %v5415_v40 = vld [vmem:[%s8262_s7 + $0x128] sm:$0xff]  ;;  %6323 = vmatpush3.msra.mxu1 %v5416_v47  ;;  %v5430_v13 = vld [vmem:[%s8262_s7 + $0x1a0] sm:$0xff]  ;;  %6286 = vmatprep.subr.mxu0 %v5399_v7  ;;  %v5365_v45 = vrot.slane %v5348_v29, %v7769_v11  ;;  %v5353_v47 = vrot.slane %v5348_v29, %v7763_v8  ;;  %v5361_v7 = vrot.slane %v5348_v29, %v7767_v10 }
 0x7b4   :  { %v5269_v56 = vadd.f32 %v8042_v14, %v5268_v0  ;;  %v5279_v43 = vmul.f32 %v8042_v14, %v8042_v14  ;;  %v5286_v57 = vadd.f32 %v5285_v54, %v5278_v44  ;;  %6324 = vmatprep.subr.mxu1 %v5431_v22  ;;  %v5382_v0 = vld [vmem:[%s8262_s7 + $0x20] sm:$0xff]  ;;  %6287 = vmatpush3.msra.mxu0 %v5383_v12  ;;  %v5397_v54 = vld [vmem:[%s8262_s7 + $0x98] sm:$0xff] }
 0x7b5   :  { %v5414_v44 = vld [vmem:[%s8262_s7 + $0x120] sm:$0xff]  ;;  %6325 = vmatpush3.msra.mxu1 %v5415_v40  ;;  %6288 = vmatprep.subr.mxu0 %v5398_v19 }
 0x7b6   :  { %5270 = vadd.xlane.f32.xlu1 %v5269_v56  ;;  %5283 = vadd.xlane.f32.xlu0 %v5282_v5  ;;  %v5287_v15 = vadd.f32 %v5286_v57, %v5279_v43  ;;  %v5429_v56 = vld [vmem:[%s8262_s7 + $0x198] sm:$0xff]  ;;  %v5396_v57 = vld [vmem:[%s8262_s7 + $0x90] sm:$0xff] }
 0x7b7   :  { %6326 = vmatprep.subr.mxu1 %v5430_v13  ;;  %v5381_v5 = vld [vmem:[%s8262_s7 + $0x18] sm:$0xff]  ;;  %6289 = vmatpush3.msra.mxu0 %v5382_v0 }
 0x7b8   :  { %v5413_v43 = vld [vmem:[%s8262_s7 + $0x118] sm:$0xff]  ;;  %6327 = vmatpush3.msra.mxu1 %v5414_v44  ;;  %6290 = vmatprep.subr.mxu0 %v5397_v54 }
 0x7b9   :  { %6328 = vmatprep.subr.mxu1 %v5429_v56  ;;  %6291 = vmatpush3.msra.mxu0 %v5381_v5 }
 0x7ba   :  { %5288 = vadd.xlane.f32.xlu1 %v5287_v15  ;;  %v5428_v15 = vld [vmem:[%s8262_s7 + $0x190] sm:$0xff]  ;;  %6329 = vmatpush3.msra.mxu1 %v5413_v43 }
 0x7bb   :  { %6292 = vmatprep.subr.mxu0 %v5396_v57  ;;  %6330 = vmatprep.subr.mxu1 %v5428_v15 }
 0x7bc   :  { %6293 = vmatpush3.msra.mxu0 %v5380_v46  ;;  %6331 = vmatpush3.msra.mxu1 %v5412_v16 }
 0x7bd   :  { %6294 = vmatprep.subr.mxu0 %v5395_v41  ;;  %6332 = vmatprep.subr.mxu1 %v5427_v17 }
 0x7be   :  { %6295 = vmatpush3.msra.mxu0 %v5379_v39  ;;  %6333 = vmatpush3.msra.mxu1 %v5411_v42 }
 0x7bf   :  { %6296 = vmatprep.subr.mxu0 %v5394_v55  ;;  %6334 = vmatprep.subr.mxu1 %v5426_v58  ;;  %v6263_v55 = vld [vmem:[#allocation12] ss:$0 sm:$0xff] }
 0x7c0   :  { %6297 = vmatpush3.msra.mxu0 %v5378_v61  ;;  %6335 = vmatpush3.msra.mxu1 %v5410_v62 }
 0x83b   :  { %v5266_v48 = vpop.xlane.xlu0 %5265 }
 0x83c   :  { %v5290_v52 = vmul.f32 0.001953125, %v5266_v48 }
 0x83e   :  { %v5294_v4 = vmul.f32 %v5290_v52, %v5290_v52  ;;  %v5298_v38 = vsub.f32 %v8007_v32, %v5290_v52  ;;  %v5300_v31 = vsub.f32 %v8021_v3, %v5290_v52  ;;  %v5299_v34 = vsub.f32 %v8009_v33, %v5290_v52 }
 0x83f   :  { %v5271_v59 = vpop.xlane.xlu1 %5270  ;;  %v5284_v49 = vpop.xlane.xlu0 %5283  ;;  %v5301_v50 = vsub.f32 %v8028_v20, %v5290_v52 }
 0x840   :  { %v5291_v51 = vmul.f32 0.001953125, %v5271_v59  ;;  %v5292_v63 = vmul.f32 0.001953125, %v5284_v49 }
 0x842   :  { %v5296_v18 = vsub.f32 %v5292_v63, %v5294_v4  ;;  %v5295_v24 = vmul.f32 %v5291_v51, %v5291_v51  ;;  %v5303_v20 = vsub.f32 %v8015_v60, %v5291_v51  ;;  %v5305_v44 = vsub.f32 %v8042_v14, %v5291_v51 }
 0x843   :  { %v5289_v21 = vpop.xlane.xlu1 %5288  ;;  %v5302_v9 = vsub.f32 %v8017_v1, %v5291_v51  ;;  %v5304_v11 = vsub.f32 %v8037_v53, %v5291_v51 }
 0x844   :  { %v5306_v23 = vadd.f32 1e-05, %v5296_v18  ;;  %v5293_v25 = vmul.f32 0.001953125, %v5289_v21 }
 0x846   :  { %7402 = vrsqrt.f32 %v5306_v23  ;;  %v5297_v26 = vsub.f32 %v5293_v25, %v5295_v24 }
 0x848   :  { %v5307_v27 = vadd.f32 1e-05, %v5297_v26 }
 0x84a   :  { %7404 = vrsqrt.f32 %v5307_v27 }
 0x853   :  { %v7403_v2 = vpop.eup %7402 }
 0x854   :  { %v5311_v22 = vmul.f32 %v7403_v2, %v5299_v34  ;;  %v5313_v12 = vmul.f32 %v7403_v2, %v5301_v50  ;;  %v5310_v40 = vmul.f32 %v7403_v2, %v5298_v38  ;;  %v5312_v19 = vmul.f32 %v7403_v2, %v5300_v31 }
 0x856   :  { %v5341_v32 = vmul.f32 %v5327_v30, %v5311_v22  ;;  %v5343_v13 = vmul.f32 %v5335_v35, %v5313_v12  ;;  %v5340_v3 = vmul.f32 %v5323_v36, %v5310_v40  ;;  %v5342_v0 = vmul.f32 %v5331_v37, %v5312_v19 }
 0x857   :  { %v7405_v33 = vpop.eup %7404 }
 0x858   :  { %v5371_v8 = vadd.f32 %v5357_v6, %v5341_v32  ;;  %v5373_v54 = vadd.f32 %v5365_v45, %v5343_v13  ;;  %v5370_v10 = vadd.f32 %v5353_v47, %v5340_v3  ;;  %v5372_v56 = vadd.f32 %v5361_v7, %v5342_v0 }
 0x859   :  { %v5315_v5 = vmul.f32 %v7405_v33, %v5303_v20  ;;  %v5317_v43 = vmul.f32 %v7405_v33, %v5305_v44  ;;  %v5314_v57 = vmul.f32 %v7405_v33, %v5302_v9  ;;  %v5316_v15 = vmul.f32 %v7405_v33, %v5304_v11 }
 0x85a   :  { %5513 = vmatprep.mubr.f32.mxu0 %v5371_v8  ;;  %5588 = vmatprep.mubr.f32.mxu1 %v5373_v54 }
 0x85b   :  { %5514 = vmatmul.mubr.f32.vlgmr.msra.gmra.mxu0 %v5370_v10  ;;  %5589 = vmatmul.mubr.f32.vlgmr.msra.gmra.mxu1 %v5372_v56  ;;  %v5345_v46 = vmul.f32 %v5327_v30, %v5315_v5  ;;  %v5347_v60 = vmul.f32 %v5335_v35, %v5317_v43  ;;  %v5344_v16 = vmul.f32 %v5323_v36, %v5314_v57 }
 0x85c   :  { %v5346_v14 = vmul.f32 %v5331_v37, %v5316_v15 }
 0x85d   :  { %v5375_v41 = vadd.f32 %v5357_v6, %v5345_v46  ;;  %v5377_v1 = vadd.f32 %v5365_v45, %v5347_v60  ;;  %v5374_v17 = vadd.f32 %v5353_v47, %v5344_v16 }
 0x85e   :  { %v5376_v53 = vadd.f32 %v5361_v7, %v5346_v14 }
 0x85f   :  { %5518 = vmatprep.mubr.f32.mxu0 %v5375_v41  ;;  %5593 = vmatprep.mubr.f32.mxu1 %v5377_v1 }
 0x860   :  { %5519 = vmatmul.mubr.f32.gmra.mxu0 %v5374_v17  ;;  %5594 = vmatmul.mubr.f32.gmra.mxu1 %v5376_v53 }
 0x91b   :  { %v6298_v39 = vpop.f32.mrf.mxu0  ;;  %v6336_v42 = vpop.f32.mrf.mxu1 }
 0x91d   :  { %v6299_v58 = vpop.f32.mrf.mxu0  ;;  %v6337_v61 = vpop.f32.mrf.mxu1 }
 0x91e   :  { %v6300_v62 = vadd.f32 %v6299_v58, %v6298_v39  ;;  %v6338_v52 = vadd.f32 %v6337_v61, %v6336_v42 }
 0x920   :  { %v5516_v48 = vadd.f32 %v6300_v62, %v6263_v55  ;;  %v6301_v59 = vpop.f32.mrf.mxu0  ;;  %v6339_v49 = vpop.f32.mrf.mxu1 }
 0x922   :  { %v5591_v51 = vadd.f32 %v6338_v52, %v5516_v48  ;;  %v6302_v4 = vpop.f32.mrf.mxu0  ;;  %v6340_v63 = vpop.f32.mrf.mxu1 }
 0x923   :  { %v6303_v18 = vadd.f32 %v6302_v4, %v6301_v59  ;;  %v6341_v23 = vadd.f32 %v6340_v63, %v6339_v49 }
 0x924   :  { %5600 = vst.msk [vmem:[%s8264_s9] sm:$0xff] %vm5599_vm0, %v5591_v51 }
 0x925   :  { %v5521_v21 = vadd.f32 %v6303_v18, %v6263_v55 }
 0x927   :  { %v5596_v24 = vadd.f32 %v6341_v23, %v5521_v21 }
 0x929   :  { %5601 = vst.msk [vmem:[%s8264_s9 + $0x8] sm:$0xff] %vm5599_vm0, %v5596_v24 }
 0x92a   :  { %5606 = vsyncpa [#allocation5], 1 }
 0x92b   :  { %5607 = vsyncpa [#allocation7], 1 }
 0x92c   :  { %5608 = vsyncpa [#allocation10], 1 }
 0x92d   :  { %5609 = vsyncpa [#allocation13], 1 }
 0x92e   :  { %5610 = vsyncmov [#allocation3] }
 0x931   :  { %s5611_s26 = vpop.sfrf %5610 }
 0x932   :  { %p6264_p12 = scmp.ne.s32.totalorder %s5611_s26, 0 }
 0x934   :  { %5615 = shalt.err (%p6264_p12)  }
 0x935   :  { %5617 = vsyncmov [#allocation3 + $0x1] }
 0x938   :  { %s5618_s27 = vpop.sfrf %5617 }
 0x939   :  { %p6265_p13 = scmp.ne.s32.totalorder %s5618_s27, 0 }
 0x93b   :  { %5622 = shalt.err (%p6265_p13)  }

</bundles_post_ra>
